<compile_context>
chip_gen: v7x
topology: tpu7x:2x2x1
jax: 0.10.0
libtpu: 0.0.40
codegen_flags: <defaults>
</compile_context>

<pallas_src>
import functools

import jax
import jax.numpy as jnp
from jax.experimental import pallas as pl
from jax.experimental.pallas import tpu as pltpu


# ----------------------------------------------------------------------------
# Fused Pallas kernel: one grid step == one batch element (all heads).
# ----------------------------------------------------------------------------
def _moh_fused_kernel(x_ref, gates_ref, wqkv_ref, bqkv_ref,
                      qg_ref, qb_ref, kg_ref, kb_ref,
                      wproj_ref, bproj_ref, o_ref,
                      *, num_heads, head_dim, eps, mxu_dtype):
    H, Dh = num_heads, head_dim
    N = x_ref.shape[0]
    C = o_ref.shape[1]

    x = x_ref[...].astype(mxu_dtype)                       # (N, C)

    # Hoist tiny LN-affine broadcasts out of the head loop (no per-head
    # broadcast_in_dim re-emission).  Attention scale is pre-folded into qg/qb.
    qg = jnp.broadcast_to(qg_ref[...], (N, Dh))
    qb = jnp.broadcast_to(qb_ref[...], (N, Dh))
    kg = jnp.broadcast_to(kg_ref[...], (N, Dh))
    kb = jnp.broadcast_to(kb_ref[...], (N, Dh))

    def layer_norm(t, gamma, beta):                        # t: (N, Dh) f32
        mu = jnp.mean(t, axis=-1, keepdims=True)
        var = jnp.mean((t - mu) ** 2, axis=-1, keepdims=True)
        return (t - mu) * jax.lax.rsqrt(var + eps) * gamma + beta

    # Lane-dense (N, C) f32 accumulator, initialized with the proj bias.
    acc = jnp.broadcast_to(bproj_ref[...], (N, C)).astype(jnp.float32)

    # Static unroll over heads: every op is a plain 2-D dot or elementwise op
    # on full tiles (no in-kernel reshapes/transposes/lane slicing), so the
    # LLO scheduler can freely interleave the per-head MXU/VPU/EUP work.
    # TODO(synk): for long sequences tile the KV axis with online softmax
    # (flash-style) instead of materializing the full (N, N) score tile.
    for h in range(H):
        w_q = wqkv_ref[0, h].astype(mxu_dtype)             # (C, Dh)
        w_k = wqkv_ref[1, h].astype(mxu_dtype)
        w_v = wqkv_ref[2, h].astype(mxu_dtype)
        q = jnp.dot(x, w_q, preferred_element_type=jnp.float32) + bqkv_ref[0, h]
        k = jnp.dot(x, w_k, preferred_element_type=jnp.float32) + bqkv_ref[1, h]
        v = jnp.dot(x, w_v, preferred_element_type=jnp.float32) + bqkv_ref[2, h]

        q = layer_norm(q, qg, qb)                          # scale folded into qg/qb
        k = layer_norm(k, kg, kb)

        # q @ k^T : contraction is only K = Dh, keep f32 (bf16 buys nothing here).
        s = jnp.dot(q, k.T, preferred_element_type=jnp.float32)     # (N, N)
        s = s - jnp.max(s, axis=-1, keepdims=True)
        p = jnp.exp(s)
        p = p * pl.reciprocal(jnp.sum(p, axis=-1, keepdims=True), approx=True)

        o_h = jnp.dot(p.astype(mxu_dtype), v.astype(mxu_dtype),
                      preferred_element_type=jnp.float32)            # (N, Dh)
        o_h = o_h * gates_ref[h]                           # (N, Dh) * (N, 1)

        # Fused per-head gating + output projection (block-row of W_proj),
        # accumulated directly into the lane-dense (N, C) slab.
        acc = acc + jnp.dot(o_h.astype(mxu_dtype),
                            wproj_ref[h].astype(mxu_dtype),
                            preferred_element_type=jnp.float32)      # (N, C)

    o_ref[...] = acc.astype(o_ref.dtype)


# ----------------------------------------------------------------------------
# Routing gates (tiny matmuls + top-k; plain-JAX glue)
# ----------------------------------------------------------------------------
def compute_masked_gates(_x, params, B, N, num_heads, shared_head, routed_head):
    # TODO(synk): lax.top_k routing has no clean in-kernel Mosaic lowering for
    # this tiny gate network; it stays in XLA (few-KB matmuls + top-k).
    E = num_heads - shared_head
    eps = jnp.finfo(_x.dtype).eps

    logits = _x @ params["wg"].T                               # (M, E)
    gates = jax.nn.softmax(logits, axis=1)
    _, idx = jax.lax.top_k(gates, routed_head)
    mask = jax.nn.one_hot(idx, E, dtype=gates.dtype).sum(axis=1)
    routed_gates = gates * mask
    denom = jnp.maximum(routed_gates.sum(axis=1, keepdims=True), eps)
    routed_gates = (routed_gates / denom).reshape(B, N, E) * routed_head

    shared_w = _x @ params["wg_1"].T                           # (M, shared_head)
    shared_gates = jax.nn.softmax(shared_w, axis=1).reshape(B, N, shared_head)
    shared_gates = shared_gates * shared_head

    w0 = jax.nn.softmax(_x @ params["wg_0"].T, axis=1).reshape(B, N, 2) * 2.0
    shared_gates = shared_gates * w0[:, :, 0:1]
    routed_gates = routed_gates * w0[:, :, 1:2]
    return jnp.concatenate([shared_gates, routed_gates], axis=2)  # (B, N, H)


# ----------------------------------------------------------------------------
# Full forward
# ----------------------------------------------------------------------------
def moh_attention_forward(x, params, *, num_heads=8, shared_head=2, routed_head=2,
                          mxu_dtype=jnp.bfloat16):
    B, N, C = x.shape
    H = num_heads
    Dh = params["q_gamma"].shape[-1]
    scale = float(Dh) ** -0.5
    _x = x.reshape(B * N, C)

    # TODO(synk): training-only load-balancing loss (l_aux) and dropout omitted
    # (inference semantics).
    masked_gates = compute_masked_gates(_x, params, B, N, H, shared_head, routed_head)
    gates_t = masked_gates.transpose(0, 2, 1)[..., None]            # (B, H, N, 1)

    # Trace-time weight prep (tiny, weights only — no activation traffic):
    #  * per-head (C, Dh) QKV blocks / (Dh, C) proj blocks so the kernel only
    #    uses leading-dim Ref indexing;
    #  * attention scale folded into the q-LayerNorm affine.
    w_qkv = params["w_qkv"].reshape(3, H, Dh, C).transpose(0, 1, 3, 2)  # (3,H,C,Dh)
    b_qkv = params["b_qkv"].reshape(3, H, 1, Dh)
    w_proj = params["w_proj"].T.reshape(H, Dh, C)                       # (H,Dh,C)
    b_proj = params["b_proj"].reshape(1, C)
    qg = (params["q_gamma"] * scale).reshape(1, Dh)
    qb = (params["q_beta"] * scale).reshape(1, Dh)
    kg = params["k_gamma"].reshape(1, Dh)
    kb = params["k_beta"].reshape(1, Dh)

    kern = functools.partial(_moh_fused_kernel, num_heads=H, head_dim=Dh,
                             eps=1e-5, mxu_dtype=mxu_dtype)
    full2 = lambda b: (0, 0)
    full3 = lambda b: (0, 0, 0)
    full4 = lambda b: (0, 0, 0, 0)

    return pl.pallas_call(
        kern,
        out_shape=jax.ShapeDtypeStruct((B, N, C), x.dtype),
        grid=(B,),                                    # one step per batch element
        in_specs=[
            pl.BlockSpec((None, N, C), lambda b: (b, 0, 0)),        # x
            pl.BlockSpec((None, H, N, 1), lambda b: (b, 0, 0, 0)),  # masked gates
            pl.BlockSpec((3, H, C, Dh), full4),                     # per-head W_qkv
            pl.BlockSpec((3, H, 1, Dh), full4),                     # per-head b_qkv
            pl.BlockSpec((1, Dh), full2),                           # q gamma * scale
            pl.BlockSpec((1, Dh), full2),                           # q beta  * scale
            pl.BlockSpec((1, Dh), full2),                           # k gamma
            pl.BlockSpec((1, Dh), full2),                           # k beta
            pl.BlockSpec((H, Dh, C), full3),                        # per-head W_proj
            pl.BlockSpec((1, C), full2),                            # b_proj
        ],
        out_specs=pl.BlockSpec((None, N, C), lambda b: (b, 0, 0)),
        compiler_params=pltpu.CompilerParams(
            dimension_semantics=("parallel",)),       # batch axis feeds both v7x TCs
    )(x, gates_t, w_qkv, b_qkv, qg, qb, kg, kb, w_proj, b_proj)


# ----------------------------------------------------------------------------
# Pure-JAX reference (mirrors the PyTorch forward, eval mode) for verification.
# ----------------------------------------------------------------------------
def moh_attention_reference(x, params, *, num_heads=8, shared_head=2, routed_head=2):
    B, N, C = x.shape
    H = num_heads
    Dh = params["q_gamma"].shape[-1]
    scale = float(Dh) ** -0.5
    _x = x.reshape(B * N, C)
    masked_gates = compute_masked_gates(_x, params, B, N, H, shared_head, routed_head)

    qkv = (_x @ params["w_qkv"].T + params["b_qkv"]).reshape(B, N, 3, H, Dh)
    qkv = qkv.transpose(2, 0, 3, 1, 4)
    q, k, v = qkv[0], qkv[1], qkv[2]

    def ln(t, g, b):
        mu = jnp.mean(t, axis=-1, keepdims=True)
        var = jnp.mean((t - mu) ** 2, axis=-1, keepdims=True)
        return (t - mu) / jnp.sqrt(var + 1e-5) * g + b

    q = ln(q, params["q_gamma"], params["q_beta"]) * scale
    k = ln(k, params["k_gamma"], params["k_beta"])
    attn = jax.nn.softmax(jnp.einsum("bhqd,bhkd->bhqk", q, k), axis=-1)
    o = jnp.einsum("bhqk,bhkd->bhqd", attn, v)
    o = o.transpose(0, 2, 1, 3)                                        # (B,N,H,Dh)
    o = (o * masked_gates[..., None]).reshape(B, N, H * Dh)
    return o @ params["w_proj"].T + params["b_proj"]


# ----------------------------------------------------------------------------
# Deterministic parameter construction (PyTorch __init__ shapes)
# ----------------------------------------------------------------------------
def make_params(key, dim, num_heads, head_dim, shared_head):
    ks = jax.random.split(key, 12)
    s = 0.05
    return {
        "w_qkv":  jax.random.normal(ks[0], (3 * num_heads * head_dim, dim), jnp.float32) * s,
        "b_qkv":  jax.random.normal(ks[1], (3 * num_heads * head_dim,), jnp.float32) * s,
        "q_gamma": 1.0 + 0.1 * jax.random.normal(ks[2], (head_dim,), jnp.float32),
        "q_beta":  0.1 * jax.random.normal(ks[3], (head_dim,), jnp.float32),
        "k_gamma": 1.0 + 0.1 * jax.random.normal(ks[4], (head_dim,), jnp.float32),
        "k_beta":  0.1 * jax.random.normal(ks[5], (head_dim,), jnp.float32),
        "w_proj": jax.random.normal(ks[6], (dim, num_heads * head_dim), jnp.float32) * s,
        "b_proj": jax.random.normal(ks[7], (dim,), jnp.float32) * s,
        "wg":     jax.random.normal(ks[8], (num_heads - shared_head, dim), jnp.float32) * s,
        "wg_0":   jax.random.normal(ks[9], (2, dim), jnp.float32) * s,
        "wg_1":   jax.random.normal(ks[10], (shared_head, dim), jnp.float32) * s,
    }


if __name__ == "__main__":
    B, N, dim = 2, 16, 64
    num_heads, shared_head, routed_head = 8, 2, 2
    head_dim = dim // num_heads

    key = jax.random.PRNGKey(0)
    k_param, k_x = jax.random.split(key)
    params = make_params(k_param, dim, num_heads, head_dim, shared_head)
    x = jax.random.normal(k_x, (B, N, dim), jnp.float32)

    y_ref = moh_attention_reference(
        x, params, num_heads=num_heads,
        shared_head=shared_head, routed_head=routed_head)

    # f32 MXU path (v5e-friendly) — tight check.
    fwd_f32 = jax.jit(functools.partial(
        moh_attention_forward, num_heads=num_heads, shared_head=shared_head,
        routed_head=routed_head, mxu_dtype=jnp.float32))
    y32 = fwd_f32(x, params)
    jax.block_until_ready(y32)
    assert y32.shape == (B, N, dim)
    assert jnp.allclose(y32, y_ref, rtol=5e-3, atol=5e-3), \
        f"f32 max err {jnp.max(jnp.abs(y32 - y_ref))}"

    # bf16 MXU path (v6e / v7x fast path; f32 accumulation) — looser check.
    fwd_bf16 = jax.jit(functools.partial(
        moh_attention_forward, num_heads=num_heads, shared_head=shared_head,
        routed_head=routed_head, mxu_dtype=jnp.bfloat16))
    y16 = fwd_bf16(x, params)
    jax.block_until_ready(y16)
    assert y16.shape == (B, N, dim)
    assert jnp.allclose(y16, y_ref, rtol=2e-2, atol=2e-2), \
        f"bf16 max err {jnp.max(jnp.abs(y16 - y_ref))}"

    print("KERNEL_OK")
</pallas_src>

<mosaic_0001>
module attributes {stable_mosaic.version = 11 : i64} {
  func.func @_moh_fused_kernel(%arg0: i32, %arg1: memref<1x16x64xf32, #tpu.memory_space<vmem>>, %arg2: memref<1x8x16x1xf32, #tpu.memory_space<vmem>>, %arg3: memref<3x8x64x8xf32, #tpu.memory_space<vmem>>, %arg4: memref<3x8x1x8xf32, #tpu.memory_space<vmem>>, %arg5: memref<1x8xf32, #tpu.memory_space<vmem>>, %arg6: memref<1x8xf32, #tpu.memory_space<vmem>>, %arg7: memref<1x8xf32, #tpu.memory_space<vmem>>, %arg8: memref<1x8xf32, #tpu.memory_space<vmem>>, %arg9: memref<8x8x64xf32, #tpu.memory_space<vmem>>, %arg10: memref<1x64xf32, #tpu.memory_space<vmem>>, %arg11: memref<1x16x64xf32, #tpu.memory_space<vmem>>) attributes {dimension_semantics = [#tpu.dimension_semantics<parallel>], iteration_bounds = array<i64: 2>, scalar_prefetch = 0 : i64, scratch_operands = 0 : i64, tpu.core_type = #tpu.core_type<tc>, window_params = [{transform_indices = @transform_0, window_bounds = array<i64: 1, 16, 64>}, {transform_indices = @transform_1, window_bounds = array<i64: 1, 8, 16, 1>}, {pipeline_mode = #tpu.pipeline_mode<synchronous>, transform_indices = @transform_2, window_bounds = array<i64: 3, 8, 64, 8>}, {pipeline_mode = #tpu.pipeline_mode<synchronous>, transform_indices = @transform_3, window_bounds = array<i64: 3, 8, 1, 8>}, {pipeline_mode = #tpu.pipeline_mode<synchronous>, transform_indices = @transform_4, window_bounds = array<i64: 1, 8>}, {pipeline_mode = #tpu.pipeline_mode<synchronous>, transform_indices = @transform_5, window_bounds = array<i64: 1, 8>}, {pipeline_mode = #tpu.pipeline_mode<synchronous>, transform_indices = @transform_6, window_bounds = array<i64: 1, 8>}, {pipeline_mode = #tpu.pipeline_mode<synchronous>, transform_indices = @transform_7, window_bounds = array<i64: 1, 8>}, {pipeline_mode = #tpu.pipeline_mode<synchronous>, transform_indices = @transform_8, window_bounds = array<i64: 8, 8, 64>}, {pipeline_mode = #tpu.pipeline_mode<synchronous>, transform_indices = @transform_9, window_bounds = array<i64: 1, 64>}, {transform_indices = @transform_10, window_bounds = array<i64: 1, 16, 64>}]} {
    %c0 = arith.constant 0 : index
    %c0_0 = arith.constant 0 : index
    %c0_1 = arith.constant 0 : index
    %0 = vector.load %arg1[%c0, %c0_0, %c0_1] : memref<1x16x64xf32, #tpu.memory_space<vmem>>, vector<1x16x64xf32>
    %1 = vector.shape_cast %0 : vector<1x16x64xf32> to vector<16x64xf32>
    %c0_2 = arith.constant 0 : index
    %c0_3 = arith.constant 0 : index
    %2 = vector.load %arg5[%c0_2, %c0_3] : memref<1x8xf32, #tpu.memory_space<vmem>>, vector<1x8xf32>
    %3 = vector.shape_cast %2 : vector<1x8xf32> to vector<1x8xf32>
    %4 = vector.broadcast %3 : vector<1x8xf32> to vector<16x8xf32>
    %c0_4 = arith.constant 0 : index
    %c0_5 = arith.constant 0 : index
    %5 = vector.load %arg6[%c0_4, %c0_5] : memref<1x8xf32, #tpu.memory_space<vmem>>, vector<1x8xf32>
    %6 = vector.shape_cast %5 : vector<1x8xf32> to vector<1x8xf32>
    %7 = vector.broadcast %6 : vector<1x8xf32> to vector<16x8xf32>
    %c0_6 = arith.constant 0 : index
    %c0_7 = arith.constant 0 : index
    %8 = vector.load %arg7[%c0_6, %c0_7] : memref<1x8xf32, #tpu.memory_space<vmem>>, vector<1x8xf32>
    %9 = vector.shape_cast %8 : vector<1x8xf32> to vector<1x8xf32>
    %10 = vector.broadcast %9 : vector<1x8xf32> to vector<16x8xf32>
    %c0_8 = arith.constant 0 : index
    %c0_9 = arith.constant 0 : index
    %11 = vector.load %arg8[%c0_8, %c0_9] : memref<1x8xf32, #tpu.memory_space<vmem>>, vector<1x8xf32>
    %12 = vector.shape_cast %11 : vector<1x8xf32> to vector<1x8xf32>
    %13 = vector.broadcast %12 : vector<1x8xf32> to vector<16x8xf32>
    %c0_10 = arith.constant 0 : index
    %c0_11 = arith.constant 0 : index
    %14 = vector.load %arg10[%c0_10, %c0_11] : memref<1x64xf32, #tpu.memory_space<vmem>>, vector<1x64xf32>
    %15 = vector.shape_cast %14 : vector<1x64xf32> to vector<1x64xf32>
    %16 = vector.broadcast %15 : vector<1x64xf32> to vector<16x64xf32>
    %c0_12 = arith.constant 0 : index
    %c0_13 = arith.constant 0 : index
    %c0_14 = arith.constant 0 : index
    %c0_15 = arith.constant 0 : index
    %17 = vector.load %arg3[%c0_12, %c0_13, %c0_14, %c0_15] : memref<3x8x64x8xf32, #tpu.memory_space<vmem>>, vector<1x1x64x8xf32>
    %18 = vector.shape_cast %17 : vector<1x1x64x8xf32> to vector<64x8xf32>
    %c1 = arith.constant 1 : index
    %c0_16 = arith.constant 0 : index
    %c0_17 = arith.constant 0 : index
    %c0_18 = arith.constant 0 : index
    %19 = vector.load %arg3[%c1, %c0_16, %c0_17, %c0_18] : memref<3x8x64x8xf32, #tpu.memory_space<vmem>>, vector<1x1x64x8xf32>
    %20 = vector.shape_cast %19 : vector<1x1x64x8xf32> to vector<64x8xf32>
    %c2 = arith.constant 2 : index
    %c0_19 = arith.constant 0 : index
    %c0_20 = arith.constant 0 : index
    %c0_21 = arith.constant 0 : index
    %21 = vector.load %arg3[%c2, %c0_19, %c0_20, %c0_21] : memref<3x8x64x8xf32, #tpu.memory_space<vmem>>, vector<1x1x64x8xf32>
    %22 = vector.shape_cast %21 : vector<1x1x64x8xf32> to vector<64x8xf32>
    %cst = arith.constant dense<0.000000e+00> : vector<16x8xf32>
    %23 = tpu.matmul %1, %18, %cst {dimension_numbers = #tpu.dot_dimension_numbers<[1], [0], [0], [1], [0, 0, 1, 1], [], []>} : vector<16x64xf32>, vector<64x8xf32>, vector<16x8xf32> -> vector<16x8xf32>
    %c0_22 = arith.constant 0 : index
    %c0_23 = arith.constant 0 : index
    %c0_24 = arith.constant 0 : index
    %c0_25 = arith.constant 0 : index
    %24 = vector.load %arg4[%c0_22, %c0_23, %c0_24, %c0_25] : memref<3x8x1x8xf32, #tpu.memory_space<vmem>>, vector<1x1x1x8xf32>
    %25 = vector.shape_cast %24 : vector<1x1x1x8xf32> to vector<1x8xf32>
    %26 = vector.broadcast %25 : vector<1x8xf32> to vector<16x8xf32>
    %27 = arith.addf %23, %26 : vector<16x8xf32>
    %cst_26 = arith.constant dense<0.000000e+00> : vector<16x8xf32>
    %28 = tpu.matmul %1, %20, %cst_26 {dimension_numbers = #tpu.dot_dimension_numbers<[1], [0], [0], [1], [0, 0, 1, 1], [], []>} : vector<16x64xf32>, vector<64x8xf32>, vector<16x8xf32> -> vector<16x8xf32>
    %c1_27 = arith.constant 1 : index
    %c0_28 = arith.constant 0 : index
    %c0_29 = arith.constant 0 : index
    %c0_30 = arith.constant 0 : index
    %29 = vector.load %arg4[%c1_27, %c0_28, %c0_29, %c0_30] : memref<3x8x1x8xf32, #tpu.memory_space<vmem>>, vector<1x1x1x8xf32>
    %30 = vector.shape_cast %29 : vector<1x1x1x8xf32> to vector<1x8xf32>
    %31 = vector.broadcast %30 : vector<1x8xf32> to vector<16x8xf32>
    %32 = arith.addf %28, %31 : vector<16x8xf32>
    %cst_31 = arith.constant dense<0.000000e+00> : vector<16x8xf32>
    %33 = tpu.matmul %1, %22, %cst_31 {dimension_numbers = #tpu.dot_dimension_numbers<[1], [0], [0], [1], [0, 0, 1, 1], [], []>} : vector<16x64xf32>, vector<64x8xf32>, vector<16x8xf32> -> vector<16x8xf32>
    %c2_32 = arith.constant 2 : index
    %c0_33 = arith.constant 0 : index
    %c0_34 = arith.constant 0 : index
    %c0_35 = arith.constant 0 : index
    %34 = vector.load %arg4[%c2_32, %c0_33, %c0_34, %c0_35] : memref<3x8x1x8xf32, #tpu.memory_space<vmem>>, vector<1x1x1x8xf32>
    %35 = vector.shape_cast %34 : vector<1x1x1x8xf32> to vector<1x8xf32>
    %36 = vector.broadcast %35 : vector<1x8xf32> to vector<16x8xf32>
    %37 = arith.addf %33, %36 : vector<16x8xf32>
    %cst_36 = arith.constant dense<0.000000e+00> : vector<16xf32>
    %38 = vector.multi_reduction <add>, %27, %cst_36 [1] : vector<16x8xf32> to vector<16xf32>
    %39 = vector.shape_cast %38 : vector<16xf32> to vector<16x1xf32>
    %cst_37 = arith.constant 8.000000e+00 : f32
    %40 = vector.broadcast %cst_37 : f32 to vector<16x1xf32>
    %41 = arith.divf %39, %40 : vector<16x1xf32>
    %42 = vector.broadcast %41 : vector<16x1xf32> to vector<16x8xf32>
    %43 = arith.subf %27, %42 : vector<16x8xf32>
    %44 = arith.mulf %43, %43 : vector<16x8xf32>
    %cst_38 = arith.constant dense<0.000000e+00> : vector<16xf32>
    %45 = vector.multi_reduction <add>, %44, %cst_38 [1] : vector<16x8xf32> to vector<16xf32>
    %46 = vector.shape_cast %45 : vector<16xf32> to vector<16x1xf32>
    %cst_39 = arith.constant 8.000000e+00 : f32
    %47 = vector.broadcast %cst_39 : f32 to vector<16x1xf32>
    %48 = arith.divf %46, %47 : vector<16x1xf32>
    %49 = vector.broadcast %41 : vector<16x1xf32> to vector<16x8xf32>
    %50 = arith.subf %27, %49 : vector<16x8xf32>
    %cst_40 = arith.constant 9.99999974E-6 : f32
    %51 = vector.broadcast %cst_40 : f32 to vector<16x1xf32>
    %52 = arith.addf %48, %51 : vector<16x1xf32>
    %53 = math.rsqrt %52 : vector<16x1xf32>
    %54 = vector.broadcast %53 : vector<16x1xf32> to vector<16x8xf32>
    %55 = arith.mulf %50, %54 : vector<16x8xf32>
    %56 = arith.mulf %55, %4 : vector<16x8xf32>
    %57 = arith.addf %56, %7 : vector<16x8xf32>
    %cst_41 = arith.constant dense<0.000000e+00> : vector<16xf32>
    %58 = vector.multi_reduction <add>, %32, %cst_41 [1] : vector<16x8xf32> to vector<16xf32>
    %59 = vector.shape_cast %58 : vector<16xf32> to vector<16x1xf32>
    %cst_42 = arith.constant 8.000000e+00 : f32
    %60 = vector.broadcast %cst_42 : f32 to vector<16x1xf32>
    %61 = arith.divf %59, %60 : vector<16x1xf32>
    %62 = vector.broadcast %61 : vector<16x1xf32> to vector<16x8xf32>
    %63 = arith.subf %32, %62 : vector<16x8xf32>
    %64 = arith.mulf %63, %63 : vector<16x8xf32>
    %cst_43 = arith.constant dense<0.000000e+00> : vector<16xf32>
    %65 = vector.multi_reduction <add>, %64, %cst_43 [1] : vector<16x8xf32> to vector<16xf32>
    %66 = vector.shape_cast %65 : vector<16xf32> to vector<16x1xf32>
    %cst_44 = arith.constant 8.000000e+00 : f32
    %67 = vector.broadcast %cst_44 : f32 to vector<16x1xf32>
    %68 = arith.divf %66, %67 : vector<16x1xf32>
    %69 = vector.broadcast %61 : vector<16x1xf32> to vector<16x8xf32>
    %70 = arith.subf %32, %69 : vector<16x8xf32>
    %cst_45 = arith.constant 9.99999974E-6 : f32
    %71 = vector.broadcast %cst_45 : f32 to vector<16x1xf32>
    %72 = arith.addf %68, %71 : vector<16x1xf32>
    %73 = math.rsqrt %72 : vector<16x1xf32>
    %74 = vector.broadcast %73 : vector<16x1xf32> to vector<16x8xf32>
    %75 = arith.mulf %70, %74 : vector<16x8xf32>
    %76 = arith.mulf %75, %10 : vector<16x8xf32>
    %77 = arith.addf %76, %13 : vector<16x8xf32>
    %78 = tpu.transpose %77, [1, 0] : vector<16x8xf32> -> vector<8x16xf32>
    %cst_46 = arith.constant dense<0.000000e+00> : vector<16x16xf32>
    %79 = tpu.matmul %57, %78, %cst_46 {dimension_numbers = #tpu.dot_dimension_numbers<[1], [0], [0], [1], [0, 0, 1, 1], [], []>} : vector<16x8xf32>, vector<8x16xf32>, vector<16x16xf32> -> vector<16x16xf32>
    %cst_47 = arith.constant dense<0xFF800000> : vector<16xf32>
    %80 = vector.multi_reduction <maximumf>, %79, %cst_47 [1] : vector<16x16xf32> to vector<16xf32>
    %81 = vector.shape_cast %80 : vector<16xf32> to vector<16x1xf32>
    %82 = vector.broadcast %81 : vector<16x1xf32> to vector<16x16xf32>
    %83 = arith.subf %79, %82 : vector<16x16xf32>
    %84 = math.exp %83 : vector<16x16xf32>
    %cst_48 = arith.constant dense<0.000000e+00> : vector<16xf32>
    %85 = vector.multi_reduction <add>, %84, %cst_48 [1] : vector<16x16xf32> to vector<16xf32>
    %86 = vector.shape_cast %85 : vector<16xf32> to vector<16x1xf32>
    %87 = tpu.reciprocal %86 {approx = true} : vector<16x1xf32> -> vector<16x1xf32>
    %88 = vector.broadcast %87 : vector<16x1xf32> to vector<16x16xf32>
    %89 = arith.mulf %84, %88 : vector<16x16xf32>
    %cst_49 = arith.constant dense<0.000000e+00> : vector<16x8xf32>
    %90 = tpu.matmul %89, %37, %cst_49 {dimension_numbers = #tpu.dot_dimension_numbers<[1], [0], [0], [1], [0, 0, 1, 1], [], []>} : vector<16x16xf32>, vector<16x8xf32>, vector<16x8xf32> -> vector<16x8xf32>
    %c0_50 = arith.constant 0 : index
    %c0_51 = arith.constant 0 : index
    %c0_52 = arith.constant 0 : index
    %c0_53 = arith.constant 0 : index
    %91 = vector.load %arg2[%c0_50, %c0_51, %c0_52, %c0_53] : memref<1x8x16x1xf32, #tpu.memory_space<vmem>>, vector<1x1x16x1xf32>
    %92 = vector.shape_cast %91 : vector<1x1x16x1xf32> to vector<16x1xf32>
    %93 = vector.broadcast %92 : vector<16x1xf32> to vector<16x8xf32>
    %94 = arith.mulf %90, %93 : vector<16x8xf32>
    %c0_54 = arith.constant 0 : index
    %c0_55 = arith.constant 0 : index
    %c0_56 = arith.constant 0 : index
    %95 = vector.load %arg9[%c0_54, %c0_55, %c0_56] : memref<8x8x64xf32, #tpu.memory_space<vmem>>, vector<1x8x64xf32>
    %96 = vector.shape_cast %95 : vector<1x8x64xf32> to vector<8x64xf32>
    %cst_57 = arith.constant dense<0.000000e+00> : vector<16x64xf32>
    %97 = tpu.matmul %94, %96, %cst_57 {dimension_numbers = #tpu.dot_dimension_numbers<[1], [0], [0], [1], [0, 0, 1, 1], [], []>} : vector<16x8xf32>, vector<8x64xf32>, vector<16x64xf32> -> vector<16x64xf32>
    %98 = arith.addf %16, %97 : vector<16x64xf32>
    %c0_58 = arith.constant 0 : index
    %c1_59 = arith.constant 1 : index
    %c0_60 = arith.constant 0 : index
    %c0_61 = arith.constant 0 : index
    %99 = vector.load %arg3[%c0_58, %c1_59, %c0_60, %c0_61] : memref<3x8x64x8xf32, #tpu.memory_space<vmem>>, vector<1x1x64x8xf32>
    %100 = vector.shape_cast %99 : vector<1x1x64x8xf32> to vector<64x8xf32>
    %c1_62 = arith.constant 1 : index
    %c1_63 = arith.constant 1 : index
    %c0_64 = arith.constant 0 : index
    %c0_65 = arith.constant 0 : index
    %101 = vector.load %arg3[%c1_62, %c1_63, %c0_64, %c0_65] : memref<3x8x64x8xf32, #tpu.memory_space<vmem>>, vector<1x1x64x8xf32>
    %102 = vector.shape_cast %101 : vector<1x1x64x8xf32> to vector<64x8xf32>
    %c2_66 = arith.constant 2 : index
    %c1_67 = arith.constant 1 : index
    %c0_68 = arith.constant 0 : index
    %c0_69 = arith.constant 0 : index
    %103 = vector.load %arg3[%c2_66, %c1_67, %c0_68, %c0_69] : memref<3x8x64x8xf32, #tpu.memory_space<vmem>>, vector<1x1x64x8xf32>
    %104 = vector.shape_cast %103 : vector<1x1x64x8xf32> to vector<64x8xf32>
    %cst_70 = arith.constant dense<0.000000e+00> : vector<16x8xf32>
    %105 = tpu.matmul %1, %100, %cst_70 {dimension_numbers = #tpu.dot_dimension_numbers<[1], [0], [0], [1], [0, 0, 1, 1], [], []>} : vector<16x64xf32>, vector<64x8xf32>, vector<16x8xf32> -> vector<16x8xf32>
    %c0_71 = arith.constant 0 : index
    %c1_72 = arith.constant 1 : index
    %c0_73 = arith.constant 0 : index
    %c0_74 = arith.constant 0 : index
    %106 = vector.load %arg4[%c0_71, %c1_72, %c0_73, %c0_74] : memref<3x8x1x8xf32, #tpu.memory_space<vmem>>, vector<1x1x1x8xf32>
    %107 = vector.shape_cast %106 : vector<1x1x1x8xf32> to vector<1x8xf32>
    %108 = vector.broadcast %107 : vector<1x8xf32> to vector<16x8xf32>
    %109 = arith.addf %105, %108 : vector<16x8xf32>
    %cst_75 = arith.constant dense<0.000000e+00> : vector<16x8xf32>
    %110 = tpu.matmul %1, %102, %cst_75 {dimension_numbers = #tpu.dot_dimension_numbers<[1], [0], [0], [1], [0, 0, 1, 1], [], []>} : vector<16x64xf32>, vector<64x8xf32>, vector<16x8xf32> -> vector<16x8xf32>
    %c1_76 = arith.constant 1 : index
    %c1_77 = arith.constant 1 : index
    %c0_78 = arith.constant 0 : index
    %c0_79 = arith.constant 0 : index
    %111 = vector.load %arg4[%c1_76, %c1_77, %c0_78, %c0_79] : memref<3x8x1x8xf32, #tpu.memory_space<vmem>>, vector<1x1x1x8xf32>
    %112 = vector.shape_cast %111 : vector<1x1x1x8xf32> to vector<1x8xf32>
    %113 = vector.broadcast %112 : vector<1x8xf32> to vector<16x8xf32>
    %114 = arith.addf %110, %113 : vector<16x8xf32>
    %cst_80 = arith.constant dense<0.000000e+00> : vector<16x8xf32>
    %115 = tpu.matmul %1, %104, %cst_80 {dimension_numbers = #tpu.dot_dimension_numbers<[1], [0], [0], [1], [0, 0, 1, 1], [], []>} : vector<16x64xf32>, vector<64x8xf32>, vector<16x8xf32> -> vector<16x8xf32>
    %c2_81 = arith.constant 2 : index
    %c1_82 = arith.constant 1 : index
    %c0_83 = arith.constant 0 : index
    %c0_84 = arith.constant 0 : index
    %116 = vector.load %arg4[%c2_81, %c1_82, %c0_83, %c0_84] : memref<3x8x1x8xf32, #tpu.memory_space<vmem>>, vector<1x1x1x8xf32>
    %117 = vector.shape_cast %116 : vector<1x1x1x8xf32> to vector<1x8xf32>
    %118 = vector.broadcast %117 : vector<1x8xf32> to vector<16x8xf32>
    %119 = arith.addf %115, %118 : vector<16x8xf32>
    %cst_85 = arith.constant dense<0.000000e+00> : vector<16xf32>
    %120 = vector.multi_reduction <add>, %109, %cst_85 [1] : vector<16x8xf32> to vector<16xf32>
    %121 = vector.shape_cast %120 : vector<16xf32> to vector<16x1xf32>
    %cst_86 = arith.constant 8.000000e+00 : f32
    %122 = vector.broadcast %cst_86 : f32 to vector<16x1xf32>
    %123 = arith.divf %121, %122 : vector<16x1xf32>
    %124 = vector.broadcast %123 : vector<16x1xf32> to vector<16x8xf32>
    %125 = arith.subf %109, %124 : vector<16x8xf32>
    %126 = arith.mulf %125, %125 : vector<16x8xf32>
    %cst_87 = arith.constant dense<0.000000e+00> : vector<16xf32>
    %127 = vector.multi_reduction <add>, %126, %cst_87 [1] : vector<16x8xf32> to vector<16xf32>
    %128 = vector.shape_cast %127 : vector<16xf32> to vector<16x1xf32>
    %cst_88 = arith.constant 8.000000e+00 : f32
    %129 = vector.broadcast %cst_88 : f32 to vector<16x1xf32>
    %130 = arith.divf %128, %129 : vector<16x1xf32>
    %131 = vector.broadcast %123 : vector<16x1xf32> to vector<16x8xf32>
    %132 = arith.subf %109, %131 : vector<16x8xf32>
    %cst_89 = arith.constant 9.99999974E-6 : f32
    %133 = vector.broadcast %cst_89 : f32 to vector<16x1xf32>
    %134 = arith.addf %130, %133 : vector<16x1xf32>
    %135 = math.rsqrt %134 : vector<16x1xf32>
    %136 = vector.broadcast %135 : vector<16x1xf32> to vector<16x8xf32>
    %137 = arith.mulf %132, %136 : vector<16x8xf32>
    %138 = arith.mulf %137, %4 : vector<16x8xf32>
    %139 = arith.addf %138, %7 : vector<16x8xf32>
    %cst_90 = arith.constant dense<0.000000e+00> : vector<16xf32>
    %140 = vector.multi_reduction <add>, %114, %cst_90 [1] : vector<16x8xf32> to vector<16xf32>
    %141 = vector.shape_cast %140 : vector<16xf32> to vector<16x1xf32>
    %cst_91 = arith.constant 8.000000e+00 : f32
    %142 = vector.broadcast %cst_91 : f32 to vector<16x1xf32>
    %143 = arith.divf %141, %142 : vector<16x1xf32>
    %144 = vector.broadcast %143 : vector<16x1xf32> to vector<16x8xf32>
    %145 = arith.subf %114, %144 : vector<16x8xf32>
    %146 = arith.mulf %145, %145 : vector<16x8xf32>
    %cst_92 = arith.constant dense<0.000000e+00> : vector<16xf32>
    %147 = vector.multi_reduction <add>, %146, %cst_92 [1] : vector<16x8xf32> to vector<16xf32>
    %148 = vector.shape_cast %147 : vector<16xf32> to vector<16x1xf32>
    %cst_93 = arith.constant 8.000000e+00 : f32
    %149 = vector.broadcast %cst_93 : f32 to vector<16x1xf32>
    %150 = arith.divf %148, %149 : vector<16x1xf32>
    %151 = vector.broadcast %143 : vector<16x1xf32> to vector<16x8xf32>
    %152 = arith.subf %114, %151 : vector<16x8xf32>
    %cst_94 = arith.constant 9.99999974E-6 : f32
    %153 = vector.broadcast %cst_94 : f32 to vector<16x1xf32>
    %154 = arith.addf %150, %153 : vector<16x1xf32>
    %155 = math.rsqrt %154 : vector<16x1xf32>
    %156 = vector.broadcast %155 : vector<16x1xf32> to vector<16x8xf32>
    %157 = arith.mulf %152, %156 : vector<16x8xf32>
    %158 = arith.mulf %157, %10 : vector<16x8xf32>
    %159 = arith.addf %158, %13 : vector<16x8xf32>
    %160 = tpu.transpose %159, [1, 0] : vector<16x8xf32> -> vector<8x16xf32>
    %cst_95 = arith.constant dense<0.000000e+00> : vector<16x16xf32>
    %161 = tpu.matmul %139, %160, %cst_95 {dimension_numbers = #tpu.dot_dimension_numbers<[1], [0], [0], [1], [0, 0, 1, 1], [], []>} : vector<16x8xf32>, vector<8x16xf32>, vector<16x16xf32> -> vector<16x16xf32>
    %cst_96 = arith.constant dense<0xFF800000> : vector<16xf32>
    %162 = vector.multi_reduction <maximumf>, %161, %cst_96 [1] : vector<16x16xf32> to vector<16xf32>
    %163 = vector.shape_cast %162 : vector<16xf32> to vector<16x1xf32>
    %164 = vector.broadcast %163 : vector<16x1xf32> to vector<16x16xf32>
    %165 = arith.subf %161, %164 : vector<16x16xf32>
    %166 = math.exp %165 : vector<16x16xf32>
    %cst_97 = arith.constant dense<0.000000e+00> : vector<16xf32>
    %167 = vector.multi_reduction <add>, %166, %cst_97 [1] : vector<16x16xf32> to vector<16xf32>
    %168 = vector.shape_cast %167 : vector<16xf32> to vector<16x1xf32>
    %169 = tpu.reciprocal %168 {approx = true} : vector<16x1xf32> -> vector<16x1xf32>
    %170 = vector.broadcast %169 : vector<16x1xf32> to vector<16x16xf32>
    %171 = arith.mulf %166, %170 : vector<16x16xf32>
    %cst_98 = arith.constant dense<0.000000e+00> : vector<16x8xf32>
    %172 = tpu.matmul %171, %119, %cst_98 {dimension_numbers = #tpu.dot_dimension_numbers<[1], [0], [0], [1], [0, 0, 1, 1], [], []>} : vector<16x16xf32>, vector<16x8xf32>, vector<16x8xf32> -> vector<16x8xf32>
    %c0_99 = arith.constant 0 : index
    %c1_100 = arith.constant 1 : index
    %c0_101 = arith.constant 0 : index
    %c0_102 = arith.constant 0 : index
    %173 = vector.load %arg2[%c0_99, %c1_100, %c0_101, %c0_102] : memref<1x8x16x1xf32, #tpu.memory_space<vmem>>, vector<1x1x16x1xf32>
    %174 = vector.shape_cast %173 : vector<1x1x16x1xf32> to vector<16x1xf32>
    %175 = vector.broadcast %174 : vector<16x1xf32> to vector<16x8xf32>
    %176 = arith.mulf %172, %175 : vector<16x8xf32>
    %c1_103 = arith.constant 1 : index
    %c0_104 = arith.constant 0 : index
    %c0_105 = arith.constant 0 : index
    %177 = vector.load %arg9[%c1_103, %c0_104, %c0_105] : memref<8x8x64xf32, #tpu.memory_space<vmem>>, vector<1x8x64xf32>
    %178 = vector.shape_cast %177 : vector<1x8x64xf32> to vector<8x64xf32>
    %cst_106 = arith.constant dense<0.000000e+00> : vector<16x64xf32>
    %179 = tpu.matmul %176, %178, %cst_106 {dimension_numbers = #tpu.dot_dimension_numbers<[1], [0], [0], [1], [0, 0, 1, 1], [], []>} : vector<16x8xf32>, vector<8x64xf32>, vector<16x64xf32> -> vector<16x64xf32>
    %180 = arith.addf %98, %179 : vector<16x64xf32>
    %c0_107 = arith.constant 0 : index
    %c2_108 = arith.constant 2 : index
    %c0_109 = arith.constant 0 : index
    %c0_110 = arith.constant 0 : index
    %181 = vector.load %arg3[%c0_107, %c2_108, %c0_109, %c0_110] : memref<3x8x64x8xf32, #tpu.memory_space<vmem>>, vector<1x1x64x8xf32>
    %182 = vector.shape_cast %181 : vector<1x1x64x8xf32> to vector<64x8xf32>
    %c1_111 = arith.constant 1 : index
    %c2_112 = arith.constant 2 : index
    %c0_113 = arith.constant 0 : index
    %c0_114 = arith.constant 0 : index
    %183 = vector.load %arg3[%c1_111, %c2_112, %c0_113, %c0_114] : memref<3x8x64x8xf32, #tpu.memory_space<vmem>>, vector<1x1x64x8xf32>
    %184 = vector.shape_cast %183 : vector<1x1x64x8xf32> to vector<64x8xf32>
    %c2_115 = arith.constant 2 : index
    %c2_116 = arith.constant 2 : index
    %c0_117 = arith.constant 0 : index
    %c0_118 = arith.constant 0 : index
    %185 = vector.load %arg3[%c2_115, %c2_116, %c0_117, %c0_118] : memref<3x8x64x8xf32, #tpu.memory_space<vmem>>, vector<1x1x64x8xf32>
    %186 = vector.shape_cast %185 : vector<1x1x64x8xf32> to vector<64x8xf32>
    %cst_119 = arith.constant dense<0.000000e+00> : vector<16x8xf32>
    %187 = tpu.matmul %1, %182, %cst_119 {dimension_numbers = #tpu.dot_dimension_numbers<[1], [0], [0], [1], [0, 0, 1, 1], [], []>} : vector<16x64xf32>, vector<64x8xf32>, vector<16x8xf32> -> vector<16x8xf32>
    %c0_120 = arith.constant 0 : index
    %c2_121 = arith.constant 2 : index
    %c0_122 = arith.constant 0 : index
    %c0_123 = arith.constant 0 : index
    %188 = vector.load %arg4[%c0_120, %c2_121, %c0_122, %c0_123] : memref<3x8x1x8xf32, #tpu.memory_space<vmem>>, vector<1x1x1x8xf32>
    %189 = vector.shape_cast %188 : vector<1x1x1x8xf32> to vector<1x8xf32>
    %190 = vector.broadcast %189 : vector<1x8xf32> to vector<16x8xf32>
    %191 = arith.addf %187, %190 : vector<16x8xf32>
    %cst_124 = arith.constant dense<0.000000e+00> : vector<16x8xf32>
    %192 = tpu.matmul %1, %184, %cst_124 {dimension_numbers = #tpu.dot_dimension_numbers<[1], [0], [0], [1], [0, 0, 1, 1], [], []>} : vector<16x64xf32>, vector<64x8xf32>, vector<16x8xf32> -> vector<16x8xf32>
    %c1_125 = arith.constant 1 : index
    %c2_126 = arith.constant 2 : index
    %c0_127 = arith.constant 0 : index
    %c0_128 = arith.constant 0 : index
    %193 = vector.load %arg4[%c1_125, %c2_126, %c0_127, %c0_128] : memref<3x8x1x8xf32, #tpu.memory_space<vmem>>, vector<1x1x1x8xf32>
    %194 = vector.shape_cast %193 : vector<1x1x1x8xf32> to vector<1x8xf32>
    %195 = vector.broadcast %194 : vector<1x8xf32> to vector<16x8xf32>
    %196 = arith.addf %192, %195 : vector<16x8xf32>
    %cst_129 = arith.constant dense<0.000000e+00> : vector<16x8xf32>
    %197 = tpu.matmul %1, %186, %cst_129 {dimension_numbers = #tpu.dot_dimension_numbers<[1], [0], [0], [1], [0, 0, 1, 1], [], []>} : vector<16x64xf32>, vector<64x8xf32>, vector<16x8xf32> -> vector<16x8xf32>
    %c2_130 = arith.constant 2 : index
    %c2_131 = arith.constant 2 : index
    %c0_132 = arith.constant 0 : index
    %c0_133 = arith.constant 0 : index
    %198 = vector.load %arg4[%c2_130, %c2_131, %c0_132, %c0_133] : memref<3x8x1x8xf32, #tpu.memory_space<vmem>>, vector<1x1x1x8xf32>
    %199 = vector.shape_cast %198 : vector<1x1x1x8xf32> to vector<1x8xf32>
    %200 = vector.broadcast %199 : vector<1x8xf32> to vector<16x8xf32>
    %201 = arith.addf %197, %200 : vector<16x8xf32>
    %cst_134 = arith.constant dense<0.000000e+00> : vector<16xf32>
    %202 = vector.multi_reduction <add>, %191, %cst_134 [1] : vector<16x8xf32> to vector<16xf32>
    %203 = vector.shape_cast %202 : vector<16xf32> to vector<16x1xf32>
    %cst_135 = arith.constant 8.000000e+00 : f32
    %204 = vector.broadcast %cst_135 : f32 to vector<16x1xf32>
    %205 = arith.divf %203, %204 : vector<16x1xf32>
    %206 = vector.broadcast %205 : vector<16x1xf32> to vector<16x8xf32>
    %207 = arith.subf %191, %206 : vector<16x8xf32>
    %208 = arith.mulf %207, %207 : vector<16x8xf32>
    %cst_136 = arith.constant dense<0.000000e+00> : vector<16xf32>
    %209 = vector.multi_reduction <add>, %208, %cst_136 [1] : vector<16x8xf32> to vector<16xf32>
    %210 = vector.shape_cast %209 : vector<16xf32> to vector<16x1xf32>
    %cst_137 = arith.constant 8.000000e+00 : f32
    %211 = vector.broadcast %cst_137 : f32 to vector<16x1xf32>
    %212 = arith.divf %210, %211 : vector<16x1xf32>
    %213 = vector.broadcast %205 : vector<16x1xf32> to vector<16x8xf32>
    %214 = arith.subf %191, %213 : vector<16x8xf32>
    %cst_138 = arith.constant 9.99999974E-6 : f32
    %215 = vector.broadcast %cst_138 : f32 to vector<16x1xf32>
    %216 = arith.addf %212, %215 : vector<16x1xf32>
    %217 = math.rsqrt %216 : vector<16x1xf32>
    %218 = vector.broadcast %217 : vector<16x1xf32> to vector<16x8xf32>
    %219 = arith.mulf %214, %218 : vector<16x8xf32>
    %220 = arith.mulf %219, %4 : vector<16x8xf32>
    %221 = arith.addf %220, %7 : vector<16x8xf32>
    %cst_139 = arith.constant dense<0.000000e+00> : vector<16xf32>
    %222 = vector.multi_reduction <add>, %196, %cst_139 [1] : vector<16x8xf32> to vector<16xf32>
    %223 = vector.shape_cast %222 : vector<16xf32> to vector<16x1xf32>
    %cst_140 = arith.constant 8.000000e+00 : f32
    %224 = vector.broadcast %cst_140 : f32 to vector<16x1xf32>
    %225 = arith.divf %223, %224 : vector<16x1xf32>
    %226 = vector.broadcast %225 : vector<16x1xf32> to vector<16x8xf32>
    %227 = arith.subf %196, %226 : vector<16x8xf32>
    %228 = arith.mulf %227, %227 : vector<16x8xf32>
    %cst_141 = arith.constant dense<0.000000e+00> : vector<16xf32>
    %229 = vector.multi_reduction <add>, %228, %cst_141 [1] : vector<16x8xf32> to vector<16xf32>
    %230 = vector.shape_cast %229 : vector<16xf32> to vector<16x1xf32>
    %cst_142 = arith.constant 8.000000e+00 : f32
    %231 = vector.broadcast %cst_142 : f32 to vector<16x1xf32>
    %232 = arith.divf %230, %231 : vector<16x1xf32>
    %233 = vector.broadcast %225 : vector<16x1xf32> to vector<16x8xf32>
    %234 = arith.subf %196, %233 : vector<16x8xf32>
    %cst_143 = arith.constant 9.99999974E-6 : f32
    %235 = vector.broadcast %cst_143 : f32 to vector<16x1xf32>
    %236 = arith.addf %232, %235 : vector<16x1xf32>
    %237 = math.rsqrt %236 : vector<16x1xf32>
    %238 = vector.broadcast %237 : vector<16x1xf32> to vector<16x8xf32>
    %239 = arith.mulf %234, %238 : vector<16x8xf32>
    %240 = arith.mulf %239, %10 : vector<16x8xf32>
    %241 = arith.addf %240, %13 : vector<16x8xf32>
    %242 = tpu.transpose %241, [1, 0] : vector<16x8xf32> -> vector<8x16xf32>
    %cst_144 = arith.constant dense<0.000000e+00> : vector<16x16xf32>
    %243 = tpu.matmul %221, %242, %cst_144 {dimension_numbers = #tpu.dot_dimension_numbers<[1], [0], [0], [1], [0, 0, 1, 1], [], []>} : vector<16x8xf32>, vector<8x16xf32>, vector<16x16xf32> -> vector<16x16xf32>
    %cst_145 = arith.constant dense<0xFF800000> : vector<16xf32>
    %244 = vector.multi_reduction <maximumf>, %243, %cst_145 [1] : vector<16x16xf32> to vector<16xf32>
    %245 = vector.shape_cast %244 : vector<16xf32> to vector<16x1xf32>
    %246 = vector.broadcast %245 : vector<16x1xf32> to vector<16x16xf32>
    %247 = arith.subf %243, %246 : vector<16x16xf32>
    %248 = math.exp %247 : vector<16x16xf32>
    %cst_146 = arith.constant dense<0.000000e+00> : vector<16xf32>
    %249 = vector.multi_reduction <add>, %248, %cst_146 [1] : vector<16x16xf32> to vector<16xf32>
    %250 = vector.shape_cast %249 : vector<16xf32> to vector<16x1xf32>
    %251 = tpu.reciprocal %250 {approx = true} : vector<16x1xf32> -> vector<16x1xf32>
    %252 = vector.broadcast %251 : vector<16x1xf32> to vector<16x16xf32>
    %253 = arith.mulf %248, %252 : vector<16x16xf32>
    %cst_147 = arith.constant dense<0.000000e+00> : vector<16x8xf32>
    %254 = tpu.matmul %253, %201, %cst_147 {dimension_numbers = #tpu.dot_dimension_numbers<[1], [0], [0], [1], [0, 0, 1, 1], [], []>} : vector<16x16xf32>, vector<16x8xf32>, vector<16x8xf32> -> vector<16x8xf32>
    %c0_148 = arith.constant 0 : index
    %c2_149 = arith.constant 2 : index
    %c0_150 = arith.constant 0 : index
    %c0_151 = arith.constant 0 : index
    %255 = vector.load %arg2[%c0_148, %c2_149, %c0_150, %c0_151] : memref<1x8x16x1xf32, #tpu.memory_space<vmem>>, vector<1x1x16x1xf32>
    %256 = vector.shape_cast %255 : vector<1x1x16x1xf32> to vector<16x1xf32>
    %257 = vector.broadcast %256 : vector<16x1xf32> to vector<16x8xf32>
    %258 = arith.mulf %254, %257 : vector<16x8xf32>
    %c2_152 = arith.constant 2 : index
    %c0_153 = arith.constant 0 : index
    %c0_154 = arith.constant 0 : index
    %259 = vector.load %arg9[%c2_152, %c0_153, %c0_154] : memref<8x8x64xf32, #tpu.memory_space<vmem>>, vector<1x8x64xf32>
    %260 = vector.shape_cast %259 : vector<1x8x64xf32> to vector<8x64xf32>
    %cst_155 = arith.constant dense<0.000000e+00> : vector<16x64xf32>
    %261 = tpu.matmul %258, %260, %cst_155 {dimension_numbers = #tpu.dot_dimension_numbers<[1], [0], [0], [1], [0, 0, 1, 1], [], []>} : vector<16x8xf32>, vector<8x64xf32>, vector<16x64xf32> -> vector<16x64xf32>
    %262 = arith.addf %180, %261 : vector<16x64xf32>
    %c0_156 = arith.constant 0 : index
    %c3 = arith.constant 3 : index
    %c0_157 = arith.constant 0 : index
    %c0_158 = arith.constant 0 : index
    %263 = vector.load %arg3[%c0_156, %c3, %c0_157, %c0_158] : memref<3x8x64x8xf32, #tpu.memory_space<vmem>>, vector<1x1x64x8xf32>
    %264 = vector.shape_cast %263 : vector<1x1x64x8xf32> to vector<64x8xf32>
    %c1_159 = arith.constant 1 : index
    %c3_160 = arith.constant 3 : index
    %c0_161 = arith.constant 0 : index
    %c0_162 = arith.constant 0 : index
    %265 = vector.load %arg3[%c1_159, %c3_160, %c0_161, %c0_162] : memref<3x8x64x8xf32, #tpu.memory_space<vmem>>, vector<1x1x64x8xf32>
    %266 = vector.shape_cast %265 : vector<1x1x64x8xf32> to vector<64x8xf32>
    %c2_163 = arith.constant 2 : index
    %c3_164 = arith.constant 3 : index
    %c0_165 = arith.constant 0 : index
    %c0_166 = arith.constant 0 : index
    %267 = vector.load %arg3[%c2_163, %c3_164, %c0_165, %c0_166] : memref<3x8x64x8xf32, #tpu.memory_space<vmem>>, vector<1x1x64x8xf32>
    %268 = vector.shape_cast %267 : vector<1x1x64x8xf32> to vector<64x8xf32>
    %cst_167 = arith.constant dense<0.000000e+00> : vector<16x8xf32>
    %269 = tpu.matmul %1, %264, %cst_167 {dimension_numbers = #tpu.dot_dimension_numbers<[1], [0], [0], [1], [0, 0, 1, 1], [], []>} : vector<16x64xf32>, vector<64x8xf32>, vector<16x8xf32> -> vector<16x8xf32>
    %c0_168 = arith.constant 0 : index
    %c3_169 = arith.constant 3 : index
    %c0_170 = arith.constant 0 : index
    %c0_171 = arith.constant 0 : index
    %270 = vector.load %arg4[%c0_168, %c3_169, %c0_170, %c0_171] : memref<3x8x1x8xf32, #tpu.memory_space<vmem>>, vector<1x1x1x8xf32>
    %271 = vector.shape_cast %270 : vector<1x1x1x8xf32> to vector<1x8xf32>
    %272 = vector.broadcast %271 : vector<1x8xf32> to vector<16x8xf32>
    %273 = arith.addf %269, %272 : vector<16x8xf32>
    %cst_172 = arith.constant dense<0.000000e+00> : vector<16x8xf32>
    %274 = tpu.matmul %1, %266, %cst_172 {dimension_numbers = #tpu.dot_dimension_numbers<[1], [0], [0], [1], [0, 0, 1, 1], [], []>} : vector<16x64xf32>, vector<64x8xf32>, vector<16x8xf32> -> vector<16x8xf32>
    %c1_173 = arith.constant 1 : index
    %c3_174 = arith.constant 3 : index
    %c0_175 = arith.constant 0 : index
    %c0_176 = arith.constant 0 : index
    %275 = vector.load %arg4[%c1_173, %c3_174, %c0_175, %c0_176] : memref<3x8x1x8xf32, #tpu.memory_space<vmem>>, vector<1x1x1x8xf32>
    %276 = vector.shape_cast %275 : vector<1x1x1x8xf32> to vector<1x8xf32>
    %277 = vector.broadcast %276 : vector<1x8xf32> to vector<16x8xf32>
    %278 = arith.addf %274, %277 : vector<16x8xf32>
    %cst_177 = arith.constant dense<0.000000e+00> : vector<16x8xf32>
    %279 = tpu.matmul %1, %268, %cst_177 {dimension_numbers = #tpu.dot_dimension_numbers<[1], [0], [0], [1], [0, 0, 1, 1], [], []>} : vector<16x64xf32>, vector<64x8xf32>, vector<16x8xf32> -> vector<16x8xf32>
    %c2_178 = arith.constant 2 : index
    %c3_179 = arith.constant 3 : index
    %c0_180 = arith.constant 0 : index
    %c0_181 = arith.constant 0 : index
    %280 = vector.load %arg4[%c2_178, %c3_179, %c0_180, %c0_181] : memref<3x8x1x8xf32, #tpu.memory_space<vmem>>, vector<1x1x1x8xf32>
    %281 = vector.shape_cast %280 : vector<1x1x1x8xf32> to vector<1x8xf32>
    %282 = vector.broadcast %281 : vector<1x8xf32> to vector<16x8xf32>
    %283 = arith.addf %279, %282 : vector<16x8xf32>
    %cst_182 = arith.constant dense<0.000000e+00> : vector<16xf32>
    %284 = vector.multi_reduction <add>, %273, %cst_182 [1] : vector<16x8xf32> to vector<16xf32>
    %285 = vector.shape_cast %284 : vector<16xf32> to vector<16x1xf32>
    %cst_183 = arith.constant 8.000000e+00 : f32
    %286 = vector.broadcast %cst_183 : f32 to vector<16x1xf32>
    %287 = arith.divf %285, %286 : vector<16x1xf32>
    %288 = vector.broadcast %287 : vector<16x1xf32> to vector<16x8xf32>
    %289 = arith.subf %273, %288 : vector<16x8xf32>
    %290 = arith.mulf %289, %289 : vector<16x8xf32>
    %cst_184 = arith.constant dense<0.000000e+00> : vector<16xf32>
    %291 = vector.multi_reduction <add>, %290, %cst_184 [1] : vector<16x8xf32> to vector<16xf32>
    %292 = vector.shape_cast %291 : vector<16xf32> to vector<16x1xf32>
    %cst_185 = arith.constant 8.000000e+00 : f32
    %293 = vector.broadcast %cst_185 : f32 to vector<16x1xf32>
    %294 = arith.divf %292, %293 : vector<16x1xf32>
    %295 = vector.broadcast %287 : vector<16x1xf32> to vector<16x8xf32>
    %296 = arith.subf %273, %295 : vector<16x8xf32>
    %cst_186 = arith.constant 9.99999974E-6 : f32
    %297 = vector.broadcast %cst_186 : f32 to vector<16x1xf32>
    %298 = arith.addf %294, %297 : vector<16x1xf32>
    %299 = math.rsqrt %298 : vector<16x1xf32>
    %300 = vector.broadcast %299 : vector<16x1xf32> to vector<16x8xf32>
    %301 = arith.mulf %296, %300 : vector<16x8xf32>
    %302 = arith.mulf %301, %4 : vector<16x8xf32>
    %303 = arith.addf %302, %7 : vector<16x8xf32>
    %cst_187 = arith.constant dense<0.000000e+00> : vector<16xf32>
    %304 = vector.multi_reduction <add>, %278, %cst_187 [1] : vector<16x8xf32> to vector<16xf32>
    %305 = vector.shape_cast %304 : vector<16xf32> to vector<16x1xf32>
    %cst_188 = arith.constant 8.000000e+00 : f32
    %306 = vector.broadcast %cst_188 : f32 to vector<16x1xf32>
    %307 = arith.divf %305, %306 : vector<16x1xf32>
    %308 = vector.broadcast %307 : vector<16x1xf32> to vector<16x8xf32>
    %309 = arith.subf %278, %308 : vector<16x8xf32>
    %310 = arith.mulf %309, %309 : vector<16x8xf32>
    %cst_189 = arith.constant dense<0.000000e+00> : vector<16xf32>
    %311 = vector.multi_reduction <add>, %310, %cst_189 [1] : vector<16x8xf32> to vector<16xf32>
    %312 = vector.shape_cast %311 : vector<16xf32> to vector<16x1xf32>
    %cst_190 = arith.constant 8.000000e+00 : f32
    %313 = vector.broadcast %cst_190 : f32 to vector<16x1xf32>
    %314 = arith.divf %312, %313 : vector<16x1xf32>
    %315 = vector.broadcast %307 : vector<16x1xf32> to vector<16x8xf32>
    %316 = arith.subf %278, %315 : vector<16x8xf32>
    %cst_191 = arith.constant 9.99999974E-6 : f32
    %317 = vector.broadcast %cst_191 : f32 to vector<16x1xf32>
    %318 = arith.addf %314, %317 : vector<16x1xf32>
    %319 = math.rsqrt %318 : vector<16x1xf32>
    %320 = vector.broadcast %319 : vector<16x1xf32> to vector<16x8xf32>
    %321 = arith.mulf %316, %320 : vector<16x8xf32>
    %322 = arith.mulf %321, %10 : vector<16x8xf32>
    %323 = arith.addf %322, %13 : vector<16x8xf32>
    %324 = tpu.transpose %323, [1, 0] : vector<16x8xf32> -> vector<8x16xf32>
    %cst_192 = arith.constant dense<0.000000e+00> : vector<16x16xf32>
    %325 = tpu.matmul %303, %324, %cst_192 {dimension_numbers = #tpu.dot_dimension_numbers<[1], [0], [0], [1], [0, 0, 1, 1], [], []>} : vector<16x8xf32>, vector<8x16xf32>, vector<16x16xf32> -> vector<16x16xf32>
    %cst_193 = arith.constant dense<0xFF800000> : vector<16xf32>
    %326 = vector.multi_reduction <maximumf>, %325, %cst_193 [1] : vector<16x16xf32> to vector<16xf32>
    %327 = vector.shape_cast %326 : vector<16xf32> to vector<16x1xf32>
    %328 = vector.broadcast %327 : vector<16x1xf32> to vector<16x16xf32>
    %329 = arith.subf %325, %328 : vector<16x16xf32>
    %330 = math.exp %329 : vector<16x16xf32>
    %cst_194 = arith.constant dense<0.000000e+00> : vector<16xf32>
    %331 = vector.multi_reduction <add>, %330, %cst_194 [1] : vector<16x16xf32> to vector<16xf32>
    %332 = vector.shape_cast %331 : vector<16xf32> to vector<16x1xf32>
    %333 = tpu.reciprocal %332 {approx = true} : vector<16x1xf32> -> vector<16x1xf32>
    %334 = vector.broadcast %333 : vector<16x1xf32> to vector<16x16xf32>
    %335 = arith.mulf %330, %334 : vector<16x16xf32>
    %cst_195 = arith.constant dense<0.000000e+00> : vector<16x8xf32>
    %336 = tpu.matmul %335, %283, %cst_195 {dimension_numbers = #tpu.dot_dimension_numbers<[1], [0], [0], [1], [0, 0, 1, 1], [], []>} : vector<16x16xf32>, vector<16x8xf32>, vector<16x8xf32> -> vector<16x8xf32>
    %c0_196 = arith.constant 0 : index
    %c3_197 = arith.constant 3 : index
    %c0_198 = arith.constant 0 : index
    %c0_199 = arith.constant 0 : index
    %337 = vector.load %arg2[%c0_196, %c3_197, %c0_198, %c0_199] : memref<1x8x16x1xf32, #tpu.memory_space<vmem>>, vector<1x1x16x1xf32>
    %338 = vector.shape_cast %337 : vector<1x1x16x1xf32> to vector<16x1xf32>
    %339 = vector.broadcast %338 : vector<16x1xf32> to vector<16x8xf32>
    %340 = arith.mulf %336, %339 : vector<16x8xf32>
    %c3_200 = arith.constant 3 : index
    %c0_201 = arith.constant 0 : index
    %c0_202 = arith.constant 0 : index
    %341 = vector.load %arg9[%c3_200, %c0_201, %c0_202] : memref<8x8x64xf32, #tpu.memory_space<vmem>>, vector<1x8x64xf32>
    %342 = vector.shape_cast %341 : vector<1x8x64xf32> to vector<8x64xf32>
    %cst_203 = arith.constant dense<0.000000e+00> : vector<16x64xf32>
    %343 = tpu.matmul %340, %342, %cst_203 {dimension_numbers = #tpu.dot_dimension_numbers<[1], [0], [0], [1], [0, 0, 1, 1], [], []>} : vector<16x8xf32>, vector<8x64xf32>, vector<16x64xf32> -> vector<16x64xf32>
    %344 = arith.addf %262, %343 : vector<16x64xf32>
    %c0_204 = arith.constant 0 : index
    %c4 = arith.constant 4 : index
    %c0_205 = arith.constant 0 : index
    %c0_206 = arith.constant 0 : index
    %345 = vector.load %arg3[%c0_204, %c4, %c0_205, %c0_206] : memref<3x8x64x8xf32, #tpu.memory_space<vmem>>, vector<1x1x64x8xf32>
    %346 = vector.shape_cast %345 : vector<1x1x64x8xf32> to vector<64x8xf32>
    %c1_207 = arith.constant 1 : index
    %c4_208 = arith.constant 4 : index
    %c0_209 = arith.constant 0 : index
    %c0_210 = arith.constant 0 : index
    %347 = vector.load %arg3[%c1_207, %c4_208, %c0_209, %c0_210] : memref<3x8x64x8xf32, #tpu.memory_space<vmem>>, vector<1x1x64x8xf32>
    %348 = vector.shape_cast %347 : vector<1x1x64x8xf32> to vector<64x8xf32>
    %c2_211 = arith.constant 2 : index
    %c4_212 = arith.constant 4 : index
    %c0_213 = arith.constant 0 : index
    %c0_214 = arith.constant 0 : index
    %349 = vector.load %arg3[%c2_211, %c4_212, %c0_213, %c0_214] : memref<3x8x64x8xf32, #tpu.memory_space<vmem>>, vector<1x1x64x8xf32>
    %350 = vector.shape_cast %349 : vector<1x1x64x8xf32> to vector<64x8xf32>
    %cst_215 = arith.constant dense<0.000000e+00> : vector<16x8xf32>
    %351 = tpu.matmul %1, %346, %cst_215 {dimension_numbers = #tpu.dot_dimension_numbers<[1], [0], [0], [1], [0, 0, 1, 1], [], []>} : vector<16x64xf32>, vector<64x8xf32>, vector<16x8xf32> -> vector<16x8xf32>
    %c0_216 = arith.constant 0 : index
    %c4_217 = arith.constant 4 : index
    %c0_218 = arith.constant 0 : index
    %c0_219 = arith.constant 0 : index
    %352 = vector.load %arg4[%c0_216, %c4_217, %c0_218, %c0_219] : memref<3x8x1x8xf32, #tpu.memory_space<vmem>>, vector<1x1x1x8xf32>
    %353 = vector.shape_cast %352 : vector<1x1x1x8xf32> to vector<1x8xf32>
    %354 = vector.broadcast %353 : vector<1x8xf32> to vector<16x8xf32>
    %355 = arith.addf %351, %354 : vector<16x8xf32>
    %cst_220 = arith.constant dense<0.000000e+00> : vector<16x8xf32>
    %356 = tpu.matmul %1, %348, %cst_220 {dimension_numbers = #tpu.dot_dimension_numbers<[1], [0], [0], [1], [0, 0, 1, 1], [], []>} : vector<16x64xf32>, vector<64x8xf32>, vector<16x8xf32> -> vector<16x8xf32>
    %c1_221 = arith.constant 1 : index
    %c4_222 = arith.constant 4 : index
    %c0_223 = arith.constant 0 : index
    %c0_224 = arith.constant 0 : index
    %357 = vector.load %arg4[%c1_221, %c4_222, %c0_223, %c0_224] : memref<3x8x1x8xf32, #tpu.memory_space<vmem>>, vector<1x1x1x8xf32>
    %358 = vector.shape_cast %357 : vector<1x1x1x8xf32> to vector<1x8xf32>
    %359 = vector.broadcast %358 : vector<1x8xf32> to vector<16x8xf32>
    %360 = arith.addf %356, %359 : vector<16x8xf32>
    %cst_225 = arith.constant dense<0.000000e+00> : vector<16x8xf32>
    %361 = tpu.matmul %1, %350, %cst_225 {dimension_numbers = #tpu.dot_dimension_numbers<[1], [0], [0], [1], [0, 0, 1, 1], [], []>} : vector<16x64xf32>, vector<64x8xf32>, vector<16x8xf32> -> vector<16x8xf32>
    %c2_226 = arith.constant 2 : index
    %c4_227 = arith.constant 4 : index
    %c0_228 = arith.constant 0 : index
    %c0_229 = arith.constant 0 : index
    %362 = vector.load %arg4[%c2_226, %c4_227, %c0_228, %c0_229] : memref<3x8x1x8xf32, #tpu.memory_space<vmem>>, vector<1x1x1x8xf32>
    %363 = vector.shape_cast %362 : vector<1x1x1x8xf32> to vector<1x8xf32>
    %364 = vector.broadcast %363 : vector<1x8xf32> to vector<16x8xf32>
    %365 = arith.addf %361, %364 : vector<16x8xf32>
    %cst_230 = arith.constant dense<0.000000e+00> : vector<16xf32>
    %366 = vector.multi_reduction <add>, %355, %cst_230 [1] : vector<16x8xf32> to vector<16xf32>
    %367 = vector.shape_cast %366 : vector<16xf32> to vector<16x1xf32>
    %cst_231 = arith.constant 8.000000e+00 : f32
    %368 = vector.broadcast %cst_231 : f32 to vector<16x1xf32>
    %369 = arith.divf %367, %368 : vector<16x1xf32>
    %370 = vector.broadcast %369 : vector<16x1xf32> to vector<16x8xf32>
    %371 = arith.subf %355, %370 : vector<16x8xf32>
    %372 = arith.mulf %371, %371 : vector<16x8xf32>
    %cst_232 = arith.constant dense<0.000000e+00> : vector<16xf32>
    %373 = vector.multi_reduction <add>, %372, %cst_232 [1] : vector<16x8xf32> to vector<16xf32>
    %374 = vector.shape_cast %373 : vector<16xf32> to vector<16x1xf32>
    %cst_233 = arith.constant 8.000000e+00 : f32
    %375 = vector.broadcast %cst_233 : f32 to vector<16x1xf32>
    %376 = arith.divf %374, %375 : vector<16x1xf32>
    %377 = vector.broadcast %369 : vector<16x1xf32> to vector<16x8xf32>
    %378 = arith.subf %355, %377 : vector<16x8xf32>
    %cst_234 = arith.constant 9.99999974E-6 : f32
    %379 = vector.broadcast %cst_234 : f32 to vector<16x1xf32>
    %380 = arith.addf %376, %379 : vector<16x1xf32>
    %381 = math.rsqrt %380 : vector<16x1xf32>
    %382 = vector.broadcast %381 : vector<16x1xf32> to vector<16x8xf32>
    %383 = arith.mulf %378, %382 : vector<16x8xf32>
    %384 = arith.mulf %383, %4 : vector<16x8xf32>
    %385 = arith.addf %384, %7 : vector<16x8xf32>
    %cst_235 = arith.constant dense<0.000000e+00> : vector<16xf32>
    %386 = vector.multi_reduction <add>, %360, %cst_235 [1] : vector<16x8xf32> to vector<16xf32>
    %387 = vector.shape_cast %386 : vector<16xf32> to vector<16x1xf32>
    %cst_236 = arith.constant 8.000000e+00 : f32
    %388 = vector.broadcast %cst_236 : f32 to vector<16x1xf32>
    %389 = arith.divf %387, %388 : vector<16x1xf32>
    %390 = vector.broadcast %389 : vector<16x1xf32> to vector<16x8xf32>
    %391 = arith.subf %360, %390 : vector<16x8xf32>
    %392 = arith.mulf %391, %391 : vector<16x8xf32>
    %cst_237 = arith.constant dense<0.000000e+00> : vector<16xf32>
    %393 = vector.multi_reduction <add>, %392, %cst_237 [1] : vector<16x8xf32> to vector<16xf32>
    %394 = vector.shape_cast %393 : vector<16xf32> to vector<16x1xf32>
    %cst_238 = arith.constant 8.000000e+00 : f32
    %395 = vector.broadcast %cst_238 : f32 to vector<16x1xf32>
    %396 = arith.divf %394, %395 : vector<16x1xf32>
    %397 = vector.broadcast %389 : vector<16x1xf32> to vector<16x8xf32>
    %398 = arith.subf %360, %397 : vector<16x8xf32>
    %cst_239 = arith.constant 9.99999974E-6 : f32
    %399 = vector.broadcast %cst_239 : f32 to vector<16x1xf32>
    %400 = arith.addf %396, %399 : vector<16x1xf32>
    %401 = math.rsqrt %400 : vector<16x1xf32>
    %402 = vector.broadcast %401 : vector<16x1xf32> to vector<16x8xf32>
    %403 = arith.mulf %398, %402 : vector<16x8xf32>
    %404 = arith.mulf %403, %10 : vector<16x8xf32>
    %405 = arith.addf %404, %13 : vector<16x8xf32>
    %406 = tpu.transpose %405, [1, 0] : vector<16x8xf32> -> vector<8x16xf32>
    %cst_240 = arith.constant dense<0.000000e+00> : vector<16x16xf32>
    %407 = tpu.matmul %385, %406, %cst_240 {dimension_numbers = #tpu.dot_dimension_numbers<[1], [0], [0], [1], [0, 0, 1, 1], [], []>} : vector<16x8xf32>, vector<8x16xf32>, vector<16x16xf32> -> vector<16x16xf32>
    %cst_241 = arith.constant dense<0xFF800000> : vector<16xf32>
    %408 = vector.multi_reduction <maximumf>, %407, %cst_241 [1] : vector<16x16xf32> to vector<16xf32>
    %409 = vector.shape_cast %408 : vector<16xf32> to vector<16x1xf32>
    %410 = vector.broadcast %409 : vector<16x1xf32> to vector<16x16xf32>
    %411 = arith.subf %407, %410 : vector<16x16xf32>
    %412 = math.exp %411 : vector<16x16xf32>
    %cst_242 = arith.constant dense<0.000000e+00> : vector<16xf32>
    %413 = vector.multi_reduction <add>, %412, %cst_242 [1] : vector<16x16xf32> to vector<16xf32>
    %414 = vector.shape_cast %413 : vector<16xf32> to vector<16x1xf32>
    %415 = tpu.reciprocal %414 {approx = true} : vector<16x1xf32> -> vector<16x1xf32>
    %416 = vector.broadcast %415 : vector<16x1xf32> to vector<16x16xf32>
    %417 = arith.mulf %412, %416 : vector<16x16xf32>
    %cst_243 = arith.constant dense<0.000000e+00> : vector<16x8xf32>
    %418 = tpu.matmul %417, %365, %cst_243 {dimension_numbers = #tpu.dot_dimension_numbers<[1], [0], [0], [1], [0, 0, 1, 1], [], []>} : vector<16x16xf32>, vector<16x8xf32>, vector<16x8xf32> -> vector<16x8xf32>
    %c0_244 = arith.constant 0 : index
    %c4_245 = arith.constant 4 : index
    %c0_246 = arith.constant 0 : index
    %c0_247 = arith.constant 0 : index
    %419 = vector.load %arg2[%c0_244, %c4_245, %c0_246, %c0_247] : memref<1x8x16x1xf32, #tpu.memory_space<vmem>>, vector<1x1x16x1xf32>
    %420 = vector.shape_cast %419 : vector<1x1x16x1xf32> to vector<16x1xf32>
    %421 = vector.broadcast %420 : vector<16x1xf32> to vector<16x8xf32>
    %422 = arith.mulf %418, %421 : vector<16x8xf32>
    %c4_248 = arith.constant 4 : index
    %c0_249 = arith.constant 0 : index
    %c0_250 = arith.constant 0 : index
    %423 = vector.load %arg9[%c4_248, %c0_249, %c0_250] : memref<8x8x64xf32, #tpu.memory_space<vmem>>, vector<1x8x64xf32>
    %424 = vector.shape_cast %423 : vector<1x8x64xf32> to vector<8x64xf32>
    %cst_251 = arith.constant dense<0.000000e+00> : vector<16x64xf32>
    %425 = tpu.matmul %422, %424, %cst_251 {dimension_numbers = #tpu.dot_dimension_numbers<[1], [0], [0], [1], [0, 0, 1, 1], [], []>} : vector<16x8xf32>, vector<8x64xf32>, vector<16x64xf32> -> vector<16x64xf32>
    %426 = arith.addf %344, %425 : vector<16x64xf32>
    %c0_252 = arith.constant 0 : index
    %c5 = arith.constant 5 : index
    %c0_253 = arith.constant 0 : index
    %c0_254 = arith.constant 0 : index
    %427 = vector.load %arg3[%c0_252, %c5, %c0_253, %c0_254] : memref<3x8x64x8xf32, #tpu.memory_space<vmem>>, vector<1x1x64x8xf32>
    %428 = vector.shape_cast %427 : vector<1x1x64x8xf32> to vector<64x8xf32>
    %c1_255 = arith.constant 1 : index
    %c5_256 = arith.constant 5 : index
    %c0_257 = arith.constant 0 : index
    %c0_258 = arith.constant 0 : index
    %429 = vector.load %arg3[%c1_255, %c5_256, %c0_257, %c0_258] : memref<3x8x64x8xf32, #tpu.memory_space<vmem>>, vector<1x1x64x8xf32>
    %430 = vector.shape_cast %429 : vector<1x1x64x8xf32> to vector<64x8xf32>
    %c2_259 = arith.constant 2 : index
    %c5_260 = arith.constant 5 : index
    %c0_261 = arith.constant 0 : index
    %c0_262 = arith.constant 0 : index
    %431 = vector.load %arg3[%c2_259, %c5_260, %c0_261, %c0_262] : memref<3x8x64x8xf32, #tpu.memory_space<vmem>>, vector<1x1x64x8xf32>
    %432 = vector.shape_cast %431 : vector<1x1x64x8xf32> to vector<64x8xf32>
    %cst_263 = arith.constant dense<0.000000e+00> : vector<16x8xf32>
    %433 = tpu.matmul %1, %428, %cst_263 {dimension_numbers = #tpu.dot_dimension_numbers<[1], [0], [0], [1], [0, 0, 1, 1], [], []>} : vector<16x64xf32>, vector<64x8xf32>, vector<16x8xf32> -> vector<16x8xf32>
    %c0_264 = arith.constant 0 : index
    %c5_265 = arith.constant 5 : index
    %c0_266 = arith.constant 0 : index
    %c0_267 = arith.constant 0 : index
    %434 = vector.load %arg4[%c0_264, %c5_265, %c0_266, %c0_267] : memref<3x8x1x8xf32, #tpu.memory_space<vmem>>, vector<1x1x1x8xf32>
    %435 = vector.shape_cast %434 : vector<1x1x1x8xf32> to vector<1x8xf32>
    %436 = vector.broadcast %435 : vector<1x8xf32> to vector<16x8xf32>
    %437 = arith.addf %433, %436 : vector<16x8xf32>
    %cst_268 = arith.constant dense<0.000000e+00> : vector<16x8xf32>
    %438 = tpu.matmul %1, %430, %cst_268 {dimension_numbers = #tpu.dot_dimension_numbers<[1], [0], [0], [1], [0, 0, 1, 1], [], []>} : vector<16x64xf32>, vector<64x8xf32>, vector<16x8xf32> -> vector<16x8xf32>
    %c1_269 = arith.constant 1 : index
    %c5_270 = arith.constant 5 : index
    %c0_271 = arith.constant 0 : index
    %c0_272 = arith.constant 0 : index
    %439 = vector.load %arg4[%c1_269, %c5_270, %c0_271, %c0_272] : memref<3x8x1x8xf32, #tpu.memory_space<vmem>>, vector<1x1x1x8xf32>
    %440 = vector.shape_cast %439 : vector<1x1x1x8xf32> to vector<1x8xf32>
    %441 = vector.broadcast %440 : vector<1x8xf32> to vector<16x8xf32>
    %442 = arith.addf %438, %441 : vector<16x8xf32>
    %cst_273 = arith.constant dense<0.000000e+00> : vector<16x8xf32>
    %443 = tpu.matmul %1, %432, %cst_273 {dimension_numbers = #tpu.dot_dimension_numbers<[1], [0], [0], [1], [0, 0, 1, 1], [], []>} : vector<16x64xf32>, vector<64x8xf32>, vector<16x8xf32> -> vector<16x8xf32>
    %c2_274 = arith.constant 2 : index
    %c5_275 = arith.constant 5 : index
    %c0_276 = arith.constant 0 : index
    %c0_277 = arith.constant 0 : index
    %444 = vector.load %arg4[%c2_274, %c5_275, %c0_276, %c0_277] : memref<3x8x1x8xf32, #tpu.memory_space<vmem>>, vector<1x1x1x8xf32>
    %445 = vector.shape_cast %444 : vector<1x1x1x8xf32> to vector<1x8xf32>
    %446 = vector.broadcast %445 : vector<1x8xf32> to vector<16x8xf32>
    %447 = arith.addf %443, %446 : vector<16x8xf32>
    %cst_278 = arith.constant dense<0.000000e+00> : vector<16xf32>
    %448 = vector.multi_reduction <add>, %437, %cst_278 [1] : vector<16x8xf32> to vector<16xf32>
    %449 = vector.shape_cast %448 : vector<16xf32> to vector<16x1xf32>
    %cst_279 = arith.constant 8.000000e+00 : f32
    %450 = vector.broadcast %cst_279 : f32 to vector<16x1xf32>
    %451 = arith.divf %449, %450 : vector<16x1xf32>
    %452 = vector.broadcast %451 : vector<16x1xf32> to vector<16x8xf32>
    %453 = arith.subf %437, %452 : vector<16x8xf32>
    %454 = arith.mulf %453, %453 : vector<16x8xf32>
    %cst_280 = arith.constant dense<0.000000e+00> : vector<16xf32>
    %455 = vector.multi_reduction <add>, %454, %cst_280 [1] : vector<16x8xf32> to vector<16xf32>
    %456 = vector.shape_cast %455 : vector<16xf32> to vector<16x1xf32>
    %cst_281 = arith.constant 8.000000e+00 : f32
    %457 = vector.broadcast %cst_281 : f32 to vector<16x1xf32>
    %458 = arith.divf %456, %457 : vector<16x1xf32>
    %459 = vector.broadcast %451 : vector<16x1xf32> to vector<16x8xf32>
    %460 = arith.subf %437, %459 : vector<16x8xf32>
    %cst_282 = arith.constant 9.99999974E-6 : f32
    %461 = vector.broadcast %cst_282 : f32 to vector<16x1xf32>
    %462 = arith.addf %458, %461 : vector<16x1xf32>
    %463 = math.rsqrt %462 : vector<16x1xf32>
    %464 = vector.broadcast %463 : vector<16x1xf32> to vector<16x8xf32>
    %465 = arith.mulf %460, %464 : vector<16x8xf32>
    %466 = arith.mulf %465, %4 : vector<16x8xf32>
    %467 = arith.addf %466, %7 : vector<16x8xf32>
    %cst_283 = arith.constant dense<0.000000e+00> : vector<16xf32>
    %468 = vector.multi_reduction <add>, %442, %cst_283 [1] : vector<16x8xf32> to vector<16xf32>
    %469 = vector.shape_cast %468 : vector<16xf32> to vector<16x1xf32>
    %cst_284 = arith.constant 8.000000e+00 : f32
    %470 = vector.broadcast %cst_284 : f32 to vector<16x1xf32>
    %471 = arith.divf %469, %470 : vector<16x1xf32>
    %472 = vector.broadcast %471 : vector<16x1xf32> to vector<16x8xf32>
    %473 = arith.subf %442, %472 : vector<16x8xf32>
    %474 = arith.mulf %473, %473 : vector<16x8xf32>
    %cst_285 = arith.constant dense<0.000000e+00> : vector<16xf32>
    %475 = vector.multi_reduction <add>, %474, %cst_285 [1] : vector<16x8xf32> to vector<16xf32>
    %476 = vector.shape_cast %475 : vector<16xf32> to vector<16x1xf32>
    %cst_286 = arith.constant 8.000000e+00 : f32
    %477 = vector.broadcast %cst_286 : f32 to vector<16x1xf32>
    %478 = arith.divf %476, %477 : vector<16x1xf32>
    %479 = vector.broadcast %471 : vector<16x1xf32> to vector<16x8xf32>
    %480 = arith.subf %442, %479 : vector<16x8xf32>
    %cst_287 = arith.constant 9.99999974E-6 : f32
    %481 = vector.broadcast %cst_287 : f32 to vector<16x1xf32>
    %482 = arith.addf %478, %481 : vector<16x1xf32>
    %483 = math.rsqrt %482 : vector<16x1xf32>
    %484 = vector.broadcast %483 : vector<16x1xf32> to vector<16x8xf32>
    %485 = arith.mulf %480, %484 : vector<16x8xf32>
    %486 = arith.mulf %485, %10 : vector<16x8xf32>
    %487 = arith.addf %486, %13 : vector<16x8xf32>
    %488 = tpu.transpose %487, [1, 0] : vector<16x8xf32> -> vector<8x16xf32>
    %cst_288 = arith.constant dense<0.000000e+00> : vector<16x16xf32>
    %489 = tpu.matmul %467, %488, %cst_288 {dimension_numbers = #tpu.dot_dimension_numbers<[1], [0], [0], [1], [0, 0, 1, 1], [], []>} : vector<16x8xf32>, vector<8x16xf32>, vector<16x16xf32> -> vector<16x16xf32>
    %cst_289 = arith.constant dense<0xFF800000> : vector<16xf32>
    %490 = vector.multi_reduction <maximumf>, %489, %cst_289 [1] : vector<16x16xf32> to vector<16xf32>
    %491 = vector.shape_cast %490 : vector<16xf32> to vector<16x1xf32>
    %492 = vector.broadcast %491 : vector<16x1xf32> to vector<16x16xf32>
    %493 = arith.subf %489, %492 : vector<16x16xf32>
    %494 = math.exp %493 : vector<16x16xf32>
    %cst_290 = arith.constant dense<0.000000e+00> : vector<16xf32>
    %495 = vector.multi_reduction <add>, %494, %cst_290 [1] : vector<16x16xf32> to vector<16xf32>
    %496 = vector.shape_cast %495 : vector<16xf32> to vector<16x1xf32>
    %497 = tpu.reciprocal %496 {approx = true} : vector<16x1xf32> -> vector<16x1xf32>
    %498 = vector.broadcast %497 : vector<16x1xf32> to vector<16x16xf32>
    %499 = arith.mulf %494, %498 : vector<16x16xf32>
    %cst_291 = arith.constant dense<0.000000e+00> : vector<16x8xf32>
    %500 = tpu.matmul %499, %447, %cst_291 {dimension_numbers = #tpu.dot_dimension_numbers<[1], [0], [0], [1], [0, 0, 1, 1], [], []>} : vector<16x16xf32>, vector<16x8xf32>, vector<16x8xf32> -> vector<16x8xf32>
    %c0_292 = arith.constant 0 : index
    %c5_293 = arith.constant 5 : index
    %c0_294 = arith.constant 0 : index
    %c0_295 = arith.constant 0 : index
    %501 = vector.load %arg2[%c0_292, %c5_293, %c0_294, %c0_295] : memref<1x8x16x1xf32, #tpu.memory_space<vmem>>, vector<1x1x16x1xf32>
    %502 = vector.shape_cast %501 : vector<1x1x16x1xf32> to vector<16x1xf32>
    %503 = vector.broadcast %502 : vector<16x1xf32> to vector<16x8xf32>
    %504 = arith.mulf %500, %503 : vector<16x8xf32>
    %c5_296 = arith.constant 5 : index
    %c0_297 = arith.constant 0 : index
    %c0_298 = arith.constant 0 : index
    %505 = vector.load %arg9[%c5_296, %c0_297, %c0_298] : memref<8x8x64xf32, #tpu.memory_space<vmem>>, vector<1x8x64xf32>
    %506 = vector.shape_cast %505 : vector<1x8x64xf32> to vector<8x64xf32>
    %cst_299 = arith.constant dense<0.000000e+00> : vector<16x64xf32>
    %507 = tpu.matmul %504, %506, %cst_299 {dimension_numbers = #tpu.dot_dimension_numbers<[1], [0], [0], [1], [0, 0, 1, 1], [], []>} : vector<16x8xf32>, vector<8x64xf32>, vector<16x64xf32> -> vector<16x64xf32>
    %508 = arith.addf %426, %507 : vector<16x64xf32>
    %c0_300 = arith.constant 0 : index
    %c6 = arith.constant 6 : index
    %c0_301 = arith.constant 0 : index
    %c0_302 = arith.constant 0 : index
    %509 = vector.load %arg3[%c0_300, %c6, %c0_301, %c0_302] : memref<3x8x64x8xf32, #tpu.memory_space<vmem>>, vector<1x1x64x8xf32>
    %510 = vector.shape_cast %509 : vector<1x1x64x8xf32> to vector<64x8xf32>
    %c1_303 = arith.constant 1 : index
    %c6_304 = arith.constant 6 : index
    %c0_305 = arith.constant 0 : index
    %c0_306 = arith.constant 0 : index
    %511 = vector.load %arg3[%c1_303, %c6_304, %c0_305, %c0_306] : memref<3x8x64x8xf32, #tpu.memory_space<vmem>>, vector<1x1x64x8xf32>
    %512 = vector.shape_cast %511 : vector<1x1x64x8xf32> to vector<64x8xf32>
    %c2_307 = arith.constant 2 : index
    %c6_308 = arith.constant 6 : index
    %c0_309 = arith.constant 0 : index
    %c0_310 = arith.constant 0 : index
    %513 = vector.load %arg3[%c2_307, %c6_308, %c0_309, %c0_310] : memref<3x8x64x8xf32, #tpu.memory_space<vmem>>, vector<1x1x64x8xf32>
    %514 = vector.shape_cast %513 : vector<1x1x64x8xf32> to vector<64x8xf32>
    %cst_311 = arith.constant dense<0.000000e+00> : vector<16x8xf32>
    %515 = tpu.matmul %1, %510, %cst_311 {dimension_numbers = #tpu.dot_dimension_numbers<[1], [0], [0], [1], [0, 0, 1, 1], [], []>} : vector<16x64xf32>, vector<64x8xf32>, vector<16x8xf32> -> vector<16x8xf32>
    %c0_312 = arith.constant 0 : index
    %c6_313 = arith.constant 6 : index
    %c0_314 = arith.constant 0 : index
    %c0_315 = arith.constant 0 : index
    %516 = vector.load %arg4[%c0_312, %c6_313, %c0_314, %c0_315] : memref<3x8x1x8xf32, #tpu.memory_space<vmem>>, vector<1x1x1x8xf32>
    %517 = vector.shape_cast %516 : vector<1x1x1x8xf32> to vector<1x8xf32>
    %518 = vector.broadcast %517 : vector<1x8xf32> to vector<16x8xf32>
    %519 = arith.addf %515, %518 : vector<16x8xf32>
    %cst_316 = arith.constant dense<0.000000e+00> : vector<16x8xf32>
    %520 = tpu.matmul %1, %512, %cst_316 {dimension_numbers = #tpu.dot_dimension_numbers<[1], [0], [0], [1], [0, 0, 1, 1], [], []>} : vector<16x64xf32>, vector<64x8xf32>, vector<16x8xf32> -> vector<16x8xf32>
    %c1_317 = arith.constant 1 : index
    %c6_318 = arith.constant 6 : index
    %c0_319 = arith.constant 0 : index
    %c0_320 = arith.constant 0 : index
    %521 = vector.load %arg4[%c1_317, %c6_318, %c0_319, %c0_320] : memref<3x8x1x8xf32, #tpu.memory_space<vmem>>, vector<1x1x1x8xf32>
    %522 = vector.shape_cast %521 : vector<1x1x1x8xf32> to vector<1x8xf32>
    %523 = vector.broadcast %522 : vector<1x8xf32> to vector<16x8xf32>
    %524 = arith.addf %520, %523 : vector<16x8xf32>
    %cst_321 = arith.constant dense<0.000000e+00> : vector<16x8xf32>
    %525 = tpu.matmul %1, %514, %cst_321 {dimension_numbers = #tpu.dot_dimension_numbers<[1], [0], [0], [1], [0, 0, 1, 1], [], []>} : vector<16x64xf32>, vector<64x8xf32>, vector<16x8xf32> -> vector<16x8xf32>
    %c2_322 = arith.constant 2 : index
    %c6_323 = arith.constant 6 : index
    %c0_324 = arith.constant 0 : index
    %c0_325 = arith.constant 0 : index
    %526 = vector.load %arg4[%c2_322, %c6_323, %c0_324, %c0_325] : memref<3x8x1x8xf32, #tpu.memory_space<vmem>>, vector<1x1x1x8xf32>
    %527 = vector.shape_cast %526 : vector<1x1x1x8xf32> to vector<1x8xf32>
    %528 = vector.broadcast %527 : vector<1x8xf32> to vector<16x8xf32>
    %529 = arith.addf %525, %528 : vector<16x8xf32>
    %cst_326 = arith.constant dense<0.000000e+00> : vector<16xf32>
    %530 = vector.multi_reduction <add>, %519, %cst_326 [1] : vector<16x8xf32> to vector<16xf32>
    %531 = vector.shape_cast %530 : vector<16xf32> to vector<16x1xf32>
    %cst_327 = arith.constant 8.000000e+00 : f32
    %532 = vector.broadcast %cst_327 : f32 to vector<16x1xf32>
    %533 = arith.divf %531, %532 : vector<16x1xf32>
    %534 = vector.broadcast %533 : vector<16x1xf32> to vector<16x8xf32>
    %535 = arith.subf %519, %534 : vector<16x8xf32>
    %536 = arith.mulf %535, %535 : vector<16x8xf32>
    %cst_328 = arith.constant dense<0.000000e+00> : vector<16xf32>
    %537 = vector.multi_reduction <add>, %536, %cst_328 [1] : vector<16x8xf32> to vector<16xf32>
    %538 = vector.shape_cast %537 : vector<16xf32> to vector<16x1xf32>
    %cst_329 = arith.constant 8.000000e+00 : f32
    %539 = vector.broadcast %cst_329 : f32 to vector<16x1xf32>
    %540 = arith.divf %538, %539 : vector<16x1xf32>
    %541 = vector.broadcast %533 : vector<16x1xf32> to vector<16x8xf32>
    %542 = arith.subf %519, %541 : vector<16x8xf32>
    %cst_330 = arith.constant 9.99999974E-6 : f32
    %543 = vector.broadcast %cst_330 : f32 to vector<16x1xf32>
    %544 = arith.addf %540, %543 : vector<16x1xf32>
    %545 = math.rsqrt %544 : vector<16x1xf32>
    %546 = vector.broadcast %545 : vector<16x1xf32> to vector<16x8xf32>
    %547 = arith.mulf %542, %546 : vector<16x8xf32>
    %548 = arith.mulf %547, %4 : vector<16x8xf32>
    %549 = arith.addf %548, %7 : vector<16x8xf32>
    %cst_331 = arith.constant dense<0.000000e+00> : vector<16xf32>
    %550 = vector.multi_reduction <add>, %524, %cst_331 [1] : vector<16x8xf32> to vector<16xf32>
    %551 = vector.shape_cast %550 : vector<16xf32> to vector<16x1xf32>
    %cst_332 = arith.constant 8.000000e+00 : f32
    %552 = vector.broadcast %cst_332 : f32 to vector<16x1xf32>
    %553 = arith.divf %551, %552 : vector<16x1xf32>
    %554 = vector.broadcast %553 : vector<16x1xf32> to vector<16x8xf32>
    %555 = arith.subf %524, %554 : vector<16x8xf32>
    %556 = arith.mulf %555, %555 : vector<16x8xf32>
    %cst_333 = arith.constant dense<0.000000e+00> : vector<16xf32>
    %557 = vector.multi_reduction <add>, %556, %cst_333 [1] : vector<16x8xf32> to vector<16xf32>
    %558 = vector.shape_cast %557 : vector<16xf32> to vector<16x1xf32>
    %cst_334 = arith.constant 8.000000e+00 : f32
    %559 = vector.broadcast %cst_334 : f32 to vector<16x1xf32>
    %560 = arith.divf %558, %559 : vector<16x1xf32>
    %561 = vector.broadcast %553 : vector<16x1xf32> to vector<16x8xf32>
    %562 = arith.subf %524, %561 : vector<16x8xf32>
    %cst_335 = arith.constant 9.99999974E-6 : f32
    %563 = vector.broadcast %cst_335 : f32 to vector<16x1xf32>
    %564 = arith.addf %560, %563 : vector<16x1xf32>
    %565 = math.rsqrt %564 : vector<16x1xf32>
    %566 = vector.broadcast %565 : vector<16x1xf32> to vector<16x8xf32>
    %567 = arith.mulf %562, %566 : vector<16x8xf32>
    %568 = arith.mulf %567, %10 : vector<16x8xf32>
    %569 = arith.addf %568, %13 : vector<16x8xf32>
    %570 = tpu.transpose %569, [1, 0] : vector<16x8xf32> -> vector<8x16xf32>
    %cst_336 = arith.constant dense<0.000000e+00> : vector<16x16xf32>
    %571 = tpu.matmul %549, %570, %cst_336 {dimension_numbers = #tpu.dot_dimension_numbers<[1], [0], [0], [1], [0, 0, 1, 1], [], []>} : vector<16x8xf32>, vector<8x16xf32>, vector<16x16xf32> -> vector<16x16xf32>
    %cst_337 = arith.constant dense<0xFF800000> : vector<16xf32>
    %572 = vector.multi_reduction <maximumf>, %571, %cst_337 [1] : vector<16x16xf32> to vector<16xf32>
    %573 = vector.shape_cast %572 : vector<16xf32> to vector<16x1xf32>
    %574 = vector.broadcast %573 : vector<16x1xf32> to vector<16x16xf32>
    %575 = arith.subf %571, %574 : vector<16x16xf32>
    %576 = math.exp %575 : vector<16x16xf32>
    %cst_338 = arith.constant dense<0.000000e+00> : vector<16xf32>
    %577 = vector.multi_reduction <add>, %576, %cst_338 [1] : vector<16x16xf32> to vector<16xf32>
    %578 = vector.shape_cast %577 : vector<16xf32> to vector<16x1xf32>
    %579 = tpu.reciprocal %578 {approx = true} : vector<16x1xf32> -> vector<16x1xf32>
    %580 = vector.broadcast %579 : vector<16x1xf32> to vector<16x16xf32>
    %581 = arith.mulf %576, %580 : vector<16x16xf32>
    %cst_339 = arith.constant dense<0.000000e+00> : vector<16x8xf32>
    %582 = tpu.matmul %581, %529, %cst_339 {dimension_numbers = #tpu.dot_dimension_numbers<[1], [0], [0], [1], [0, 0, 1, 1], [], []>} : vector<16x16xf32>, vector<16x8xf32>, vector<16x8xf32> -> vector<16x8xf32>
    %c0_340 = arith.constant 0 : index
    %c6_341 = arith.constant 6 : index
    %c0_342 = arith.constant 0 : index
    %c0_343 = arith.constant 0 : index
    %583 = vector.load %arg2[%c0_340, %c6_341, %c0_342, %c0_343] : memref<1x8x16x1xf32, #tpu.memory_space<vmem>>, vector<1x1x16x1xf32>
    %584 = vector.shape_cast %583 : vector<1x1x16x1xf32> to vector<16x1xf32>
    %585 = vector.broadcast %584 : vector<16x1xf32> to vector<16x8xf32>
    %586 = arith.mulf %582, %585 : vector<16x8xf32>
    %c6_344 = arith.constant 6 : index
    %c0_345 = arith.constant 0 : index
    %c0_346 = arith.constant 0 : index
    %587 = vector.load %arg9[%c6_344, %c0_345, %c0_346] : memref<8x8x64xf32, #tpu.memory_space<vmem>>, vector<1x8x64xf32>
    %588 = vector.shape_cast %587 : vector<1x8x64xf32> to vector<8x64xf32>
    %cst_347 = arith.constant dense<0.000000e+00> : vector<16x64xf32>
    %589 = tpu.matmul %586, %588, %cst_347 {dimension_numbers = #tpu.dot_dimension_numbers<[1], [0], [0], [1], [0, 0, 1, 1], [], []>} : vector<16x8xf32>, vector<8x64xf32>, vector<16x64xf32> -> vector<16x64xf32>
    %590 = arith.addf %508, %589 : vector<16x64xf32>
    %c0_348 = arith.constant 0 : index
    %c7 = arith.constant 7 : index
    %c0_349 = arith.constant 0 : index
    %c0_350 = arith.constant 0 : index
    %591 = vector.load %arg3[%c0_348, %c7, %c0_349, %c0_350] : memref<3x8x64x8xf32, #tpu.memory_space<vmem>>, vector<1x1x64x8xf32>
    %592 = vector.shape_cast %591 : vector<1x1x64x8xf32> to vector<64x8xf32>
    %c1_351 = arith.constant 1 : index
    %c7_352 = arith.constant 7 : index
    %c0_353 = arith.constant 0 : index
    %c0_354 = arith.constant 0 : index
    %593 = vector.load %arg3[%c1_351, %c7_352, %c0_353, %c0_354] : memref<3x8x64x8xf32, #tpu.memory_space<vmem>>, vector<1x1x64x8xf32>
    %594 = vector.shape_cast %593 : vector<1x1x64x8xf32> to vector<64x8xf32>
    %c2_355 = arith.constant 2 : index
    %c7_356 = arith.constant 7 : index
    %c0_357 = arith.constant 0 : index
    %c0_358 = arith.constant 0 : index
    %595 = vector.load %arg3[%c2_355, %c7_356, %c0_357, %c0_358] : memref<3x8x64x8xf32, #tpu.memory_space<vmem>>, vector<1x1x64x8xf32>
    %596 = vector.shape_cast %595 : vector<1x1x64x8xf32> to vector<64x8xf32>
    %cst_359 = arith.constant dense<0.000000e+00> : vector<16x8xf32>
    %597 = tpu.matmul %1, %592, %cst_359 {dimension_numbers = #tpu.dot_dimension_numbers<[1], [0], [0], [1], [0, 0, 1, 1], [], []>} : vector<16x64xf32>, vector<64x8xf32>, vector<16x8xf32> -> vector<16x8xf32>
    %c0_360 = arith.constant 0 : index
    %c7_361 = arith.constant 7 : index
    %c0_362 = arith.constant 0 : index
    %c0_363 = arith.constant 0 : index
    %598 = vector.load %arg4[%c0_360, %c7_361, %c0_362, %c0_363] : memref<3x8x1x8xf32, #tpu.memory_space<vmem>>, vector<1x1x1x8xf32>
    %599 = vector.shape_cast %598 : vector<1x1x1x8xf32> to vector<1x8xf32>
    %600 = vector.broadcast %599 : vector<1x8xf32> to vector<16x8xf32>
    %601 = arith.addf %597, %600 : vector<16x8xf32>
    %cst_364 = arith.constant dense<0.000000e+00> : vector<16x8xf32>
    %602 = tpu.matmul %1, %594, %cst_364 {dimension_numbers = #tpu.dot_dimension_numbers<[1], [0], [0], [1], [0, 0, 1, 1], [], []>} : vector<16x64xf32>, vector<64x8xf32>, vector<16x8xf32> -> vector<16x8xf32>
    %c1_365 = arith.constant 1 : index
    %c7_366 = arith.constant 7 : index
    %c0_367 = arith.constant 0 : index
    %c0_368 = arith.constant 0 : index
    %603 = vector.load %arg4[%c1_365, %c7_366, %c0_367, %c0_368] : memref<3x8x1x8xf32, #tpu.memory_space<vmem>>, vector<1x1x1x8xf32>
    %604 = vector.shape_cast %603 : vector<1x1x1x8xf32> to vector<1x8xf32>
    %605 = vector.broadcast %604 : vector<1x8xf32> to vector<16x8xf32>
    %606 = arith.addf %602, %605 : vector<16x8xf32>
    %cst_369 = arith.constant dense<0.000000e+00> : vector<16x8xf32>
    %607 = tpu.matmul %1, %596, %cst_369 {dimension_numbers = #tpu.dot_dimension_numbers<[1], [0], [0], [1], [0, 0, 1, 1], [], []>} : vector<16x64xf32>, vector<64x8xf32>, vector<16x8xf32> -> vector<16x8xf32>
    %c2_370 = arith.constant 2 : index
    %c7_371 = arith.constant 7 : index
    %c0_372 = arith.constant 0 : index
    %c0_373 = arith.constant 0 : index
    %608 = vector.load %arg4[%c2_370, %c7_371, %c0_372, %c0_373] : memref<3x8x1x8xf32, #tpu.memory_space<vmem>>, vector<1x1x1x8xf32>
    %609 = vector.shape_cast %608 : vector<1x1x1x8xf32> to vector<1x8xf32>
    %610 = vector.broadcast %609 : vector<1x8xf32> to vector<16x8xf32>
    %611 = arith.addf %607, %610 : vector<16x8xf32>
    %cst_374 = arith.constant dense<0.000000e+00> : vector<16xf32>
    %612 = vector.multi_reduction <add>, %601, %cst_374 [1] : vector<16x8xf32> to vector<16xf32>
    %613 = vector.shape_cast %612 : vector<16xf32> to vector<16x1xf32>
    %cst_375 = arith.constant 8.000000e+00 : f32
    %614 = vector.broadcast %cst_375 : f32 to vector<16x1xf32>
    %615 = arith.divf %613, %614 : vector<16x1xf32>
    %616 = vector.broadcast %615 : vector<16x1xf32> to vector<16x8xf32>
    %617 = arith.subf %601, %616 : vector<16x8xf32>
    %618 = arith.mulf %617, %617 : vector<16x8xf32>
    %cst_376 = arith.constant dense<0.000000e+00> : vector<16xf32>
    %619 = vector.multi_reduction <add>, %618, %cst_376 [1] : vector<16x8xf32> to vector<16xf32>
    %620 = vector.shape_cast %619 : vector<16xf32> to vector<16x1xf32>
    %cst_377 = arith.constant 8.000000e+00 : f32
    %621 = vector.broadcast %cst_377 : f32 to vector<16x1xf32>
    %622 = arith.divf %620, %621 : vector<16x1xf32>
    %623 = vector.broadcast %615 : vector<16x1xf32> to vector<16x8xf32>
    %624 = arith.subf %601, %623 : vector<16x8xf32>
    %cst_378 = arith.constant 9.99999974E-6 : f32
    %625 = vector.broadcast %cst_378 : f32 to vector<16x1xf32>
    %626 = arith.addf %622, %625 : vector<16x1xf32>
    %627 = math.rsqrt %626 : vector<16x1xf32>
    %628 = vector.broadcast %627 : vector<16x1xf32> to vector<16x8xf32>
    %629 = arith.mulf %624, %628 : vector<16x8xf32>
    %630 = arith.mulf %629, %4 : vector<16x8xf32>
    %631 = arith.addf %630, %7 : vector<16x8xf32>
    %cst_379 = arith.constant dense<0.000000e+00> : vector<16xf32>
    %632 = vector.multi_reduction <add>, %606, %cst_379 [1] : vector<16x8xf32> to vector<16xf32>
    %633 = vector.shape_cast %632 : vector<16xf32> to vector<16x1xf32>
    %cst_380 = arith.constant 8.000000e+00 : f32
    %634 = vector.broadcast %cst_380 : f32 to vector<16x1xf32>
    %635 = arith.divf %633, %634 : vector<16x1xf32>
    %636 = vector.broadcast %635 : vector<16x1xf32> to vector<16x8xf32>
    %637 = arith.subf %606, %636 : vector<16x8xf32>
    %638 = arith.mulf %637, %637 : vector<16x8xf32>
    %cst_381 = arith.constant dense<0.000000e+00> : vector<16xf32>
    %639 = vector.multi_reduction <add>, %638, %cst_381 [1] : vector<16x8xf32> to vector<16xf32>
    %640 = vector.shape_cast %639 : vector<16xf32> to vector<16x1xf32>
    %cst_382 = arith.constant 8.000000e+00 : f32
    %641 = vector.broadcast %cst_382 : f32 to vector<16x1xf32>
    %642 = arith.divf %640, %641 : vector<16x1xf32>
    %643 = vector.broadcast %635 : vector<16x1xf32> to vector<16x8xf32>
    %644 = arith.subf %606, %643 : vector<16x8xf32>
    %cst_383 = arith.constant 9.99999974E-6 : f32
    %645 = vector.broadcast %cst_383 : f32 to vector<16x1xf32>
    %646 = arith.addf %642, %645 : vector<16x1xf32>
    %647 = math.rsqrt %646 : vector<16x1xf32>
    %648 = vector.broadcast %647 : vector<16x1xf32> to vector<16x8xf32>
    %649 = arith.mulf %644, %648 : vector<16x8xf32>
    %650 = arith.mulf %649, %10 : vector<16x8xf32>
    %651 = arith.addf %650, %13 : vector<16x8xf32>
    %652 = tpu.transpose %651, [1, 0] : vector<16x8xf32> -> vector<8x16xf32>
    %cst_384 = arith.constant dense<0.000000e+00> : vector<16x16xf32>
    %653 = tpu.matmul %631, %652, %cst_384 {dimension_numbers = #tpu.dot_dimension_numbers<[1], [0], [0], [1], [0, 0, 1, 1], [], []>} : vector<16x8xf32>, vector<8x16xf32>, vector<16x16xf32> -> vector<16x16xf32>
    %cst_385 = arith.constant dense<0xFF800000> : vector<16xf32>
    %654 = vector.multi_reduction <maximumf>, %653, %cst_385 [1] : vector<16x16xf32> to vector<16xf32>
    %655 = vector.shape_cast %654 : vector<16xf32> to vector<16x1xf32>
    %656 = vector.broadcast %655 : vector<16x1xf32> to vector<16x16xf32>
    %657 = arith.subf %653, %656 : vector<16x16xf32>
    %658 = math.exp %657 : vector<16x16xf32>
    %cst_386 = arith.constant dense<0.000000e+00> : vector<16xf32>
    %659 = vector.multi_reduction <add>, %658, %cst_386 [1] : vector<16x16xf32> to vector<16xf32>
    %660 = vector.shape_cast %659 : vector<16xf32> to vector<16x1xf32>
    %661 = tpu.reciprocal %660 {approx = true} : vector<16x1xf32> -> vector<16x1xf32>
    %662 = vector.broadcast %661 : vector<16x1xf32> to vector<16x16xf32>
    %663 = arith.mulf %658, %662 : vector<16x16xf32>
    %cst_387 = arith.constant dense<0.000000e+00> : vector<16x8xf32>
    %664 = tpu.matmul %663, %611, %cst_387 {dimension_numbers = #tpu.dot_dimension_numbers<[1], [0], [0], [1], [0, 0, 1, 1], [], []>} : vector<16x16xf32>, vector<16x8xf32>, vector<16x8xf32> -> vector<16x8xf32>
    %c0_388 = arith.constant 0 : index
    %c7_389 = arith.constant 7 : index
    %c0_390 = arith.constant 0 : index
    %c0_391 = arith.constant 0 : index
    %665 = vector.load %arg2[%c0_388, %c7_389, %c0_390, %c0_391] : memref<1x8x16x1xf32, #tpu.memory_space<vmem>>, vector<1x1x16x1xf32>
    %666 = vector.shape_cast %665 : vector<1x1x16x1xf32> to vector<16x1xf32>
    %667 = vector.broadcast %666 : vector<16x1xf32> to vector<16x8xf32>
    %668 = arith.mulf %664, %667 : vector<16x8xf32>
    %c7_392 = arith.constant 7 : index
    %c0_393 = arith.constant 0 : index
    %c0_394 = arith.constant 0 : index
    %669 = vector.load %arg9[%c7_392, %c0_393, %c0_394] : memref<8x8x64xf32, #tpu.memory_space<vmem>>, vector<1x8x64xf32>
    %670 = vector.shape_cast %669 : vector<1x8x64xf32> to vector<8x64xf32>
    %cst_395 = arith.constant dense<0.000000e+00> : vector<16x64xf32>
    %671 = tpu.matmul %668, %670, %cst_395 {dimension_numbers = #tpu.dot_dimension_numbers<[1], [0], [0], [1], [0, 0, 1, 1], [], []>} : vector<16x8xf32>, vector<8x64xf32>, vector<16x64xf32> -> vector<16x64xf32>
    %672 = arith.addf %590, %671 : vector<16x64xf32>
    %c0_396 = arith.constant 0 : index
    %c0_397 = arith.constant 0 : index
    %c0_398 = arith.constant 0 : index
    %673 = vector.load %arg11[%c0_396, %c0_397, %c0_398] : memref<1x16x64xf32, #tpu.memory_space<vmem>>, vector<1x16x64xf32>
    %674 = vector.shape_cast %673 : vector<1x16x64xf32> to vector<16x64xf32>
    %675 = vector.shape_cast %672 : vector<16x64xf32> to vector<1x16x64xf32>
    tpu.vector_store %arg11[%c0_396, %c0_397, %c0_398], %675 {strides = array<i32>} : memref<1x16x64xf32, #tpu.memory_space<vmem>>, vector<1x16x64xf32>,
    return
  }
  func.func @transform_0(%arg0: i32) -> (i32, i32, i32) {
    %c0_i32 = arith.constant 0 : i32
    %c0_i32_0 = arith.constant 0 : i32
    %c0_i32_1 = arith.constant 0 : i32
    return %arg0, %c0_i32, %c0_i32_0 : i32, i32, i32
  }
  func.func @transform_1(%arg0: i32) -> (i32, i32, i32, i32) {
    %c0_i32 = arith.constant 0 : i32
    %c0_i32_0 = arith.constant 0 : i32
    %c0_i32_1 = arith.constant 0 : i32
    %c0_i32_2 = arith.constant 0 : i32
    return %arg0, %c0_i32, %c0_i32_0, %c0_i32_1 : i32, i32, i32, i32
  }
  func.func @transform_2(%arg0: i32) -> (i32, i32, i32, i32) {
    %c0_i32 = arith.constant 0 : i32
    %c0_i32_0 = arith.constant 0 : i32
    %c0_i32_1 = arith.constant 0 : i32
    %c0_i32_2 = arith.constant 0 : i32
    %c0_i32_3 = arith.constant 0 : i32
    return %c0_i32, %c0_i32_0, %c0_i32_1, %c0_i32_2 : i32, i32, i32, i32
  }
  func.func @transform_3(%arg0: i32) -> (i32, i32, i32, i32) {
    %c0_i32 = arith.constant 0 : i32
    %c0_i32_0 = arith.constant 0 : i32
    %c0_i32_1 = arith.constant 0 : i32
    %c0_i32_2 = arith.constant 0 : i32
    %c0_i32_3 = arith.constant 0 : i32
    return %c0_i32, %c0_i32_0, %c0_i32_1, %c0_i32_2 : i32, i32, i32, i32
  }
  func.func @transform_4(%arg0: i32) -> (i32, i32) {
    %c0_i32 = arith.constant 0 : i32
    %c0_i32_0 = arith.constant 0 : i32
    %c0_i32_1 = arith.constant 0 : i32
    return %c0_i32, %c0_i32_0 : i32, i32
  }
  func.func @transform_5(%arg0: i32) -> (i32, i32) {
    %c0_i32 = arith.constant 0 : i32
    %c0_i32_0 = arith.constant 0 : i32
    %c0_i32_1 = arith.constant 0 : i32
    return %c0_i32, %c0_i32_0 : i32, i32
  }
  func.func @transform_6(%arg0: i32) -> (i32, i32) {
    %c0_i32 = arith.constant 0 : i32
    %c0_i32_0 = arith.constant 0 : i32
    %c0_i32_1 = arith.constant 0 : i32
    return %c0_i32, %c0_i32_0 : i32, i32
  }
  func.func @transform_7(%arg0: i32) -> (i32, i32) {
    %c0_i32 = arith.constant 0 : i32
    %c0_i32_0 = arith.constant 0 : i32
    %c0_i32_1 = arith.constant 0 : i32
    return %c0_i32, %c0_i32_0 : i32, i32
  }
  func.func @transform_8(%arg0: i32) -> (i32, i32, i32) {
    %c0_i32 = arith.constant 0 : i32
    %c0_i32_0 = arith.constant 0 : i32
    %c0_i32_1 = arith.constant 0 : i32
    %c0_i32_2 = arith.constant 0 : i32
    return %c0_i32, %c0_i32_0, %c0_i32_1 : i32, i32, i32
  }
  func.func @transform_9(%arg0: i32) -> (i32, i32) {
    %c0_i32 = arith.constant 0 : i32
    %c0_i32_0 = arith.constant 0 : i32
    %c0_i32_1 = arith.constant 0 : i32
    return %c0_i32, %c0_i32_0 : i32, i32
  }
  func.func @transform_10(%arg0: i32) -> (i32, i32, i32) {
    %c0_i32 = arith.constant 0 : i32
    %c0_i32_0 = arith.constant 0 : i32
    %c0_i32_1 = arith.constant 0 : i32
    return %arg0, %c0_i32, %c0_i32_0 : i32, i32, i32
  }
}

</mosaic_0001>

<bundles_post_ra>
// kernel: moh_attention_forward.1
= control target key start
LH: loop header
LB: loop body
LE: loop exit
PB: predicated region body
PF: predicated region fallthrough
CT: control target
= control target key end

     0   :  { %s8855_s0 = inlined_call_operand.vmem [shape: f32[2,16,64], index: 0, kind: input, shape index: {}]   ;;  %s8856_s1 = inlined_call_operand.vmem [shape: f32[2,8,16,1], index: 1, kind: input, shape index: {}]   ;;  %s8857_s2 = inlined_call_operand.vmem [shape: f32[3,8,64,8], index: 2, kind: input, shape index: {}]   ;;  %s8858_s3 = inlined_call_operand.vmem [shape: f32[3,8,1,8], index: 3, kind: input, shape index: {}]   ;;  %s8859_s4 = inlined_call_operand.vmem [shape: f32[1,8], index: 4, kind: input, shape index: {}]   ;;  %s8860_s5 = inlined_call_operand.vmem [shape: f32[1,8], index: 5, kind: input, shape index: {}]   ;;  %s8861_s6 = inlined_call_operand.vmem [shape: f32[1,8], index: 6, kind: input, shape index: {}]   ;;  %s8862_s7 = inlined_call_operand.vmem [shape: f32[1,8], index: 7, kind: input, shape index: {}]   ;;  %s8863_s8 = inlined_call_operand.vmem [shape: f32[8,8,64], index: 8, kind: input, shape index: {}]   ;;  %s8864_s9 = inlined_call_operand.vmem [shape: f32[1,64], index: 9, kind: input, shape index: {}]   ;;  %s8865_s10 = inlined_call_operand.hbm [shape: f32[2,16,64], index: 10, kind: output, shape index: {}]  }
   0x1   :  { %8866 = sst [smem:[#allocation5_spill]] %s8855_s0 }
   0x2   :  { %15 = vsyncpa [#allocation3], 0 }
   0x3   :  { %17 = vsyncpa [#allocation3 + $0x1], 0  ;;  %s7628_s13 = smov 0   ;;  %s7630_s14 = smov 0  }
   0x4   :  { %s7632_s15 = smov 0   ;;  %s7634_s16 = smov 0  }
   0x5 LB: > { %s7649_s17 = sadd.s32 4294967295, %s7567_s16   ;;  %s5519_s18 = sadd.s32 4294967294, %s7567_s16   ;;  %s7567_s16 = sphi %s7634_s16, %s8875_s16   ;;  %s7563_s15 = sphi %s7632_s15, %s8874_s15   ;;  %s7559_s14 = sphi %s7630_s14, %s8873_s14   ;;  %s7555_s13 = sphi %s7628_s13, %s8872_s13  }
   0x6   : > { %s7653_s19 = sadd.s32 1, %s7567_s16   ;;  %s250_s20 = sadd.s32 1, %s7563_s15 }
   0x7   : > { %s247_s21 = ssub.s32 %s7567_s16, %s7653_s19  ;;  %p260_p0 = scmp.ne.s32.totalorder %s7563_s15, %s7559_s14 }
   0x8   : > { %p248_p1 = scmp.eq.s32.totalorder %s247_s21, 0  ;;  %p261_p2 = scmp.eq.s32.totalorder %s7649_s17, 1 }
   0x9   : > { %p266_p3 = scmp.ne.s32.totalorder %s7559_s14, %s7555_s13  ;;  %p267_p4 = scmp.eq.s32.totalorder %s5519_s18, 1 }
   0xa   : > { %s7664_s22 = scalar_select %p248_p1, %s7563_s15, %s250_s20  }
   0xb   : > { %p7666_p5 = por %p261_p2, %p260_p0  ;;  %p7670_p6 = por %p267_p4, %p266_p3 }
   0xc   : > { %p5522_p7 = scmp.ge.s32.totalorder %s7567_s16, 1  ;;  %p325_p8 = scmp.lt.s32.totalorder %s7567_s16, 3 }
   0xe   : > { %p326_p9 = pnand %p5522_p7, %p325_p8 }
   0xf   : > { %v415_v0 = vld [vmem:[%s8857_s2] sm:$0xff] (!%p326_p9)  ;;  %v416_v1 = vld [vmem:[%s8857_s2 + $0x8] sm:$0xff] (!%p326_p9)  ;;  %p368_p10 = scmp.lt.s32.totalorder (!%p326_p9), %s7649_s17, 1  ;;  %v417_v5 = vld [vmem:[%s8857_s2 + $0x10] sm:$0xff] (!%p326_p9)  ;;  %vm448_vm0 = vcmask (!%p326_p9), 523264   ;;  %s8869_s0 = sld [smem:[#allocation5_spill]] (!%p326_p9) }
  0x10   : > { %329 = sbr.rel (%p326_p9) target bundleno = 10643 (0x2993), region = 60  ;;  %v5533_v2 = vld [vmem:[%s8857_s2 + $0x200] sm:$0xff] (!%p326_p9)  ;;  %v6841_v3 = vpack.c.bf16 (!%p326_p9), %v416_v1, %v415_v0  ;;  %v5534_v4 = vld [vmem:[%s8857_s2 + $0x208] sm:$0xff] (!%p326_p9)  ;;  %v418_v6 = vld [vmem:[%s8857_s2 + $0x18] sm:$0xff] (!%p326_p9)  ;;  %vm696_vm1 = vcmask (!%p326_p9), 64512   ;;  %vm845_vm3 = vcmask (!%p326_p9), 130048  }
  0x11   : > { %v6857_v7 = vpack.c.bf16 (!%p326_p9), %v5534_v4, %v5533_v2  ;;  %v6845_v8 = vpack.c.bf16 (!%p326_p9), %v418_v6, %v417_v5  ;;  %v5535_v9 = vld [vmem:[%s8857_s2 + $0x210] sm:$0xff] (!%p326_p9)  ;;  %v5536_v10 = vld [vmem:[%s8857_s2 + $0x218] sm:$0xff] (!%p326_p9)  ;;  %v419_v11 = vld [vmem:[%s8857_s2 + $0x20] sm:$0xff] (!%p326_p9)  ;;  %s7570_s30 = smov (!%p326_p9), [#allocation2]  }
  0x12   : > { %6842 = vmatprep.subr.bf16.mxu0 (!%p326_p9), %v6841_v3  ;;  %v6861_v12 = vpack.c.bf16 (!%p326_p9), %v5536_v10, %v5535_v9  ;;  %v420_v13 = vld [vmem:[%s8857_s2 + $0x28] sm:$0xff] (!%p326_p9)  ;;  %v5537_v14 = vld [vmem:[%s8857_s2 + $0x220] sm:$0xff] (!%p326_p9)  ;;  %v421_v18 = vld [vmem:[%s8857_s2 + $0x30] sm:$0xff] (!%p326_p9) }
  0x13   : > { %v5538_v15 = vld [vmem:[%s8857_s2 + $0x228] sm:$0xff] (!%p326_p9)  ;;  %6858 = vmatprep.subr.bf16.mxu1 (!%p326_p9), %v6857_v7  ;;  %6844 = vmatpush3.bf16.msra.mxu0 (!%p326_p9), %v6841_v3  ;;  %v6849_v16 = vpack.c.bf16 (!%p326_p9), %v420_v13, %v419_v11  ;;  %v422_v19 = vld [vmem:[%s8857_s2 + $0x38] sm:$0xff] (!%p326_p9)  ;;  %v5539_v21 = vld [vmem:[%s8857_s2 + $0x230] sm:$0xff] (!%p326_p9) }
  0x14   : > { %6860 = vmatpush3.bf16.msra.mxu1 (!%p326_p9), %v6857_v7  ;;  %6846 = vmatprep.subr.bf16.mxu0 (!%p326_p9), %v6845_v8  ;;  %v6865_v17 = vpack.c.bf16 (!%p326_p9), %v5538_v15, %v5537_v14  ;;  %v5540_v22 = vld [vmem:[%s8857_s2 + $0x238] sm:$0xff] (!%p326_p9)  ;;  %v6853_v23 = vpack.c.bf16 (!%p326_p9), %v422_v19, %v421_v18  ;;  %v5549_v26 = vld [vmem:[%s8858_s3] ss:$0 sm:$0xff] (!%p326_p9)  ;;  %v5553_v28 = vld [vmem:[%s8858_s3 + $0x8] ss:$0 sm:$0xff] (!%p326_p9) }
  0x15   : > { %6862 = vmatprep.subr.bf16.mxu1 (!%p326_p9), %v6861_v12  ;;  %v6869_v24 = vpack.c.bf16 (!%p326_p9), %v5540_v22, %v5539_v21  ;;  %v7767_v10 = vld [vmem:[%s8861_s6] ss:$0 sm:$0xff] (!%p326_p9)  ;;  %vm7793_vm2 = vmpackc.low (!%p326_p9), %vm696_vm1, %vm696_vm1 }
  0x16   : > { %v7777_v15 = vld [vmem:[%s8860_s5] ss:$0 sm:$0xff] (!%p326_p9) }
  0x17   : > { %s7705_s12 = scalar_select %p368_p10, %s7649_s17, 1  ;;  %6848 = vmatpush3.bf16.msra.mxu0 %v6845_v8  ;;  %v7784_v19 = vld [vmem:[%s8862_s7] ss:$0 sm:$0xff] }
  0x18   : > { %6864 = vmatpush3.bf16.msra.mxu1 %v6861_v12  ;;  %6850 = vmatprep.subr.bf16.mxu0 %v6849_v16  ;;  %v7772_v12 = vld [vmem:[%s8859_s4] ss:$0 sm:$0xff] }
  0x19   : > { %s5902_s28 = sshll.u32 %s7705_s12, 4  ;;  %6866 = vmatprep.subr.bf16.mxu1 %v6865_v17  ;;  %s5903_s18 = sshll.u32 %s7705_s12, 7 }
  0x1a   : > { %s7720_s11 = scalar_lea.vmem %s8869_s0, %s5902_s28  ;;  %s7846_s27 = scalar_lea.vmem %s8856_s1, %s5903_s18 }
  0x1b   : > { %v7729_v20 = vld [vmem:[%s7720_s11] sm:$0xff]  ;;  %6852 = vmatpush3.bf16.msra.mxu0 %v6849_v16  ;;  %v7742_v25 = vld [vmem:[%s7720_s11 + $0x8] sm:$0xff]  ;;  %s365_s18 = sand.u32 1, %s7559_s14   ;;  %s5904_s28 = sshll.u32 %s7649_s17, 8 }
  0x1c   : > { %6249 = vmatprep.mubr.msk.f32.mxu0 %vm448_vm0, %v7729_v20  ;;  %6268 = vmatprep.mubr.msk.f32.mxu1 %vm448_vm0, %v7729_v20  ;;  %s5523_s20 = sshll.u32 %s365_s18, 4 }
  0x1d   : > { %6868 = vmatpush3.bf16.msra.mxu1 %v6865_v17  ;;  %6854 = vmatprep.subr.bf16.mxu0 %v6853_v23  ;;  %s367_s26 = scalar_lea.vmem [#allocation2], %s5523_s20  ;;  %s7509_s20 = sshll.u32 %s7570_s30, 4  ;;  %s7510_s20 = int_to_ptr.vmem [resolvable:$false] %s7509_s20 }
  0x1e   : > { %6870 = vmatprep.subr.bf16.mxu1 %v6869_v24  ;;  %s5445_s12 = sshll.u32 %s367_s26, 4  ;;  %s7511_s21 = scalar_lea.vmem %s7510_s20, 512  ;;  %s8805_s12 = int_to_ptr.vmem [resolvable:$true] %s5445_s12 }
  0x1f   : > { %6856 = vmatpush3.bf16.msra.mxu0 %v6853_v23  ;;  %s7505_s17 = scalar_lea.vmem %s8805_s12, 256  ;;  %p7512_p0 = scmp.lt.s32.totalorder %s8805_s12, %s7510_s20 }
  0x20   : > { %p7506_p11 = scmp.ne.s32.totalorder %s8805_s12, %s7505_s17  ;;  %p7513_p1 = scmp.lt.s32.totalorder %s7511_s21, %s7505_s17 }
  0x21   : > { %6872 = vmatpush3.bf16.msra.mxu1 %v6869_v24 }
  0x22   : > { %6250 = vmatmul.mubr.msk.f32.vlgmr.msra.gmra.mrb[0].mxu0 %vm448_vm0, %v7742_v25  ;;  %p7507_p12 = pnand %p7506_p11, %p7666_p5  ;;  %p7514_p2 = por %p7513_p1, %p7512_p0 }
  0x23   : > { %6287 = vmatprep.mubr.msk.f32.mxu0 %vm448_vm0, %v7729_v20 }
  0x24   : > { %6269 = vmatmul.mubr.msk.f32.vlgmr.msra.gmra.mrb[0].mxu1 %vm448_vm0, %v7742_v25  ;;  %p7508_p13 = pneg %p7507_p12 }
  0x26   : > { %p7515_p3 = pnand %p7514_p2, %p7508_p13 }
  0xf5   : > { %v6251_v27 = vpop.f32.mrb[0].mxu0 }
  0xf6   : > { %v521_v30 = vpop.f32.mrb[1].mxu0  ;;  %v527_v31 = vadd.f32 %v6251_v27, %v5549_v26  ;;  %v5868_v27 = vld [vmem:[%s8857_s2 + $0x5d0] sm:$0xff] }
  0xf7   : > { %v6270_v29 = vpop.f32.mrb[0].mxu1  ;;  %v522_v32 = vadd.f32 %v5549_v26, %v521_v30 }
  0xf8   : > { %v604_v33 = vpop.f32.mrb[1].mxu1  ;;  %v610_v36 = vadd.f32 %v6270_v29, %v5553_v28  ;;  %v700_v38 = vsel %vm696_vm1, %v527_v31, 0.0 }
  0xf9   : > { %v605_v34 = vadd.f32 %v5553_v28, %v604_v33  ;;  %v697_v35 = vsel %vm696_vm1, %v522_v32, 0.0  ;;  %v5542_v33 = vld [vmem:[%s8857_s2 + $0x408] sm:$0xff] }
  0xfa   : > { %698 = vadd.xlane.f32.xlu1 %v697_v35  ;;  %v731_v39 = vsel %vm696_vm1, %v610_v36, 0.0 }
  0xfb   : > { %v728_v37 = vsel %vm696_vm1, %v605_v34, 0.0 }
  0xfc   : > { %729 = vadd.xlane.f32.xlu0 %v728_v37 }
  0xfe   : > { %701 = vadd.xlane.f32.xlu1 %v700_v38  ;;  %v5545_v38 = vld [vmem:[%s8857_s2 + $0x420] sm:$0xff] }
 0x100   : > { %732 = vadd.xlane.f32.xlu0 %v731_v39  ;;  %v5546_v39 = vld [vmem:[%s8857_s2 + $0x428] sm:$0xff] }
 0x187   : > { %v699_v40 = vpop.xlane.xlu1 %698 }
 0x188   : > { %v704_v42 = vmul.f32 0.125, %v699_v40  ;;  %v6881_v40 = vpack.c.bf16 %v5546_v39, %v5545_v38 }
 0x189   : > { %v730_v41 = vpop.xlane.xlu0 %729 }
 0x18a   : > { %v734_v43 = vmul.f32 0.125, %v730_v41  ;;  %v706_v45 = vsub.f32 %v522_v32, %v704_v42  ;;  %v5541_v32 = vld [vmem:[%s8857_s2 + $0x400] sm:$0xff]  ;;  %v5547_v41 = vld [vmem:[%s8857_s2 + $0x430] sm:$0xff]  ;;  %v5548_v42 = vld [vmem:[%s8857_s2 + $0x438] sm:$0xff] }
 0x18b   : > { %v702_v46 = vpop.xlane.xlu1 %701  ;;  %v6873_v35 = vpack.c.bf16 %v5542_v33, %v5541_v32 }
 0x18c   : > { %v736_v44 = vsub.f32 %v605_v34, %v734_v43  ;;  %v705_v48 = vmul.f32 0.125, %v702_v46  ;;  %v708_v54 = vmul.f32 %v706_v45, %v706_v45  ;;  %v5543_v34 = vld [vmem:[%s8857_s2 + $0x410] sm:$0xff]  ;;  %v6885_v43 = vpack.c.bf16 %v5548_v42, %v5547_v41  ;;  %v5580_v41 = vld [vmem:[%s8857_s2 + $0x260] sm:$0xff]  ;;  %v5581_v42 = vld [vmem:[%s8857_s2 + $0x268] sm:$0xff] }
 0x18d   : > { %v733_v47 = vpop.xlane.xlu0 %732  ;;  %6874 = vmatprep.subr.bf16.mxu0 %v6873_v35 }
 0x18e   : > { %v735_v49 = vmul.f32 0.125, %v733_v47  ;;  %v738_v50 = vmul.f32 %v736_v44, %v736_v44  ;;  %v707_v52 = vsub.f32 %v527_v31, %v705_v48  ;;  %v710_v57 = vsel %vm696_vm1, %v708_v54, 0.0  ;;  %6876 = vmatpush3.bf16.msra.mxu0 %v6873_v35  ;;  %v5578_v35 = vld [vmem:[%s8857_s2 + $0x250] sm:$0xff] }
 0x190   : > { %v737_v51 = vsub.f32 %v610_v36, %v735_v49  ;;  %v740_v53 = vsel %vm696_vm1, %v738_v50, 0.0  ;;  %v709_v58 = vmul.f32 %v707_v52, %v707_v52  ;;  %v5544_v36 = vld [vmem:[%s8857_s2 + $0x418] sm:$0xff] }
 0x191   : > { %741 = vadd.xlane.f32.xlu0 %v740_v53  ;;  %v6877_v37 = vpack.c.bf16 %v5544_v36, %v5543_v34  ;;  %v5579_v36 = vld [vmem:[%s8857_s2 + $0x258] sm:$0xff] }
 0x192   : > { %v739_v55 = vmul.f32 %v737_v51, %v737_v51  ;;  %v713_v59 = vsel %vm696_vm1, %v709_v58, 0.0 }
 0x193   : > { %6878 = vmatprep.subr.bf16.mxu0 %v6877_v37 }
 0x194   : > { %v743_v56 = vsel %vm696_vm1, %v739_v55, 0.0  ;;  %6880 = vmatpush3.bf16.msra.mxu0 %v6877_v37 }
 0x195   : > { %744 = vadd.xlane.f32.xlu1 %v743_v56  ;;  %711 = vadd.xlane.f32.xlu0 %v710_v57 }
 0x196   : > { %6882 = vmatprep.subr.bf16.mxu0 %v6881_v40 }
 0x198   : > { %6884 = vmatpush3.bf16.msra.mxu0 %v6881_v40  ;;  %v6919_v40 = vpack.c.bf16 %v5579_v36, %v5578_v35 }
 0x199   : > { %714 = vadd.xlane.f32.xlu1 %v713_v59  ;;  %6886 = vmatprep.subr.bf16.mxu0 %v6885_v43  ;;  %v5557_v59 = vld [vmem:[%s8858_s3 + $0x10] ss:$0 sm:$0xff] }
 0x19c   : > { %6888 = vmatpush3.bf16.msra.mxu0 %v6885_v43  ;;  %v6923_v43 = vpack.c.bf16 %v5581_v42, %v5580_v41 }
 0x19f   : > { %6288 = vmatmul.mubr.msk.f32.vlgmr.msra.gmra.mrb[2].mxu0 %vm448_vm0, %v7742_v25 }
 0x1a0   : > { %6325 = vmatprep.mubr.msk.f32.mxu0 %vm448_vm0, %v7729_v20 }
 0x21e   : > { %v742_v60 = vpop.xlane.xlu0 %741 }
 0x21f   : > { %v746_v61 = vmul.f32 0.125, %v742_v60 }
 0x221   : > { %v748_v62 = vadd.f32 1e-05, %v746_v61 }
 0x222   : > { %v712_v63 = vpop.xlane.xlu0 %711  ;;  %v745_v0 = vpop.xlane.xlu1 %744 }
 0x223   : > { %7365 = vrsqrt.f32 %v748_v62  ;;  %v716_v1 = vmul.f32 0.125, %v712_v63  ;;  %v747_v2 = vmul.f32 0.125, %v745_v0  ;;  %v963_v0 = vld [vmem:[%s8863_s8] sm:$0xff] }
 0x225   : > { %v718_v3 = vadd.f32 1e-05, %v716_v1  ;;  %v749_v4 = vadd.f32 1e-05, %v747_v2  ;;  %v7569_v1 = vmov 0   ;;  %v950_v2 = vld [vmem:[%s7846_s27 + $0x8] sm:$0xff] }
 0x226   : > { %v715_v5 = vpop.xlane.xlu1 %714  ;;  %7364 = vset.pattern.permute.xlu1 %v7569_v1  ;;  %7363 = vset.pattern.permute.xlu0 %v7569_v1 }
 0x227   : > { %7367 = vrsqrt.f32 %v718_v3  ;;  %v717_v6 = vmul.f32 0.125, %v715_v5  ;;  %v949_v3 = vld [vmem:[%s7846_s27] sm:$0xff] }
 0x228   : > { %7369 = vrsqrt.f32 %v749_v4 }
 0x229   : > { %v719_v7 = vadd.f32 1e-05, %v717_v6 }
 0x22b   : > { %7371 = vrsqrt.f32 %v719_v7 }
 0x22d   : > { %v7366_v8 = vpop.eup %7365 }
 0x22e   : > { %v752_v9 = vmul.f32 %v7366_v8, %v736_v44 }
 0x230   : > { %v754_v17 = vmul.f32 %v7767_v10, %v752_v9 }
 0x231   : > { %v7368_v11 = vpop.eup %7367 }
 0x232   : > { %v7370_v13 = vpop.eup %7369  ;;  %v722_v14 = vmul.f32 %v7368_v11, %v706_v45  ;;  %v756_v24 = vadd.f32 %v7784_v19, %v754_v17  ;;  %v5576_v11 = vld [vmem:[%s8857_s2 + $0x240] sm:$0xff]  ;;  %v5569_v17 = vld [vmem:[%s8857_s2 + $0x48] sm:$0xff] }
 0x233   : > { %v753_v16 = vmul.f32 %v7370_v13, %v737_v51  ;;  %v5577_v13 = vld [vmem:[%s8857_s2 + $0x248] sm:$0xff] }
 0x234   : > { %v724_v18 = vmul.f32 %v7772_v12, %v722_v14  ;;  %v6915_v14 = vpack.c.bf16 %v5577_v13, %v5576_v11 }
 0x235   : > { %v755_v21 = vmul.f32 %v7767_v10, %v753_v16  ;;  %v7372_v22 = vpop.eup %7371  ;;  %v5568_v16 = vld [vmem:[%s8857_s2 + $0x40] sm:$0xff] }
 0x236   : > { %v726_v23 = vadd.f32 %v7777_v15, %v724_v18  ;;  %v723_v28 = vmul.f32 %v7372_v22, %v707_v52  ;;  %v6899_v18 = vpack.c.bf16 %v5569_v17, %v5568_v16  ;;  %v5571_v22 = vld [vmem:[%s8857_s2 + $0x58] sm:$0xff] }
 0x237   : > { %v757_v26 = vadd.f32 %v7784_v19, %v755_v21  ;;  %v5570_v21 = vld [vmem:[%s8857_s2 + $0x50] sm:$0xff] }
 0x238   : > { %6294 = vmatprep.mubr.msk.f32.mxu1 %vm696_vm1, %v726_v23  ;;  %v725_v30 = vmul.f32 %v7772_v12, %v723_v28  ;;  %6900 = vmatprep.subr.bf16.mxu0 %v6899_v18  ;;  %v6903_v23 = vpack.c.bf16 %v5571_v22, %v5570_v21 }
 0x239   : > { %v6889_v29 = vpack.c.bf16 %v757_v26, %v756_v24  ;;  %6902 = vmatpush3.bf16.msra.mxu0 %v6899_v18  ;;  %v5572_v24 = vld [vmem:[%s8857_s2 + $0x60] sm:$0xff]  ;;  %v5573_v26 = vld [vmem:[%s8857_s2 + $0x68] sm:$0xff] }
 0x23a   : > { %v727_v31 = vadd.f32 %v7777_v15, %v725_v30  ;;  %6904 = vmatprep.subr.bf16.mxu0 %v6903_v23  ;;  %v6907_v28 = vpack.c.bf16 %v5573_v26, %v5572_v24  ;;  %v5575_v30 = vld [vmem:[%s8857_s2 + $0x78] sm:$0xff] }
 0x23b   : > { %6891 = vmatprep.subr.msk.bf16.mxu1 %vm7793_vm2, %v6889_v29 }
 0x23c   : > { %6894 = vmatpush3.bf16.xpose.msk.msra.mxu1 %vm7793_vm2, %v6889_v29  ;;  %v5574_v29 = vld [vmem:[%s8857_s2 + $0x70] sm:$0xff] }
 0x23d   : > { %6906 = vmatpush3.bf16.msra.mxu0 %v6903_v23 }
 0x23e   : > { %6908 = vmatprep.subr.bf16.mxu0 %v6907_v28 }
 0x241   : > { %6910 = vmatpush3.bf16.msra.mxu0 %v6907_v28 }
 0x243   : > { %6295 = vmatmul.mubr.msk.f32.vlgmr.msra.gmra.mrb[2].mxu1 %vm696_vm1, %v727_v31  ;;  %v6911_v31 = vpack.c.bf16 %v5575_v30, %v5574_v29 }
 0x245   : > { %6912 = vmatprep.subr.bf16.mxu0 %v6911_v31 }
 0x246   : > { %6914 = vmatpush3.bf16.msra.mxu0 %v6911_v31 }
 0x249   : > { %6326 = vmatmul.mubr.msk.f32.vlgmr.msra.gmra.mrb[4].mxu0 %vm448_vm0, %v7742_v25 }
 0x24a   : > { %6363 = vmatprep.mubr.msk.f32.mxu0 %vm448_vm0, %v7729_v20 }
 0x272   : > { %v6289_v58 = vpop.f32.mrb[2].mxu0 }
 0x273   : > { %v693_v60 = vadd.f32 %v6289_v58, %v5557_v59  ;;  %v687_v61 = vpop.f32.mrb[3].mxu0 }
 0x274   : > { %v688_v62 = vadd.f32 %v5557_v59, %v687_v61 }
 0x276   : > { %v6895_v63 = vpack.c.bf16 %v693_v60, %v688_v62 }
 0x278   : > { %6896 = vmatprep.subr.bf16.mxu1 %v6895_v63 }
 0x279   : > { %6898 = vmatpush3.bf16.msra.mxu1 %v6895_v63 }
 0x27a   : > { %6304 = vmatprep.subr.mxu1 %v963_v0 }
 0x316   : > { %v6296_v44 = vpop.f32.mrb[2].mxu1 }
 0x317   : > { %v836_v45 = vpop.f32.mrb[3].mxu1  ;;  %v849_v46 = vsel %vm845_vm3, %v6296_v44, -inf }
 0x318   : > { %850 = vmax.xlane.f32.xlu1 %v849_v46  ;;  %v846_v47 = vsel %vm845_vm3, %v836_v45, -inf }
 0x319   : > { %847 = vmax.xlane.f32.xlu0 %v846_v47 }
 0x31c   : > { %v6327_v47 = vpop.f32.mrb[4].mxu0 }
 0x3a5   : > { %v851_v48 = vpop.xlane.xlu1 %850 }
 0x3a6   : > { %v853_v49 = vsub.f32 %v6296_v44, %v851_v48  ;;  %v848_v50 = vpop.xlane.xlu0 %847  ;;  %v5582_v44 = vld [vmem:[%s8857_s2 + $0x270] sm:$0xff]  ;;  %v1148_v48 = vpop.f32.mrb[5].mxu0 }
 0x3a7   : > { %v852_v51 = vsub.f32 %v836_v45, %v848_v50  ;;  %v5583_v45 = vld [vmem:[%s8857_s2 + $0x278] sm:$0xff]  ;;  %v5593_v50 = vld [vmem:[%s8858_s3 + $0x1] ss:$0 sm:$0xff] }
 0x3a8   : > { %v856_v52 = vmul.f32 1.442695, %v853_v49  ;;  %v6927_v46 = vpack.c.bf16 %v5583_v45, %v5582_v44  ;;  %v5597_v49 = vld [vmem:[%s8858_s3 + $0x9] ss:$0 sm:$0xff]  ;;  %v1154_v58 = vadd.f32 %v6327_v47, %v5593_v50 }
 0x3a9   : > { %v854_v53 = vmul.f32 1.442695, %v852_v51 }
 0x3aa   : > { %7373 = vpow2.f32 %v856_v52  ;;  %v1326_v60 = vsel %vm696_vm1, %v1154_v58, 0.0 }
 0x3ab   : > { %7375 = vpow2.f32 %v854_v53 }
 0x3b4   : > { %v7374_v54 = vpop.eup %7373 }
 0x3b5   : > { %v7376_v55 = vpop.eup %7375  ;;  %v861_v56 = vsel %vm845_vm3, %v7374_v54, 0.0 }
 0x3b6   : > { %862 = vadd.xlane.f32.xlu1 %v861_v56  ;;  %v858_v57 = vsel %vm845_vm3, %v7376_v55, 0.0 }
 0x3b7   : > { %859 = vadd.xlane.f32.xlu0 %v858_v57 }
 0x3c7   : > { %958 = vperm.xlu1 %7364, %v950_v2  }
 0x3cd   : > { %953 = vperm.xlu0 %7363, %v949_v3  }
 0x443   : > { %v863_v4 = vpop.xlane.xlu1 %862 }
 0x444   : > { %7377 = vrcp.f32 %v863_v4  ;;  %v860_v5 = vpop.xlane.xlu0 %859 }
 0x445   : > { %7379 = vrcp.f32 %v860_v5 }
 0x447   : > { %v959_v33 = vpop.permute.xlu1 %958 }
 0x44c   : > { %v954_v32 = vpop.permute.xlu0 %953 }
 0x44e   : > { %v7378_v6 = vpop.eup %7377 }
 0x44f   : > { %v7380_v7 = vpop.eup %7379  ;;  %v867_v9 = vmul.f32 %v7378_v6, %v7374_v54 }
 0x450   : > { %v866_v8 = vmul.f32 %v7380_v7, %v7376_v55  ;;  %v1149_v55 = vadd.f32 %v5593_v50, %v1148_v48 }
 0x452   : > { %6301 = vmatprep.mubr.msk.f32.mxu1 %vm845_vm3, %v866_v8  ;;  %v1323_v59 = vsel %vm696_vm1, %v1149_v55, 0.0 }
 0x453   : > { %6302 = vmatmul.mubr.msk.f32.vlgmr.msra.gmra.mrb[4].mxu1 %vm845_vm3, %v867_v9 }
 0x454   : > { %6305 = vmatpush3.msra.mxu1 %v963_v0 }
 0x455   : > { %6916 = vmatprep.subr.bf16.mxu1 %v6915_v14 }
 0x526   : > { %v6303_v34 = vpop.f32.mrb[4].mxu1 }
 0x527   : > { %v940_v37 = vpop.f32.mrb[5].mxu1  ;;  %v962_v39 = vmul.f32 %v6303_v34, %v959_v33 }
 0x528   : > { %v961_v38 = vmul.f32 %v954_v32, %v940_v37 }
 0x52a   : > { %6306 = vmatprep.mubr.msk.f32.mxu1 %vm696_vm1, %v961_v38 }
 0x52b   : > { %6307 = vmatmul.mubr.msk.f32.vlgmr.msra.gmra.mrb[6].mxu1 %vm696_vm1, %v962_v39 }
 0x52c   : > { %6918 = vmatpush3.bf16.msra.mxu1 %v6915_v14  ;;  %6344 = vmatprep.mubr.msk.f32.mxu1 %vm448_vm0, %v7729_v20 }
 0x52d   : > { %6920 = vmatprep.subr.bf16.mxu1 %v6919_v40 }
 0x530   : > { %6922 = vmatpush3.bf16.msra.mxu1 %v6919_v40 }
 0x531   : > { %6924 = vmatprep.subr.bf16.mxu1 %v6923_v43 }
 0x534   : > { %6926 = vmatpush3.bf16.msra.mxu1 %v6923_v43 }
 0x535   : > { %6928 = vmatprep.subr.bf16.mxu1 %v6927_v46 }
 0x538   : > { %6930 = vmatpush3.bf16.msra.mxu1 %v6927_v46 }
 0x53b   : > { %6345 = vmatmul.mubr.msk.f32.vlgmr.msra.gmra.mrb[8].mxu1 %vm448_vm0, %v7742_v25 }
 0x60e   : > { %v6346_v51 = vpop.f32.mrb[8].mxu1 }
 0x60f   : > { %v1237_v52 = vadd.f32 %v6346_v51, %v5597_v49  ;;  %v1231_v53 = vpop.f32.mrb[9].mxu1 }
 0x610   : > { %v1232_v54 = vadd.f32 %v5597_v49, %v1231_v53  ;;  %v5584_v53 = vld [vmem:[%s8857_s2 + $0x440] sm:$0xff] }
 0x611   : > { %v1356_v56 = vsel %vm696_vm1, %v1237_v52, 0.0 }
 0x612   : > { %1357 = vadd.xlane.f32.xlu0 %v1356_v56  ;;  %v1353_v57 = vsel %vm696_vm1, %v1232_v54, 0.0 }
 0x613   : > { %1354 = vadd.xlane.f32.xlu1 %v1353_v57  ;;  %v5587_v57 = vld [vmem:[%s8857_s2 + $0x458] sm:$0xff] }
 0x617   : > { %1324 = vadd.xlane.f32.xlu1 %v1323_v59  ;;  %v5588_v59 = vld [vmem:[%s8857_s2 + $0x460] sm:$0xff] }
 0x61b   : > { %1327 = vadd.xlane.f32.xlu1 %v1326_v60  ;;  %v5589_v60 = vld [vmem:[%s8857_s2 + $0x468] sm:$0xff] }
 0x69f   : > { %v1358_v61 = vpop.xlane.xlu0 %1357 }
 0x6a0   : > { %v1360_v62 = vmul.f32 0.125, %v1358_v61  ;;  %v1355_v63 = vpop.xlane.xlu1 %1354  ;;  %v6939_v61 = vpack.c.bf16 %v5589_v60, %v5588_v59 }
 0x6a1   : > { %v1359_v0 = vmul.f32 0.125, %v1355_v63  ;;  %v5591_v63 = vld [vmem:[%s8857_s2 + $0x478] sm:$0xff] }
 0x6a2   : > { %v1362_v1 = vsub.f32 %v1237_v52, %v1360_v62  ;;  %v5590_v62 = vld [vmem:[%s8857_s2 + $0x470] sm:$0xff] }
 0x6a3   : > { %v1361_v2 = vsub.f32 %v1232_v54, %v1359_v0  ;;  %v5585_v54 = vld [vmem:[%s8857_s2 + $0x448] sm:$0xff]  ;;  %v6943_v0 = vpack.c.bf16 %v5591_v63, %v5590_v62 }
 0x6a4   : > { %v1325_v3 = vpop.xlane.xlu1 %1324  ;;  %v1364_v8 = vmul.f32 %v1362_v1, %v1362_v1  ;;  %v6931_v56 = vpack.c.bf16 %v5585_v54, %v5584_v53  ;;  %v5625_v53 = vld [vmem:[%s8857_s2 + $0x290] sm:$0xff]  ;;  %v5626_v54 = vld [vmem:[%s8857_s2 + $0x298] sm:$0xff]  ;;  %v5628_v62 = vld [vmem:[%s8857_s2 + $0x2a8] sm:$0xff] }
 0x6a5   : > { %v1329_v4 = vmul.f32 0.125, %v1325_v3  ;;  %v1363_v5 = vmul.f32 %v1361_v2, %v1361_v2  ;;  %v6977_v60 = vpack.c.bf16 %v5626_v54, %v5625_v53 }
 0x6a6   : > { %v1368_v14 = vsel %vm696_vm1, %v1364_v8, 0.0  ;;  %6932 = vmatprep.subr.bf16.mxu0 %v6931_v56 }
 0x6a7   : > { %v1331_v6 = vsub.f32 %v1149_v55, %v1329_v4  ;;  %v1365_v7 = vsel %vm696_vm1, %v1363_v5, 0.0  ;;  %v5586_v55 = vld [vmem:[%s8857_s2 + $0x450] sm:$0xff]  ;;  %6934 = vmatpush3.bf16.msra.mxu0 %v6931_v56 }
 0x6a8   : > { %1366 = vadd.xlane.f32.xlu1 %v1365_v7  ;;  %v1328_v9 = vpop.xlane.xlu1 %1327 }
 0x6a9   : > { %v1330_v11 = vmul.f32 0.125, %v1328_v9  ;;  %v1333_v16 = vmul.f32 %v1331_v6, %v1331_v6 }
 0x6ab   : > { %v1332_v13 = vsub.f32 %v1154_v58, %v1330_v11  ;;  %v1335_v17 = vsel %vm696_vm1, %v1333_v16, 0.0  ;;  %v6935_v58 = vpack.c.bf16 %v5587_v57, %v5586_v55 }
 0x6ac   : > { %1369 = vadd.xlane.f32.xlu1 %v1368_v14 }
 0x6ad   : > { %v1334_v18 = vmul.f32 %v1332_v13, %v1332_v13  ;;  %6936 = vmatprep.subr.bf16.mxu0 %v6935_v58 }
 0x6ae   : > { %6938 = vmatpush3.bf16.msra.mxu0 %v6935_v58 }
 0x6af   : > { %v1338_v21 = vsel %vm696_vm1, %v1334_v18, 0.0  ;;  %6940 = vmatprep.subr.bf16.mxu0 %v6939_v61  ;;  %v5611_v18 = vld [vmem:[%s7846_s27 + $0x18] sm:$0xff] }
 0x6b0   : > { %1336 = vadd.xlane.f32.xlu1 %v1335_v17 }
 0x6b2   : > { %6942 = vmatpush3.bf16.msra.mxu0 %v6939_v61  ;;  %v5627_v61 = vld [vmem:[%s8857_s2 + $0x2a0] sm:$0xff] }
 0x6b3   : > { %6944 = vmatprep.subr.bf16.mxu0 %v6943_v0  ;;  %v6981_v63 = vpack.c.bf16 %v5628_v62, %v5627_v61 }
 0x6b4   : > { %1339 = vadd.xlane.f32.xlu1 %v1338_v21 }
 0x6b6   : > { %6946 = vmatpush3.bf16.msra.mxu0 %v6943_v0  ;;  %v5629_v0 = vld [vmem:[%s8857_s2 + $0x2b0] sm:$0xff] }
 0x6b9   : > { %6364 = vmatmul.mubr.msk.f32.vlgmr.msra.gmra.mrb[6].mxu0 %vm448_vm0, %v7742_v25 }
 0x6ba   : > { %6401 = vmatprep.mubr.msk.f32.mxu0 %vm448_vm0, %v7729_v20 }
 0x735   : > { %v1367_v22 = vpop.xlane.xlu1 %1366 }
 0x736   : > { %v1371_v23 = vmul.f32 0.125, %v1367_v22  ;;  %v5601_v22 = vld [vmem:[%s8858_s3 + $0x11] ss:$0 sm:$0xff] }
 0x738   : > { %v1373_v24 = vadd.f32 1e-05, %v1371_v23 }
 0x739   : > { %v1370_v26 = vpop.xlane.xlu1 %1369 }
 0x73a   : > { %7381 = vrsqrt.f32 %v1373_v24  ;;  %v1372_v28 = vmul.f32 0.125, %v1370_v26 }
 0x73c   : > { %v1374_v29 = vadd.f32 1e-05, %v1372_v28  ;;  %v5610_v28 = vld [vmem:[%s7846_s27 + $0x10] sm:$0xff] }
 0x73d   : > { %v1337_v30 = vpop.xlane.xlu1 %1336 }
 0x73e   : > { %7383 = vrsqrt.f32 %v1374_v29  ;;  %v1341_v31 = vmul.f32 0.125, %v1337_v30 }
 0x740   : > { %v1343_v32 = vadd.f32 1e-05, %v1341_v31 }
 0x741   : > { %v1340_v33 = vpop.xlane.xlu1 %1339 }
 0x742   : > { %7385 = vrsqrt.f32 %v1343_v32  ;;  %v1342_v34 = vmul.f32 0.125, %v1340_v33 }
 0x744   : > { %v7382_v35 = vpop.eup %7381  ;;  %v1344_v36 = vadd.f32 1e-05, %v1342_v34 }
 0x745   : > { %v1377_v37 = vmul.f32 %v7382_v35, %v1361_v2 }
 0x746   : > { %7387 = vrsqrt.f32 %v1344_v36  ;;  %v5612_v36 = vld [vmem:[%s8863_s8 + $0x8] sm:$0xff] }
 0x747   : > { %v1379_v40 = vmul.f32 %v7767_v10, %v1377_v37  ;;  %v5623_v37 = vld [vmem:[%s8857_s2 + $0x280] sm:$0xff] }
 0x748   : > { %v7384_v38 = vpop.eup %7383 }
 0x749   : > { %v1378_v39 = vmul.f32 %v7384_v38, %v1362_v1  ;;  %v1381_v43 = vadd.f32 %v7784_v19, %v1379_v40  ;;  %v5624_v38 = vld [vmem:[%s8857_s2 + $0x288] sm:$0xff]  ;;  %v5615_v40 = vld [vmem:[%s8857_s2 + $0x80] sm:$0xff] }
 0x74b   : > { %v1380_v41 = vmul.f32 %v7767_v10, %v1378_v39  ;;  %v6973_v39 = vpack.c.bf16 %v5624_v38, %v5623_v37 }
 0x74c   : > { %v7386_v42 = vpop.eup %7385 }
 0x74d   : > { %v1382_v44 = vadd.f32 %v7784_v19, %v1380_v41  ;;  %v1347_v45 = vmul.f32 %v7386_v42, %v1331_v6  ;;  %v5616_v41 = vld [vmem:[%s8857_s2 + $0x88] sm:$0xff] }
 0x74e   : > { %v6957_v42 = vpack.c.bf16 %v5616_v41, %v5615_v40 }
 0x74f   : > { %v6947_v46 = vpack.c.bf16 %v1382_v44, %v1381_v43  ;;  %v1349_v47 = vmul.f32 %v7772_v12, %v1347_v45  ;;  %v5617_v43 = vld [vmem:[%s8857_s2 + $0x90] sm:$0xff]  ;;  %v5618_v44 = vld [vmem:[%s8857_s2 + $0x98] sm:$0xff] }
 0x750   : > { %v7388_v48 = vpop.eup %7387  ;;  %6958 = vmatprep.subr.bf16.mxu0 %v6957_v42  ;;  %v6961_v45 = vpack.c.bf16 %v5618_v44, %v5617_v43 }
 0x751   : > { %v1348_v49 = vmul.f32 %v7388_v48, %v1332_v13  ;;  %6949 = vmatprep.subr.msk.bf16.mxu1 %vm7793_vm2, %v6947_v46  ;;  %v1351_v50 = vadd.f32 %v7777_v15, %v1349_v47  ;;  %6960 = vmatpush3.bf16.msra.mxu0 %v6957_v42  ;;  %v5620_v47 = vld [vmem:[%s8857_s2 + $0xa8] sm:$0xff] }
 0x752   : > { %6952 = vmatpush3.bf16.xpose.msk.msra.mxu1 %vm7793_vm2, %v6947_v46  ;;  %6962 = vmatprep.subr.bf16.mxu0 %v6961_v45  ;;  %v5619_v46 = vld [vmem:[%s8857_s2 + $0xa0] sm:$0xff] }
 0x753   : > { %6370 = vmatprep.mubr.msk.f32.mxu1 %vm696_vm1, %v1351_v50  ;;  %v1350_v51 = vmul.f32 %v7772_v12, %v1348_v49  ;;  %v6965_v48 = vpack.c.bf16 %v5620_v47, %v5619_v46  ;;  %v5621_v49 = vld [vmem:[%s8857_s2 + $0xb0] sm:$0xff]  ;;  %v5622_v50 = vld [vmem:[%s8857_s2 + $0xb8] sm:$0xff] }
 0x755   : > { %v1352_v52 = vadd.f32 %v7777_v15, %v1350_v51  ;;  %6964 = vmatpush3.bf16.msra.mxu0 %v6961_v45  ;;  %v6969_v51 = vpack.c.bf16 %v5622_v50, %v5621_v49 }
 0x756   : > { %6966 = vmatprep.subr.bf16.mxu0 %v6965_v48 }
 0x759   : > { %6371 = vmatmul.mubr.msk.f32.vlgmr.msra.gmra.mrb[10].mxu1 %vm696_vm1, %v1352_v52  ;;  %6968 = vmatpush3.bf16.msra.mxu0 %v6965_v48 }
 0x75a   : > { %6970 = vmatprep.subr.bf16.mxu0 %v6969_v51 }
 0x75d   : > { %6972 = vmatpush3.bf16.msra.mxu0 %v6969_v51 }
 0x760   : > { %6402 = vmatmul.mubr.msk.f32.vlgmr.msra.gmra.mrb[8].mxu0 %vm448_vm0, %v7742_v25 }
 0x761   : > { %6439 = vmatprep.mubr.msk.f32.mxu0 %vm448_vm0, %v7729_v20 }
 0x78c   : > { %v6365_v21 = vpop.f32.mrb[6].mxu0 }
 0x78d   : > { %v1314_v23 = vpop.f32.mrb[7].mxu0  ;;  %v1320_v24 = vadd.f32 %v6365_v21, %v5601_v22 }
 0x78e   : > { %v1315_v26 = vadd.f32 %v5601_v22, %v1314_v23 }
 0x790   : > { %v6953_v29 = vpack.c.bf16 %v1320_v24, %v1315_v26 }
 0x792   : > { %6954 = vmatprep.subr.bf16.mxu1 %v6953_v29 }
 0x793   : > { %6956 = vmatpush3.bf16.msra.mxu1 %v6953_v29 }
 0x794   : > { %6380 = vmatprep.subr.mxu1 %v5612_v36 }
 0x82c   : > { %v6372_v1 = vpop.f32.mrb[10].mxu1 }
 0x82d   : > { %v1461_v2 = vpop.f32.mrb[11].mxu1  ;;  %v1473_v3 = vsel %vm845_vm3, %v6372_v1, -inf }
 0x82e   : > { %1474 = vmax.xlane.f32.xlu1 %v1473_v3  ;;  %v1470_v4 = vsel %vm845_vm3, %v1461_v2, -inf }
 0x82f   : > { %1471 = vmax.xlane.f32.xlu0 %v1470_v4  ;;  %v5644_v4 = vld [vmem:[%s8858_s3 + $0xa] ss:$0 sm:$0xff] }
 0x8bb   : > { %v1475_v5 = vpop.xlane.xlu1 %1474 }
 0x8bc   : > { %v1477_v6 = vsub.f32 %v6372_v1, %v1475_v5  ;;  %v1472_v7 = vpop.xlane.xlu0 %1471  ;;  %v5630_v1 = vld [vmem:[%s8857_s2 + $0x2b8] sm:$0xff]  ;;  %v5640_v5 = vld [vmem:[%s8858_s3 + $0x2] ss:$0 sm:$0xff] }
 0x8bd   : > { %v1476_v8 = vsub.f32 %v1461_v2, %v1472_v7  ;;  %v6985_v2 = vpack.c.bf16 %v5630_v1, %v5629_v0 }
 0x8be   : > { %v1480_v9 = vmul.f32 1.442695, %v1477_v6 }
 0x8bf   : > { %v1478_v11 = vmul.f32 1.442695, %v1476_v8 }
 0x8c0   : > { %7389 = vpow2.f32 %v1480_v9 }
 0x8c1   : > { %7391 = vpow2.f32 %v1478_v11 }
 0x8ca   : > { %v7390_v13 = vpop.eup %7389 }
 0x8cb   : > { %v7392_v14 = vpop.eup %7391  ;;  %v1485_v16 = vsel %vm845_vm3, %v7390_v13, 0.0 }
 0x8cc   : > { %1486 = vadd.xlane.f32.xlu1 %v1485_v16  ;;  %v1482_v17 = vsel %vm845_vm3, %v7392_v14, 0.0 }
 0x8cd   : > { %1483 = vadd.xlane.f32.xlu0 %v1482_v17 }
 0x8dd   : > { %1583 = vperm.xlu1 %7364, %v5611_v18  }
 0x8e3   : > { %1578 = vperm.xlu0 %7363, %v5610_v28  }
 0x959   : > { %v1487_v30 = vpop.xlane.xlu1 %1486 }
 0x95a   : > { %7393 = vrcp.f32 %v1487_v30  ;;  %v1484_v31 = vpop.xlane.xlu0 %1483 }
 0x95b   : > { %7395 = vrcp.f32 %v1484_v31 }
 0x95d   : > { %v1584_v57 = vpop.permute.xlu1 %1583 }
 0x962   : > { %v1579_v55 = vpop.permute.xlu0 %1578 }
 0x964   : > { %v7394_v32 = vpop.eup %7393 }
 0x965   : > { %v7396_v33 = vpop.eup %7395  ;;  %v1491_v35 = vmul.f32 %v7394_v32, %v7390_v13 }
 0x966   : > { %v1490_v34 = vmul.f32 %v7396_v33, %v7392_v14 }
 0x968   : > { %6377 = vmatprep.mubr.msk.f32.mxu1 %vm845_vm3, %v1490_v34 }
 0x969   : > { %6378 = vmatmul.mubr.msk.f32.vlgmr.msra.gmra.mrb[12].mxu1 %vm845_vm3, %v1491_v35 }
 0x96a   : > { %6381 = vmatpush3.msra.mxu1 %v5612_v36 }
 0x96b   : > { %6974 = vmatprep.subr.bf16.mxu1 %v6973_v39 }
 0xa3c   : > { %v6379_v52 = vpop.f32.mrb[12].mxu1 }
 0xa3d   : > { %v1564_v56 = vpop.f32.mrb[13].mxu1  ;;  %v1587_v59 = vmul.f32 %v6379_v52, %v1584_v57 }
 0xa3e   : > { %v1586_v58 = vmul.f32 %v1579_v55, %v1564_v56 }
 0xa40   : > { %6382 = vmatprep.mubr.msk.f32.mxu1 %vm696_vm1, %v1586_v58 }
 0xa41   : > { %6383 = vmatmul.mubr.msk.f32.vlgmr.msra.gmra.mrb[6].mxu1 %vm696_vm1, %v1587_v59 }
 0xa42   : > { %6976 = vmatpush3.bf16.msra.mxu1 %v6973_v39  ;;  %6420 = vmatprep.mubr.msk.f32.mxu1 %vm448_vm0, %v7729_v20  ;;  %v6403_v20 = vpop.f32.mrb[8].mxu0 }
 0xa43   : > { %6978 = vmatprep.subr.bf16.mxu1 %v6977_v60  ;;  %v1774_v3 = vpop.f32.mrb[9].mxu0  ;;  %v1780_v13 = vadd.f32 %v6403_v20, %v5640_v5 }
 0xa44   : > { %v1775_v9 = vadd.f32 %v5640_v5, %v1774_v3  ;;  %v5632_v5 = vld [vmem:[%s8857_s2 + $0x488] sm:$0xff] }
 0xa45   : > { %v1952_v17 = vsel %vm696_vm1, %v1780_v13, 0.0 }
 0xa46   : > { %6980 = vmatpush3.bf16.msra.mxu1 %v6977_v60  ;;  %v1949_v16 = vsel %vm696_vm1, %v1775_v9, 0.0 }
 0xa47   : > { %6982 = vmatprep.subr.bf16.mxu1 %v6981_v63 }
 0xa4a   : > { %6984 = vmatpush3.bf16.msra.mxu1 %v6981_v63 }
 0xa4b   : > { %6986 = vmatprep.subr.bf16.mxu1 %v6985_v2 }
 0xa4e   : > { %6988 = vmatpush3.bf16.msra.mxu1 %v6985_v2 }
 0xa51   : > { %6421 = vmatmul.mubr.msk.f32.vlgmr.msra.gmra.mrb[14].mxu1 %vm448_vm0, %v7742_v25 }
 0xb24   : > { %v6422_v6 = vpop.f32.mrb[14].mxu1 }
 0xb25   : > { %v1863_v7 = vadd.f32 %v6422_v6, %v5644_v4  ;;  %v1857_v8 = vpop.f32.mrb[15].mxu1  ;;  %v5633_v6 = vld [vmem:[%s8857_s2 + $0x490] sm:$0xff] }
 0xb26   : > { %v1858_v11 = vadd.f32 %v5644_v4, %v1857_v8  ;;  %v5635_v8 = vld [vmem:[%s8857_s2 + $0x4a0] sm:$0xff] }
 0xb27   : > { %v1982_v14 = vsel %vm696_vm1, %v1863_v7, 0.0 }
 0xb28   : > { %1983 = vadd.xlane.f32.xlu0 %v1982_v14  ;;  %v1979_v25 = vsel %vm696_vm1, %v1858_v11, 0.0  ;;  %v5638_v14 = vld [vmem:[%s8857_s2 + $0x4b8] sm:$0xff] }
 0xb29   : > { %1980 = vadd.xlane.f32.xlu1 %v1979_v25 }
 0xb2c   : > { %1950 = vadd.xlane.f32.xlu0 %v1949_v16  ;;  %v8091_v16 = vld [vmem:[%s7720_s11 + $0x8] sm:$0xff] }
 0xb2d   : > { %1953 = vadd.xlane.f32.xlu1 %v1952_v17  ;;  %v8096_v17 = vld [vmem:[%s7720_s11] sm:$0xff] }
 0xbb5   : > { %v1984_v18 = vpop.xlane.xlu0 %1983 }
 0xbb6   : > { %v1986_v21 = vmul.f32 0.125, %v1984_v18  ;;  %v1981_v22 = vpop.xlane.xlu1 %1980 }
 0xbb7   : > { %v1985_v23 = vmul.f32 0.125, %v1981_v22 }
 0xbb8   : > { %v1988_v24 = vsub.f32 %v1863_v7, %v1986_v21 }
 0xbb9   : > { %v1987_v26 = vsub.f32 %v1858_v11, %v1985_v23  ;;  %v1951_v28 = vpop.xlane.xlu0 %1950 }
 0xbba   : > { %v1955_v29 = vmul.f32 0.125, %v1951_v28  ;;  %v1954_v30 = vpop.xlane.xlu1 %1953  ;;  %v1990_v31 = vmul.f32 %v1988_v24, %v1988_v24 }
 0xbbb   : > { %v1956_v32 = vmul.f32 0.125, %v1954_v30  ;;  %v1989_v33 = vmul.f32 %v1987_v26, %v1987_v26 }
 0xbbc   : > { %v1957_v34 = vsub.f32 %v1775_v9, %v1955_v29  ;;  %v1994_v35 = vsel %vm696_vm1, %v1990_v31, 0.0  ;;  %v5636_v9 = vld [vmem:[%s8857_s2 + $0x4a8] sm:$0xff] }
 0xbbd   : > { %v1958_v36 = vsub.f32 %v1780_v13, %v1956_v32  ;;  %1995 = vadd.xlane.f32.xlu1 %v1994_v35  ;;  %v1991_v37 = vsel %vm696_vm1, %v1989_v33, 0.0  ;;  %v6997_v11 = vpack.c.bf16 %v5636_v9, %v5635_v8  ;;  %v5637_v13 = vld [vmem:[%s8857_s2 + $0x4b0] sm:$0xff] }
 0xbbe   : > { %1992 = vadd.xlane.f32.xlu0 %v1991_v37  ;;  %v1959_v38 = vmul.f32 %v1957_v34, %v1957_v34  ;;  %v7001_v25 = vpack.c.bf16 %v5638_v14, %v5637_v13  ;;  %v5676_v9 = vld [vmem:[%s8857_s2 + $0x2f0] sm:$0xff] }
 0xbbf   : > { %v1960_v39 = vmul.f32 %v1958_v36, %v1958_v36 }
 0xbc0   : > { %v1961_v40 = vsel %vm696_vm1, %v1959_v38, 0.0  ;;  %v5648_v38 = vld [vmem:[%s8858_s3 + $0x12] ss:$0 sm:$0xff] }
 0xbc1   : > { %v1964_v41 = vsel %vm696_vm1, %v1960_v39, 0.0 }
 0xbc2   : > { %1962 = vadd.xlane.f32.xlu0 %v1961_v40  ;;  %1965 = vadd.xlane.f32.xlu1 %v1964_v41  ;;  %v5657_v40 = vld [vmem:[%s7846_s27 + $0x20] sm:$0xff] }
 0xc4a   : > { %v1996_v42 = vpop.xlane.xlu1 %1995 }
 0xc4b   : > { %v1998_v43 = vmul.f32 0.125, %v1996_v42  ;;  %v1993_v44 = vpop.xlane.xlu0 %1992 }
 0xc4c   : > { %v1997_v45 = vmul.f32 0.125, %v1993_v44 }
 0xc4d   : > { %v2000_v46 = vadd.f32 1e-05, %v1998_v43 }
 0xc4e   : > { %v1999_v47 = vadd.f32 1e-05, %v1997_v45 }
 0xc4f   : > { %7397 = vrsqrt.f32 %v2000_v46  ;;  %v1963_v48 = vpop.xlane.xlu0 %1962  ;;  %v1966_v49 = vpop.xlane.xlu1 %1965 }
 0xc50   : > { %7399 = vrsqrt.f32 %v1999_v47  ;;  %v1967_v50 = vmul.f32 0.125, %v1963_v48  ;;  %v1968_v51 = vmul.f32 0.125, %v1966_v49 }
 0xc52   : > { %v1969_v52 = vadd.f32 1e-05, %v1967_v50  ;;  %v1970_v53 = vadd.f32 1e-05, %v1968_v51  ;;  %v5659_v50 = vld [vmem:[%s8863_s8 + $0x10] sm:$0xff]  ;;  %v5670_v51 = vld [vmem:[%s8857_s2 + $0x2c0] sm:$0xff] }
 0xc54   : > { %7401 = vrsqrt.f32 %v1969_v52  ;;  %v5671_v52 = vld [vmem:[%s8857_s2 + $0x2c8] sm:$0xff] }
 0xc55   : > { %7403 = vrsqrt.f32 %v1970_v53  ;;  %v7031_v53 = vpack.c.bf16 %v5671_v52, %v5670_v51 }
 0xc59   : > { %v7398_v54 = vpop.eup %7397 }
 0xc5a   : > { %v7400_v55 = vpop.eup %7399  ;;  %v2004_v56 = vmul.f32 %v7398_v54, %v1988_v24  ;;  %v5662_v54 = vld [vmem:[%s8857_s2 + $0xc0] sm:$0xff] }
 0xc5b   : > { %v2003_v57 = vmul.f32 %v7400_v55, %v1987_v26  ;;  %v5663_v55 = vld [vmem:[%s8857_s2 + $0xc8] sm:$0xff] }
 0xc5c   : > { %v2006_v58 = vmul.f32 %v7767_v10, %v2004_v56  ;;  %v7015_v56 = vpack.c.bf16 %v5663_v55, %v5662_v54 }
 0xc5d   : > { %v2005_v59 = vmul.f32 %v7767_v10, %v2003_v57  ;;  %v5664_v57 = vld [vmem:[%s8857_s2 + $0xd0] sm:$0xff] }
 0xc5e   : > { %v7402_v60 = vpop.eup %7401  ;;  %v2008_v61 = vadd.f32 %v7784_v19, %v2006_v58  ;;  %v5665_v58 = vld [vmem:[%s8857_s2 + $0xd8] sm:$0xff] }
 0xc5f   : > { %v7404_v62 = vpop.eup %7403  ;;  %v2007_v63 = vadd.f32 %v7784_v19, %v2005_v59  ;;  %v1973_v0 = vmul.f32 %v7402_v60, %v1957_v34  ;;  %v5631_v19 = vld [vmem:[%s8857_s2 + $0x480] sm:$0xff]  ;;  %v7019_v59 = vpack.c.bf16 %v5665_v58, %v5664_v57 }
 0xc60   : > { %v1974_v1 = vmul.f32 %v7404_v62, %v1958_v36  ;;  %v6989_v7 = vpack.c.bf16 %v5632_v5, %v5631_v19  ;;  %v5658_v36 = vld [vmem:[%s7846_s27 + $0x28] sm:$0xff]  ;;  %v5666_v60 = vld [vmem:[%s8857_s2 + $0xe0] sm:$0xff] }
 0xc61   : > { %v7005_v2 = vpack.c.bf16 %v2008_v61, %v2007_v63  ;;  %v1975_v20 = vmul.f32 %v7772_v12, %v1973_v0  ;;  %v5667_v61 = vld [vmem:[%s8857_s2 + $0xe8] sm:$0xff]  ;;  %v5668_v63 = vld [vmem:[%s8857_s2 + $0xf0] sm:$0xff]  ;;  %v5669_v0 = vld [vmem:[%s8857_s2 + $0xf8] sm:$0xff] }
 0xc62   : > { %v1976_v10 = vmul.f32 %v7772_v12, %v1974_v1  ;;  %v5634_v12 = vld [vmem:[%s8857_s2 + $0x498] sm:$0xff]  ;;  %6990 = vmatprep.subr.bf16.mxu0 %v6989_v7  ;;  %v7023_v62 = vpack.c.bf16 %v5667_v61, %v5666_v60  ;;  %v7027_v1 = vpack.c.bf16 %v5669_v0, %v5668_v63 }
 0xc63   : > { %7007 = vmatprep.subr.msk.bf16.mxu1 %vm7793_vm2, %v7005_v2  ;;  %v1977_v3 = vadd.f32 %v7777_v15, %v1975_v20  ;;  %6992 = vmatpush3.bf16.msra.mxu0 %v6989_v7  ;;  %v5672_v20 = vld [vmem:[%s8857_s2 + $0x2d0] sm:$0xff] }
 0xc64   : > { %7010 = vmatpush3.bf16.xpose.msk.msra.mxu1 %vm7793_vm2, %v7005_v2  ;;  %v1978_v4 = vadd.f32 %v7777_v15, %v1976_v10  ;;  %v6993_v15 = vpack.c.bf16 %v5634_v12, %v5633_v6  ;;  %v5674_v12 = vld [vmem:[%s8857_s2 + $0x2e0] sm:$0xff] }
 0xc65   : > { %6446 = vmatprep.mubr.msk.f32.mxu1 %vm696_vm1, %v1977_v3  ;;  %v5673_v3 = vld [vmem:[%s8857_s2 + $0x2d8] sm:$0xff] }
 0xc66   : > { %6994 = vmatprep.subr.bf16.mxu0 %v6993_v15  ;;  %v7035_v7 = vpack.c.bf16 %v5673_v3, %v5672_v20 }
 0xc67   : > { %6996 = vmatpush3.bf16.msra.mxu0 %v6993_v15  ;;  %v5675_v15 = vld [vmem:[%s8857_s2 + $0x2e8] sm:$0xff] }
 0xc68   : > { %6998 = vmatprep.subr.bf16.mxu0 %v6997_v11  ;;  %v7039_v8 = vpack.c.bf16 %v5675_v15, %v5674_v12 }
 0xc6b   : > { %6447 = vmatmul.mubr.msk.f32.vlgmr.msra.gmra.mrb[16].mxu1 %vm696_vm1, %v1978_v4  ;;  %7000 = vmatpush3.bf16.msra.mxu0 %v6997_v11  ;;  %v5677_v11 = vld [vmem:[%s8857_s2 + $0x2f8] sm:$0xff] }
 0xc6c   : > { %7002 = vmatprep.subr.bf16.mxu0 %v7001_v25  ;;  %v7043_v13 = vpack.c.bf16 %v5677_v11, %v5676_v9 }
 0xc6f   : > { %7004 = vmatpush3.bf16.msra.mxu0 %v7001_v25 }
 0xc70   : > { %7016 = vmatprep.subr.bf16.mxu0 %v7015_v56 }
 0xc72   : > { %6440 = vmatmul.mubr.msk.f32.vlgmr.msra.gmra.mrb[10].mxu0 %vm448_vm0, %v8091_v16 }
 0xc73   : > { %6477 = vmatprep.mubr.msk.f32.mxu0 %vm448_vm0, %v8096_v17  ;;  %7018 = vmatpush3.bf16.msra.mxu0 %v7015_v56 }
 0xc74   : > { %7020 = vmatprep.subr.bf16.mxu0 %v7019_v59 }
 0xc77   : > { %7022 = vmatpush3.bf16.msra.mxu0 %v7019_v59 }
 0xc78   : > { %7024 = vmatprep.subr.bf16.mxu0 %v7023_v62 }
 0xc7b   : > { %7026 = vmatpush3.bf16.msra.mxu0 %v7023_v62 }
 0xc7c   : > { %7028 = vmatprep.subr.bf16.mxu0 %v7027_v1 }
 0xc7f   : > { %7030 = vmatpush3.bf16.msra.mxu0 %v7027_v1 }
 0xc82   : > { %6478 = vmatmul.mubr.msk.f32.vlgmr.msra.gmra.mrb[12].mxu0 %vm448_vm0, %v8091_v16 }
 0xc83   : > { %6515 = vmatprep.mubr.msk.f32.mxu0 %vm448_vm0, %v8096_v17 }
 0xd3e   : > { %v6448_v18 = vpop.f32.mrb[16].mxu1 }
 0xd3f   : > { %v2087_v21 = vpop.f32.mrb[17].mxu1  ;;  %v2099_v22 = vsel %vm845_vm3, %v6448_v18, -inf }
 0xd40   : > { %2100 = vmax.xlane.f32.xlu1 %v2099_v22  ;;  %v2096_v23 = vsel %vm845_vm3, %v2087_v21, -inf }
 0xd41   : > { %2097 = vmax.xlane.f32.xlu0 %v2096_v23 }
 0xd45   : > { %v6441_v37 = vpop.f32.mrb[10].mxu0 }
 0xd46   : > { %v1940_v39 = vpop.f32.mrb[11].mxu0  ;;  %v1946_v41 = vadd.f32 %v6441_v37, %v5648_v38 }
 0xd47   : > { %v1941_v42 = vadd.f32 %v5648_v38, %v1940_v39 }
 0xd49   : > { %v7011_v43 = vpack.c.bf16 %v1946_v41, %v1941_v42 }
 0xd4b   : > { %7012 = vmatprep.subr.bf16.mxu1 %v7011_v43 }
 0xd4c   : > { %7014 = vmatpush3.bf16.msra.mxu1 %v7011_v43 }
 0xd4d   : > { %6456 = vmatprep.subr.mxu1 %v5659_v50 }
 0xd55   : > { %v6479_v14 = vpop.f32.mrb[12].mxu0 }
 0xd56   : > { %v2400_v25 = vpop.f32.mrb[13].mxu0 }
 0xdcd   : > { %v2101_v24 = vpop.xlane.xlu1 %2100 }
 0xdce   : > { %v2103_v26 = vsub.f32 %v6448_v18, %v2101_v24  ;;  %v2098_v28 = vpop.xlane.xlu0 %2097  ;;  %v5691_v18 = vld [vmem:[%s8858_s3 + $0xb] ss:$0 sm:$0xff] }
 0xdcf   : > { %v2102_v29 = vsub.f32 %v2087_v21, %v2098_v28  ;;  %v5687_v21 = vld [vmem:[%s8858_s3 + $0x3] ss:$0 sm:$0xff] }
 0xdd0   : > { %v2106_v30 = vmul.f32 1.442695, %v2103_v26  ;;  %v2401_v26 = vadd.f32 %v5687_v21, %v2400_v25 }
 0xdd1   : > { %v2104_v31 = vmul.f32 1.442695, %v2102_v29  ;;  %v2406_v29 = vadd.f32 %v6479_v14, %v5687_v21  ;;  %v8203_v14 = vld [vmem:[%s8859_s4] ss:$0 sm:$0xff] }
 0xdd2   : > { %7405 = vpow2.f32 %v2106_v30 }
 0xdd3   : > { %7407 = vpow2.f32 %v2104_v31 }
 0xddc   : > { %v7406_v32 = vpop.eup %7405 }
 0xddd   : > { %v7408_v33 = vpop.eup %7407  ;;  %v2111_v34 = vsel %vm845_vm3, %v7406_v32, 0.0 }
 0xdde   : > { %2112 = vadd.xlane.f32.xlu1 %v2111_v34  ;;  %v2108_v35 = vsel %vm845_vm3, %v7408_v33, 0.0 }
 0xddf   : > { %2109 = vadd.xlane.f32.xlu0 %v2108_v35 }
 0xdef   : > { %2209 = vperm.xlu1 %7364, %v5658_v36  }
 0xdf5   : > { %2204 = vperm.xlu0 %7363, %v5657_v40  }
 0xe6b   : > { %v2113_v44 = vpop.xlane.xlu1 %2112 }
 0xe6c   : > { %7409 = vrcp.f32 %v2113_v44  ;;  %v2110_v45 = vpop.xlane.xlu0 %2109 }
 0xe6d   : > { %7411 = vrcp.f32 %v2110_v45 }
 0xe6f   : > { %v2210_v19 = vpop.permute.xlu1 %2209 }
 0xe74   : > { %v2205_v10 = vpop.permute.xlu0 %2204 }
 0xe76   : > { %v7410_v46 = vpop.eup %7409 }
 0xe77   : > { %v7412_v47 = vpop.eup %7411  ;;  %v2117_v49 = vmul.f32 %v7410_v46, %v7406_v32  ;;  %v2575_v32 = vsel %vm696_vm1, %v2401_v26, 0.0 }
 0xe78   : > { %v2116_v48 = vmul.f32 %v7412_v47, %v7408_v33  ;;  %v2578_v33 = vsel %vm696_vm1, %v2406_v29, 0.0 }
 0xe7a   : > { %6453 = vmatprep.mubr.msk.f32.mxu1 %vm845_vm3, %v2116_v48 }
 0xe7b   : > { %6454 = vmatmul.mubr.msk.f32.vlgmr.msra.gmra.mrb[18].mxu1 %vm845_vm3, %v2117_v49 }
 0xe7c   : > { %6457 = vmatpush3.msra.mxu1 %v5659_v50 }
 0xe7d   : > { %7032 = vmatprep.subr.bf16.mxu1 %v7031_v53 }
 0xf4e   : > { %v6455_v2 = vpop.f32.mrb[18].mxu1 }
 0xf4f   : > { %v2190_v4 = vpop.f32.mrb[19].mxu1  ;;  %v2213_v6 = vmul.f32 %v6455_v2, %v2210_v19 }
 0xf50   : > { %v2212_v5 = vmul.f32 %v2205_v10, %v2190_v4  ;;  %v8189_v4 = vld [vmem:[%s8861_s6] ss:$0 sm:$0xff] }
 0xf52   : > { %6458 = vmatprep.mubr.msk.f32.mxu1 %vm696_vm1, %v2212_v5 }
 0xf53   : > { %6459 = vmatmul.mubr.msk.f32.vlgmr.msra.gmra.mrb[6].mxu1 %vm696_vm1, %v2213_v6 }
 0xf54   : > { %7034 = vmatpush3.bf16.msra.mxu1 %v7031_v53  ;;  %6496 = vmatprep.mubr.msk.f32.mxu1 %vm448_vm0, %v8096_v17 }
 0xf55   : > { %7036 = vmatprep.subr.bf16.mxu1 %v7035_v7 }
 0xf58   : > { %7038 = vmatpush3.bf16.msra.mxu1 %v7035_v7  ;;  %v8196_v7 = vld [vmem:[%s8862_s7] ss:$0 sm:$0xff] }
 0xf59   : > { %7040 = vmatprep.subr.bf16.mxu1 %v7039_v8 }
 0xf5c   : > { %7042 = vmatpush3.bf16.msra.mxu1 %v7039_v8 }
 0xf5d   : > { %7044 = vmatprep.subr.bf16.mxu1 %v7043_v13 }
 0xf60   : > { %7046 = vmatpush3.bf16.msra.mxu1 %v7043_v13 }
 0xf63   : > { %6497 = vmatmul.mubr.msk.f32.vlgmr.msra.gmra.mrb[20].mxu1 %vm448_vm0, %v8091_v16 }
0x1036   : > { %v6498_v22 = vpop.f32.mrb[20].mxu1 }
0x1037   : > { %v2489_v23 = vadd.f32 %v6498_v22, %v5691_v18  ;;  %v2483_v24 = vpop.f32.mrb[21].mxu1 }
0x1038   : > { %v2484_v28 = vadd.f32 %v5691_v18, %v2483_v24  ;;  %v8211_v18 = vld [vmem:[%s8860_s5] ss:$0 sm:$0xff] }
0x1039   : > { %v2608_v30 = vsel %vm696_vm1, %v2489_v23, 0.0  ;;  %v5678_v24 = vld [vmem:[%s8857_s2 + $0x4c0] sm:$0xff] }
0x103a   : > { %2609 = vadd.xlane.f32.xlu0 %v2608_v30  ;;  %v2605_v31 = vsel %vm696_vm1, %v2484_v28, 0.0  ;;  %v5681_v30 = vld [vmem:[%s8857_s2 + $0x4d8] sm:$0xff] }
0x103b   : > { %2606 = vadd.xlane.f32.xlu1 %v2605_v31 }
0x103e   : > { %2576 = vadd.xlane.f32.xlu0 %v2575_v32  ;;  %v5682_v32 = vld [vmem:[%s8857_s2 + $0x4e0] sm:$0xff] }
0x103f   : > { %2579 = vadd.xlane.f32.xlu1 %v2578_v33  ;;  %v5683_v33 = vld [vmem:[%s8857_s2 + $0x4e8] sm:$0xff] }
0x10c7   : > { %v2610_v34 = vpop.xlane.xlu0 %2609 }
0x10c8   : > { %v2612_v35 = vmul.f32 0.125, %v2610_v34  ;;  %v2607_v36 = vpop.xlane.xlu1 %2606  ;;  %v7055_v34 = vpack.c.bf16 %v5683_v33, %v5682_v32 }
0x10c9   : > { %v2611_v37 = vmul.f32 0.125, %v2607_v36  ;;  %v5685_v36 = vld [vmem:[%s8857_s2 + $0x4f8] sm:$0xff] }
0x10ca   : > { %v2614_v38 = vsub.f32 %v2489_v23, %v2612_v35  ;;  %v5684_v35 = vld [vmem:[%s8857_s2 + $0x4f0] sm:$0xff] }
0x10cb   : > { %v2613_v39 = vsub.f32 %v2484_v28, %v2611_v37  ;;  %v2577_v40 = vpop.xlane.xlu0 %2576  ;;  %v5680_v28 = vld [vmem:[%s8857_s2 + $0x4d0] sm:$0xff]  ;;  %v7059_v37 = vpack.c.bf16 %v5685_v36, %v5684_v35  ;;  %v5722_v35 = vld [vmem:[%s8857_s2 + $0x328] sm:$0xff] }
0x10cc   : > { %v2581_v41 = vmul.f32 0.125, %v2577_v40  ;;  %v2580_v42 = vpop.xlane.xlu1 %2579  ;;  %v2616_v43 = vmul.f32 %v2614_v38, %v2614_v38  ;;  %v7051_v31 = vpack.c.bf16 %v5681_v30, %v5680_v28 }
0x10cd   : > { %v2582_v44 = vmul.f32 0.125, %v2580_v42  ;;  %v2615_v45 = vmul.f32 %v2613_v39, %v2613_v39 }
0x10ce   : > { %v2583_v46 = vsub.f32 %v2401_v26, %v2581_v41  ;;  %v2620_v47 = vsel %vm696_vm1, %v2616_v43, 0.0  ;;  %v5679_v26 = vld [vmem:[%s8857_s2 + $0x4c8] sm:$0xff] }
0x10cf   : > { %v2584_v48 = vsub.f32 %v2406_v29, %v2582_v44  ;;  %2621 = vadd.xlane.f32.xlu1 %v2620_v47  ;;  %v2617_v49 = vsel %vm696_vm1, %v2615_v45, 0.0  ;;  %v7047_v29 = vpack.c.bf16 %v5679_v26, %v5678_v24  ;;  %v5719_v24 = vld [vmem:[%s8857_s2 + $0x310] sm:$0xff]  ;;  %v5720_v26 = vld [vmem:[%s8857_s2 + $0x318] sm:$0xff] }
0x10d0   : > { %2618 = vadd.xlane.f32.xlu0 %v2617_v49  ;;  %v2585_v50 = vmul.f32 %v2583_v46, %v2583_v46  ;;  %v7093_v33 = vpack.c.bf16 %v5720_v26, %v5719_v24 }
0x10d1   : > { %v2586_v51 = vmul.f32 %v2584_v48, %v2584_v48  ;;  %7048 = vmatprep.subr.bf16.mxu0 %v7047_v29 }
0x10d2   : > { %v2587_v52 = vsel %vm696_vm1, %v2585_v50, 0.0  ;;  %7050 = vmatpush3.bf16.msra.mxu0 %v7047_v29 }
0x10d3   : > { %v2590_v53 = vsel %vm696_vm1, %v2586_v51, 0.0  ;;  %7052 = vmatprep.subr.bf16.mxu0 %v7051_v31 }
0x10d4   : > { %2588 = vadd.xlane.f32.xlu0 %v2587_v52  ;;  %2591 = vadd.xlane.f32.xlu1 %v2590_v53  ;;  %v5705_v52 = vld [vmem:[%s7846_s27 + $0x38] sm:$0xff] }
0x10d6   : > { %7054 = vmatpush3.bf16.msra.mxu0 %v7051_v31 }
0x10d7   : > { %7056 = vmatprep.subr.bf16.mxu0 %v7055_v34 }
0x10da   : > { %7058 = vmatpush3.bf16.msra.mxu0 %v7055_v34  ;;  %v5721_v34 = vld [vmem:[%s8857_s2 + $0x320] sm:$0xff] }
0x10db   : > { %7060 = vmatprep.subr.bf16.mxu0 %v7059_v37  ;;  %v7097_v36 = vpack.c.bf16 %v5722_v35, %v5721_v34 }
0x10de   : > { %7062 = vmatpush3.bf16.msra.mxu0 %v7059_v37  ;;  %v5723_v37 = vld [vmem:[%s8857_s2 + $0x330] sm:$0xff] }
0x10e1   : > { %6516 = vmatmul.mubr.msk.f32.vlgmr.msra.gmra.mrb[14].mxu0 %vm448_vm0, %v8091_v16 }
0x10e2   : > { %6553 = vmatprep.mubr.msk.f32.mxu0 %vm448_vm0, %v8096_v17 }
0x115c   : > { %v2622_v54 = vpop.xlane.xlu1 %2621 }
0x115d   : > { %v2624_v55 = vmul.f32 0.125, %v2622_v54  ;;  %v2619_v56 = vpop.xlane.xlu0 %2618  ;;  %v5695_v54 = vld [vmem:[%s8858_s3 + $0x13] ss:$0 sm:$0xff] }
0x115e   : > { %v2623_v57 = vmul.f32 0.125, %v2619_v56  ;;  %v5704_v56 = vld [vmem:[%s7846_s27 + $0x30] sm:$0xff] }
0x115f   : > { %v2626_v58 = vadd.f32 1e-05, %v2624_v55 }
0x1160   : > { %v2625_v59 = vadd.f32 1e-05, %v2623_v57 }
0x1161   : > { %7413 = vrsqrt.f32 %v2626_v58  ;;  %v2589_v60 = vpop.xlane.xlu0 %2588  ;;  %v2592_v61 = vpop.xlane.xlu1 %2591 }
0x1162   : > { %7415 = vrsqrt.f32 %v2625_v59  ;;  %v2593_v62 = vmul.f32 0.125, %v2589_v60  ;;  %v2594_v63 = vmul.f32 0.125, %v2592_v61 }
0x1164   : > { %v2595_v0 = vadd.f32 1e-05, %v2593_v62  ;;  %v2596_v1 = vadd.f32 1e-05, %v2594_v63 }
0x1166   : > { %7417 = vrsqrt.f32 %v2595_v0 }
0x1167   : > { %7419 = vrsqrt.f32 %v2596_v1 }
0x116b   : > { %v7414_v2 = vpop.eup %7413 }
0x116c   : > { %v7416_v20 = vpop.eup %7415  ;;  %v2630_v3 = vmul.f32 %v7414_v2, %v2614_v38  ;;  %v5706_v2 = vld [vmem:[%s8863_s8 + $0x18] sm:$0xff] }
0x116d   : > { %v2629_v10 = vmul.f32 %v7416_v20, %v2613_v39  ;;  %v5717_v20 = vld [vmem:[%s8857_s2 + $0x300] sm:$0xff] }
0x116e   : > { %v2632_v19 = vmul.f32 %v8189_v4, %v2630_v3  ;;  %v5718_v3 = vld [vmem:[%s8857_s2 + $0x308] sm:$0xff] }
0x116f   : > { %v2631_v5 = vmul.f32 %v8189_v4, %v2629_v10  ;;  %v7089_v10 = vpack.c.bf16 %v5718_v3, %v5717_v20 }
0x1170   : > { %v7418_v6 = vpop.eup %7417  ;;  %v2634_v12 = vadd.f32 %v8196_v7, %v2632_v19  ;;  %v5709_v19 = vld [vmem:[%s8857_s2 + $0x100] sm:$0xff] }
0x1171   : > { %v7420_v15 = vpop.eup %7419  ;;  %v2633_v8 = vadd.f32 %v8196_v7, %v2631_v5  ;;  %v2599_v9 = vmul.f32 %v7418_v6, %v2583_v46  ;;  %v5710_v5 = vld [vmem:[%s8857_s2 + $0x108] sm:$0xff] }
0x1172   : > { %v2600_v11 = vmul.f32 %v7420_v15, %v2584_v48  ;;  %v7073_v6 = vpack.c.bf16 %v5710_v5, %v5709_v19  ;;  %v5712_v15 = vld [vmem:[%s8857_s2 + $0x118] sm:$0xff] }
0x1173   : > { %v7063_v13 = vpack.c.bf16 %v2634_v12, %v2633_v8  ;;  %v2601_v25 = vmul.f32 %v8203_v14, %v2599_v9  ;;  %v5711_v12 = vld [vmem:[%s8857_s2 + $0x110] sm:$0xff]  ;;  %v5713_v9 = vld [vmem:[%s8857_s2 + $0x120] sm:$0xff] }
0x1174   : > { %v2602_v22 = vmul.f32 %v8203_v14, %v2600_v11  ;;  %7074 = vmatprep.subr.bf16.mxu0 %v7073_v6  ;;  %v7077_v8 = vpack.c.bf16 %v5712_v15, %v5711_v12  ;;  %v5714_v11 = vld [vmem:[%s8857_s2 + $0x128] sm:$0xff] }
0x1175   : > { %7065 = vmatprep.subr.msk.bf16.mxu1 %vm7793_vm2, %v7063_v13  ;;  %v2603_v21 = vadd.f32 %v8211_v18, %v2601_v25  ;;  %7076 = vmatpush3.bf16.msra.mxu0 %v7073_v6  ;;  %v5715_v25 = vld [vmem:[%s8857_s2 + $0x130] sm:$0xff] }
0x1176   : > { %7068 = vmatpush3.bf16.xpose.msk.msra.mxu1 %vm7793_vm2, %v7063_v13  ;;  %v2604_v23 = vadd.f32 %v8211_v18, %v2602_v22  ;;  %7078 = vmatprep.subr.bf16.mxu0 %v7077_v8  ;;  %v7081_v13 = vpack.c.bf16 %v5714_v11, %v5713_v9 }
0x1177   : > { %6522 = vmatprep.mubr.msk.f32.mxu1 %vm696_vm1, %v2603_v21  ;;  %v5716_v21 = vld [vmem:[%s8857_s2 + $0x138] sm:$0xff] }
0x1178   : > { %v7085_v22 = vpack.c.bf16 %v5716_v21, %v5715_v25 }
0x1179   : > { %7080 = vmatpush3.bf16.msra.mxu0 %v7077_v8 }
0x117a   : > { %7082 = vmatprep.subr.bf16.mxu0 %v7081_v13 }
0x117d   : > { %6523 = vmatmul.mubr.msk.f32.vlgmr.msra.gmra.mrb[22].mxu1 %vm696_vm1, %v2604_v23  ;;  %7084 = vmatpush3.bf16.msra.mxu0 %v7081_v13 }
0x117e   : > { %7086 = vmatprep.subr.bf16.mxu0 %v7085_v22 }
0x1181   : > { %7088 = vmatpush3.bf16.msra.mxu0 %v7085_v22 }
0x1184   : > { %6554 = vmatmul.mubr.msk.f32.vlgmr.msra.gmra.mrb[16].mxu0 %vm448_vm0, %v8091_v16 }
0x1185   : > { %6591 = vmatprep.mubr.msk.f32.mxu0 %vm448_vm0, %v8096_v17 }
0x11b4   : > { %v6517_v53 = vpop.f32.mrb[14].mxu0 }
0x11b5   : > { %v2566_v55 = vpop.f32.mrb[15].mxu0  ;;  %v2572_v57 = vadd.f32 %v6517_v53, %v5695_v54 }
0x11b6   : > { %v2567_v58 = vadd.f32 %v5695_v54, %v2566_v55 }
0x11b8   : > { %v7069_v59 = vpack.c.bf16 %v2572_v57, %v2567_v58 }
0x11ba   : > { %7070 = vmatprep.subr.bf16.mxu1 %v7069_v59 }
0x11bb   : > { %7072 = vmatpush3.bf16.msra.mxu1 %v7069_v59 }
0x11bc   : > { %6532 = vmatprep.subr.mxu1 %v5706_v2 }
0x1250   : > { %v6524_v38 = vpop.f32.mrb[22].mxu1 }
0x1251   : > { %v2713_v39 = vpop.f32.mrb[23].mxu1  ;;  %v2725_v40 = vsel %vm845_vm3, %v6524_v38, -inf }
0x1252   : > { %2726 = vmax.xlane.f32.xlu1 %v2725_v40  ;;  %v2722_v41 = vsel %vm845_vm3, %v2713_v39, -inf }
0x1253   : > { %2723 = vmax.xlane.f32.xlu0 %v2722_v41 }
0x1257   : > { %v6555_v40 = vpop.f32.mrb[16].mxu0 }
0x1258   : > { %v3026_v41 = vpop.f32.mrb[17].mxu0 }
0x12df   : > { %v2727_v42 = vpop.xlane.xlu1 %2726 }
0x12e0   : > { %v2729_v43 = vsub.f32 %v6524_v38, %v2727_v42  ;;  %v2724_v44 = vpop.xlane.xlu0 %2723  ;;  %v5724_v38 = vld [vmem:[%s8857_s2 + $0x338] sm:$0xff]  ;;  %v5738_v42 = vld [vmem:[%s8858_s3 + $0xc] ss:$0 sm:$0xff] }
0x12e1   : > { %v2728_v45 = vsub.f32 %v2713_v39, %v2724_v44  ;;  %v7101_v39 = vpack.c.bf16 %v5724_v38, %v5723_v37 }
0x12e2   : > { %v2732_v46 = vmul.f32 1.442695, %v2729_v43  ;;  %v5734_v43 = vld [vmem:[%s8858_s3 + $0x4] ss:$0 sm:$0xff] }
0x12e3   : > { %v2730_v47 = vmul.f32 1.442695, %v2728_v45 }
0x12e4   : > { %7421 = vpow2.f32 %v2732_v46 }
0x12e5   : > { %7423 = vpow2.f32 %v2730_v47  ;;  %v3027_v47 = vadd.f32 %v5734_v43, %v3026_v41 }
0x12ee   : > { %v7422_v48 = vpop.eup %7421 }
0x12ef   : > { %v7424_v49 = vpop.eup %7423  ;;  %v2737_v50 = vsel %vm845_vm3, %v7422_v48, 0.0 }
0x12f0   : > { %2738 = vadd.xlane.f32.xlu1 %v2737_v50  ;;  %v2734_v51 = vsel %vm845_vm3, %v7424_v49, 0.0 }
0x12f1   : > { %2735 = vadd.xlane.f32.xlu0 %v2734_v51 }
0x1301   : > { %2835 = vperm.xlu1 %7364, %v5705_v52   ;;  %v3201_v52 = vsel %vm696_vm1, %v3027_v47, 0.0 }
0x1307   : > { %2830 = vperm.xlu0 %7363, %v5704_v56  }
0x137d   : > { %v2739_v60 = vpop.xlane.xlu1 %2738 }
0x137e   : > { %7425 = vrcp.f32 %v2739_v60  ;;  %v2736_v61 = vpop.xlane.xlu0 %2735 }
0x137f   : > { %7427 = vrcp.f32 %v2736_v61 }
0x1381   : > { %v2836_v30 = vpop.permute.xlu1 %2835 }
0x1386   : > { %v2831_v28 = vpop.permute.xlu0 %2830 }
0x1388   : > { %v7426_v62 = vpop.eup %7425 }
0x1389   : > { %v7428_v63 = vpop.eup %7427  ;;  %v2743_v1 = vmul.f32 %v7426_v62, %v7422_v48 }
0x138a   : > { %v2742_v0 = vmul.f32 %v7428_v63, %v7424_v49  ;;  %v3032_v49 = vadd.f32 %v6555_v40, %v5734_v43 }
0x138c   : > { %6529 = vmatprep.mubr.msk.f32.mxu1 %vm845_vm3, %v2742_v0  ;;  %v3204_v53 = vsel %vm696_vm1, %v3032_v49, 0.0 }
0x138d   : > { %6530 = vmatmul.mubr.msk.f32.vlgmr.msra.gmra.mrb[24].mxu1 %vm845_vm3, %v2743_v1 }
0x138e   : > { %6533 = vmatpush3.msra.mxu1 %v5706_v2 }
0x138f   : > { %7090 = vmatprep.subr.bf16.mxu1 %v7089_v10 }
0x1460   : > { %v6531_v23 = vpop.f32.mrb[24].mxu1 }
0x1461   : > { %v2816_v29 = vpop.f32.mrb[25].mxu1  ;;  %v2839_v32 = vmul.f32 %v6531_v23, %v2836_v30 }
0x1462   : > { %v2838_v31 = vmul.f32 %v2831_v28, %v2816_v29 }
0x1464   : > { %6534 = vmatprep.mubr.msk.f32.mxu1 %vm696_vm1, %v2838_v31 }
0x1465   : > { %6535 = vmatmul.mubr.msk.f32.vlgmr.msra.gmra.mrb[6].mxu1 %vm696_vm1, %v2839_v32 }
0x1466   : > { %7092 = vmatpush3.bf16.msra.mxu1 %v7089_v10  ;;  %6572 = vmatprep.mubr.msk.f32.mxu1 %vm448_vm0, %v8096_v17 }
0x1467   : > { %7094 = vmatprep.subr.bf16.mxu1 %v7093_v33 }
0x146a   : > { %7096 = vmatpush3.bf16.msra.mxu1 %v7093_v33 }
0x146b   : > { %7098 = vmatprep.subr.bf16.mxu1 %v7097_v36 }
0x146e   : > { %7100 = vmatpush3.bf16.msra.mxu1 %v7097_v36 }
0x146f   : > { %7102 = vmatprep.subr.bf16.mxu1 %v7101_v39 }
0x1472   : > { %7104 = vmatpush3.bf16.msra.mxu1 %v7101_v39 }
0x1475   : > { %6573 = vmatmul.mubr.msk.f32.vlgmr.msra.gmra.mrb[26].mxu1 %vm448_vm0, %v8091_v16 }
0x1548   : > { %v6574_v44 = vpop.f32.mrb[26].mxu1 }
0x1549   : > { %v3115_v45 = vadd.f32 %v6574_v44, %v5738_v42  ;;  %v3109_v46 = vpop.f32.mrb[27].mxu1 }
0x154a   : > { %v3110_v48 = vadd.f32 %v5738_v42, %v3109_v46  ;;  %v5725_v46 = vld [vmem:[%s8857_s2 + $0x500] sm:$0xff] }
0x154b   : > { %v3234_v50 = vsel %vm696_vm1, %v3115_v45, 0.0 }
0x154c   : > { %3235 = vadd.xlane.f32.xlu0 %v3234_v50  ;;  %v3231_v51 = vsel %vm696_vm1, %v3110_v48, 0.0  ;;  %v5728_v50 = vld [vmem:[%s8857_s2 + $0x518] sm:$0xff] }
0x154d   : > { %3232 = vadd.xlane.f32.xlu1 %v3231_v51 }
0x1550   : > { %3202 = vadd.xlane.f32.xlu0 %v3201_v52  ;;  %v5729_v52 = vld [vmem:[%s8857_s2 + $0x520] sm:$0xff] }
0x1551   : > { %3205 = vadd.xlane.f32.xlu1 %v3204_v53  ;;  %v5730_v53 = vld [vmem:[%s8857_s2 + $0x528] sm:$0xff] }
0x15d9   : > { %v3236_v54 = vpop.xlane.xlu0 %3235 }
0x15da   : > { %v3238_v55 = vmul.f32 0.125, %v3236_v54  ;;  %v3233_v56 = vpop.xlane.xlu1 %3232  ;;  %v7113_v54 = vpack.c.bf16 %v5730_v53, %v5729_v52 }
0x15db   : > { %v3237_v57 = vmul.f32 0.125, %v3233_v56  ;;  %v5732_v56 = vld [vmem:[%s8857_s2 + $0x538] sm:$0xff] }
0x15dc   : > { %v3240_v58 = vsub.f32 %v3115_v45, %v3238_v55  ;;  %v5731_v55 = vld [vmem:[%s8857_s2 + $0x530] sm:$0xff] }
0x15dd   : > { %v3239_v59 = vsub.f32 %v3110_v48, %v3237_v57  ;;  %v3203_v60 = vpop.xlane.xlu0 %3202  ;;  %v5727_v48 = vld [vmem:[%s8857_s2 + $0x510] sm:$0xff]  ;;  %v7117_v57 = vpack.c.bf16 %v5732_v56, %v5731_v55  ;;  %v5769_v55 = vld [vmem:[%s8857_s2 + $0x368] sm:$0xff] }
0x15de   : > { %v3207_v61 = vmul.f32 0.125, %v3203_v60  ;;  %v3206_v62 = vpop.xlane.xlu1 %3205  ;;  %v3242_v63 = vmul.f32 %v3240_v58, %v3240_v58  ;;  %v7109_v51 = vpack.c.bf16 %v5728_v50, %v5727_v48 }
0x15df   : > { %v3208_v0 = vmul.f32 0.125, %v3206_v62  ;;  %v3241_v1 = vmul.f32 %v3239_v59, %v3239_v59 }
0x15e0   : > { %v3209_v2 = vsub.f32 %v3027_v47, %v3207_v61  ;;  %v3246_v20 = vsel %vm696_vm1, %v3242_v63, 0.0  ;;  %v5726_v47 = vld [vmem:[%s8857_s2 + $0x508] sm:$0xff] }
0x15e1   : > { %v3210_v3 = vsub.f32 %v3032_v49, %v3208_v0  ;;  %3247 = vadd.xlane.f32.xlu1 %v3246_v20  ;;  %v3243_v10 = vsel %vm696_vm1, %v3241_v1, 0.0  ;;  %v7105_v49 = vpack.c.bf16 %v5726_v47, %v5725_v46  ;;  %v5766_v46 = vld [vmem:[%s8857_s2 + $0x350] sm:$0xff]  ;;  %v5767_v47 = vld [vmem:[%s8857_s2 + $0x358] sm:$0xff] }
0x15e2   : > { %3244 = vadd.xlane.f32.xlu0 %v3243_v10  ;;  %v3211_v19 = vmul.f32 %v3209_v2, %v3209_v2  ;;  %v7151_v53 = vpack.c.bf16 %v5767_v47, %v5766_v46 }
0x15e3   : > { %v3212_v5 = vmul.f32 %v3210_v3, %v3210_v3  ;;  %7106 = vmatprep.subr.bf16.mxu0 %v7105_v49 }
0x15e4   : > { %v3213_v6 = vsel %vm696_vm1, %v3211_v19, 0.0  ;;  %7108 = vmatpush3.bf16.msra.mxu0 %v7105_v49 }
0x15e5   : > { %v3216_v12 = vsel %vm696_vm1, %v3212_v5, 0.0  ;;  %7110 = vmatprep.subr.bf16.mxu0 %v7109_v51 }
0x15e6   : > { %3214 = vadd.xlane.f32.xlu0 %v3213_v6  ;;  %3217 = vadd.xlane.f32.xlu1 %v3216_v12  ;;  %v5752_v6 = vld [vmem:[%s7846_s27 + $0x48] sm:$0xff] }
0x15e8   : > { %7112 = vmatpush3.bf16.msra.mxu0 %v7109_v51 }
0x15e9   : > { %7114 = vmatprep.subr.bf16.mxu0 %v7113_v54 }
0x15ec   : > { %7116 = vmatpush3.bf16.msra.mxu0 %v7113_v54  ;;  %v5768_v54 = vld [vmem:[%s8857_s2 + $0x360] sm:$0xff] }
0x15ed   : > { %7118 = vmatprep.subr.bf16.mxu0 %v7117_v57  ;;  %v7155_v56 = vpack.c.bf16 %v5769_v55, %v5768_v54 }
0x15f0   : > { %7120 = vmatpush3.bf16.msra.mxu0 %v7117_v57  ;;  %v5770_v57 = vld [vmem:[%s8857_s2 + $0x370] sm:$0xff] }
0x15f3   : > { %6592 = vmatmul.mubr.msk.f32.vlgmr.msra.gmra.mrb[18].mxu0 %vm448_vm0, %v8091_v16 }
0x15f4   : > { %6629 = vmatprep.mubr.msk.f32.mxu0 %vm448_vm0, %v8096_v17 }
0x166e   : > { %v3248_v15 = vpop.xlane.xlu1 %3247 }
0x166f   : > { %v3250_v8 = vmul.f32 0.125, %v3248_v15  ;;  %v3245_v9 = vpop.xlane.xlu0 %3244  ;;  %v5742_v15 = vld [vmem:[%s8858_s3 + $0x14] ss:$0 sm:$0xff] }
0x1670   : > { %v3249_v11 = vmul.f32 0.125, %v3245_v9  ;;  %v5751_v9 = vld [vmem:[%s7846_s27 + $0x40] sm:$0xff] }
0x1671   : > { %v3252_v13 = vadd.f32 1e-05, %v3250_v8 }
0x1672   : > { %v3251_v25 = vadd.f32 1e-05, %v3249_v11 }
0x1673   : > { %7429 = vrsqrt.f32 %v3252_v13  ;;  %v3215_v21 = vpop.xlane.xlu0 %3214  ;;  %v3218_v22 = vpop.xlane.xlu1 %3217 }
0x1674   : > { %7431 = vrsqrt.f32 %v3251_v25  ;;  %v3219_v23 = vmul.f32 0.125, %v3215_v21  ;;  %v3220_v24 = vmul.f32 0.125, %v3218_v22 }
0x1676   : > { %v3221_v26 = vadd.f32 1e-05, %v3219_v23  ;;  %v3222_v28 = vadd.f32 1e-05, %v3220_v24 }
0x1678   : > { %7433 = vrsqrt.f32 %v3221_v26 }
0x1679   : > { %7435 = vrsqrt.f32 %v3222_v28 }
0x167d   : > { %v7430_v29 = vpop.eup %7429 }
0x167e   : > { %v7432_v30 = vpop.eup %7431  ;;  %v3256_v31 = vmul.f32 %v7430_v29, %v3240_v58  ;;  %v5753_v29 = vld [vmem:[%s8863_s8 + $0x20] sm:$0xff] }
0x167f   : > { %v3255_v32 = vmul.f32 %v7432_v30, %v3239_v59  ;;  %v5764_v30 = vld [vmem:[%s8857_s2 + $0x340] sm:$0xff] }
0x1680   : > { %v3258_v33 = vmul.f32 %v8189_v4, %v3256_v31  ;;  %v5765_v31 = vld [vmem:[%s8857_s2 + $0x348] sm:$0xff] }
0x1681   : > { %v3257_v34 = vmul.f32 %v8189_v4, %v3255_v32  ;;  %v7147_v32 = vpack.c.bf16 %v5765_v31, %v5764_v30 }
0x1682   : > { %v7434_v35 = vpop.eup %7433  ;;  %v3260_v36 = vadd.f32 %v8196_v7, %v3258_v33  ;;  %v5756_v33 = vld [vmem:[%s8857_s2 + $0x140] sm:$0xff] }
0x1683   : > { %v7436_v37 = vpop.eup %7435  ;;  %v3259_v38 = vadd.f32 %v8196_v7, %v3257_v34  ;;  %v3225_v39 = vmul.f32 %v7434_v35, %v3209_v2  ;;  %v5757_v34 = vld [vmem:[%s8857_s2 + $0x148] sm:$0xff] }
0x1684   : > { %v3226_v40 = vmul.f32 %v7436_v37, %v3210_v3  ;;  %v7131_v35 = vpack.c.bf16 %v5757_v34, %v5756_v33  ;;  %v5759_v37 = vld [vmem:[%s8857_s2 + $0x158] sm:$0xff] }
0x1685   : > { %v7121_v41 = vpack.c.bf16 %v3260_v36, %v3259_v38  ;;  %v3227_v42 = vmul.f32 %v8203_v14, %v3225_v39  ;;  %v5758_v36 = vld [vmem:[%s8857_s2 + $0x150] sm:$0xff]  ;;  %v5760_v39 = vld [vmem:[%s8857_s2 + $0x160] sm:$0xff] }
0x1686   : > { %v3228_v44 = vmul.f32 %v8203_v14, %v3226_v40  ;;  %7132 = vmatprep.subr.bf16.mxu0 %v7131_v35  ;;  %v7135_v38 = vpack.c.bf16 %v5759_v37, %v5758_v36  ;;  %v5761_v40 = vld [vmem:[%s8857_s2 + $0x168] sm:$0xff] }
0x1687   : > { %7123 = vmatprep.subr.msk.bf16.mxu1 %vm7793_vm2, %v7121_v41  ;;  %v3229_v43 = vadd.f32 %v8211_v18, %v3227_v42  ;;  %7134 = vmatpush3.bf16.msra.mxu0 %v7131_v35  ;;  %v5762_v42 = vld [vmem:[%s8857_s2 + $0x170] sm:$0xff] }
0x1688   : > { %7126 = vmatpush3.bf16.xpose.msk.msra.mxu1 %vm7793_vm2, %v7121_v41  ;;  %v3230_v45 = vadd.f32 %v8211_v18, %v3228_v44  ;;  %7136 = vmatprep.subr.bf16.mxu0 %v7135_v38  ;;  %v7139_v41 = vpack.c.bf16 %v5761_v40, %v5760_v39 }
0x1689   : > { %6598 = vmatprep.mubr.msk.f32.mxu1 %vm696_vm1, %v3229_v43  ;;  %v5763_v43 = vld [vmem:[%s8857_s2 + $0x178] sm:$0xff] }
0x168a   : > { %v7143_v44 = vpack.c.bf16 %v5763_v43, %v5762_v42 }
0x168b   : > { %7138 = vmatpush3.bf16.msra.mxu0 %v7135_v38 }
0x168c   : > { %7140 = vmatprep.subr.bf16.mxu0 %v7139_v41 }
0x168f   : > { %6599 = vmatmul.mubr.msk.f32.vlgmr.msra.gmra.mrb[28].mxu1 %vm696_vm1, %v3230_v45  ;;  %7142 = vmatpush3.bf16.msra.mxu0 %v7139_v41 }
0x1690   : > { %7144 = vmatprep.subr.bf16.mxu0 %v7143_v44 }
0x1693   : > { %7146 = vmatpush3.bf16.msra.mxu0 %v7143_v44 }
0x1696   : > { %6630 = vmatmul.mubr.msk.f32.vlgmr.msra.gmra.mrb[20].mxu0 %vm448_vm0, %v8091_v16 }
0x1697   : > { %6667 = vmatprep.mubr.msk.f32.mxu0 %vm448_vm0, %v8096_v17 }
0x16c6   : > { %v6593_v12 = vpop.f32.mrb[18].mxu0 }
0x16c7   : > { %v3192_v8 = vpop.f32.mrb[19].mxu0  ;;  %v3198_v11 = vadd.f32 %v6593_v12, %v5742_v15 }
0x16c8   : > { %v3193_v13 = vadd.f32 %v5742_v15, %v3192_v8 }
0x16ca   : > { %v7127_v25 = vpack.c.bf16 %v3198_v11, %v3193_v13 }
0x16cc   : > { %7128 = vmatprep.subr.bf16.mxu1 %v7127_v25 }
0x16cd   : > { %7130 = vmatpush3.bf16.msra.mxu1 %v7127_v25 }
0x16ce   : > { %6608 = vmatprep.subr.mxu1 %v5753_v29 }
0x1762   : > { %v6600_v58 = vpop.f32.mrb[28].mxu1 }
0x1763   : > { %v3339_v59 = vpop.f32.mrb[29].mxu1  ;;  %v3351_v60 = vsel %vm845_vm3, %v6600_v58, -inf }
0x1764   : > { %3352 = vmax.xlane.f32.xlu1 %v3351_v60  ;;  %v3348_v61 = vsel %vm845_vm3, %v3339_v59, -inf }
0x1765   : > { %3349 = vmax.xlane.f32.xlu0 %v3348_v61  ;;  %v5785_v61 = vld [vmem:[%s8858_s3 + $0xd] ss:$0 sm:$0xff] }
0x17f1   : > { %v3353_v62 = vpop.xlane.xlu1 %3352 }
0x17f2   : > { %v3355_v63 = vsub.f32 %v6600_v58, %v3353_v62  ;;  %v3350_v0 = vpop.xlane.xlu0 %3349  ;;  %v5771_v58 = vld [vmem:[%s8857_s2 + $0x378] sm:$0xff]  ;;  %v5781_v62 = vld [vmem:[%s8858_s3 + $0x5] ss:$0 sm:$0xff] }
0x17f3   : > { %v3354_v1 = vsub.f32 %v3339_v59, %v3350_v0  ;;  %v7159_v59 = vpack.c.bf16 %v5771_v58, %v5770_v57 }
0x17f4   : > { %v3358_v2 = vmul.f32 1.442695, %v3355_v63 }
0x17f5   : > { %v3356_v20 = vmul.f32 1.442695, %v3354_v1 }
0x17f6   : > { %7437 = vpow2.f32 %v3358_v2 }
0x17f7   : > { %7439 = vpow2.f32 %v3356_v20 }
0x1800   : > { %v7438_v3 = vpop.eup %7437 }
0x1801   : > { %v7440_v10 = vpop.eup %7439  ;;  %v3363_v19 = vsel %vm845_vm3, %v7438_v3, 0.0 }
0x1802   : > { %3364 = vadd.xlane.f32.xlu1 %v3363_v19  ;;  %v3360_v5 = vsel %vm845_vm3, %v7440_v10, 0.0 }
0x1803   : > { %3361 = vadd.xlane.f32.xlu0 %v3360_v5 }
0x1813   : > { %3461 = vperm.xlu1 %7364, %v5752_v6  }
0x1819   : > { %3456 = vperm.xlu0 %7363, %v5751_v9  }
0x188f   : > { %v3365_v21 = vpop.xlane.xlu1 %3364 }
0x1890   : > { %7441 = vrcp.f32 %v3365_v21  ;;  %v3362_v22 = vpop.xlane.xlu0 %3361 }
0x1891   : > { %7443 = vrcp.f32 %v3362_v22 }
0x1893   : > { %v3462_v50 = vpop.permute.xlu1 %3461 }
0x1898   : > { %v3457_v48 = vpop.permute.xlu0 %3456 }
0x189a   : > { %v7442_v23 = vpop.eup %7441 }
0x189b   : > { %v7444_v24 = vpop.eup %7443  ;;  %v3369_v28 = vmul.f32 %v7442_v23, %v7438_v3 }
0x189c   : > { %v3368_v26 = vmul.f32 %v7444_v24, %v7440_v10 }
0x189e   : > { %6605 = vmatprep.mubr.msk.f32.mxu1 %vm845_vm3, %v3368_v26 }
0x189f   : > { %6606 = vmatmul.mubr.msk.f32.vlgmr.msra.gmra.mrb[30].mxu1 %vm845_vm3, %v3369_v28 }
0x18a0   : > { %6609 = vmatpush3.msra.mxu1 %v5753_v29 }
0x18a1   : > { %7148 = vmatprep.subr.bf16.mxu1 %v7147_v32 }
0x1972   : > { %v6607_v45 = vpop.f32.mrb[30].mxu1 }
0x1973   : > { %v3442_v49 = vpop.f32.mrb[31].mxu1  ;;  %v3465_v52 = vmul.f32 %v6607_v45, %v3462_v50 }
0x1974   : > { %v3464_v51 = vmul.f32 %v3457_v48, %v3442_v49 }
0x1976   : > { %6610 = vmatprep.mubr.msk.f32.mxu1 %vm696_vm1, %v3464_v51 }
0x1977   : > { %6611 = vmatmul.mubr.msk.f32.vlgmr.msra.gmra.mrb[6].mxu1 %vm696_vm1, %v3465_v52 }
0x1978   : > { %7150 = vmatpush3.bf16.msra.mxu1 %v7147_v32  ;;  %6648 = vmatprep.mubr.msk.f32.mxu1 %vm448_vm0, %v8096_v17  ;;  %v6631_v17 = vpop.f32.mrb[20].mxu0 }
0x1979   : > { %7152 = vmatprep.subr.bf16.mxu1 %v7151_v53  ;;  %v3652_v60 = vpop.f32.mrb[21].mxu0  ;;  %v3658_v3 = vadd.f32 %v6631_v17, %v5781_v62 }
0x197a   : > { %v3653_v2 = vadd.f32 %v5781_v62, %v3652_v60  ;;  %v5773_v62 = vld [vmem:[%s8857_s2 + $0x548] sm:$0xff] }
0x197b   : > { %v3830_v5 = vsel %vm696_vm1, %v3658_v3, 0.0 }
0x197c   : > { %7154 = vmatpush3.bf16.msra.mxu1 %v7151_v53  ;;  %v3827_v19 = vsel %vm696_vm1, %v3653_v2, 0.0 }
0x197d   : > { %7156 = vmatprep.subr.bf16.mxu1 %v7155_v56 }
0x1980   : > { %7158 = vmatpush3.bf16.msra.mxu1 %v7155_v56 }
0x1981   : > { %7160 = vmatprep.subr.bf16.mxu1 %v7159_v59 }
0x1984   : > { %7162 = vmatpush3.bf16.msra.mxu1 %v7159_v59 }
0x1987   : > { %6649 = vmatmul.mubr.msk.f32.vlgmr.msra.gmra.mrb[32].mxu1 %vm448_vm0, %v8091_v16 }
0x1a5a   : > { %v6650_v63 = vpop.f32.mrb[32].mxu1 }
0x1a5b   : > { %v3741_v0 = vadd.f32 %v6650_v63, %v5785_v61  ;;  %v3735_v1 = vpop.f32.mrb[33].mxu1  ;;  %v5774_v63 = vld [vmem:[%s8857_s2 + $0x550] sm:$0xff] }
0x1a5c   : > { %v3736_v20 = vadd.f32 %v5785_v61, %v3735_v1  ;;  %v5776_v1 = vld [vmem:[%s8857_s2 + $0x560] sm:$0xff] }
0x1a5d   : > { %v3860_v10 = vsel %vm696_vm1, %v3741_v0, 0.0 }
0x1a5e   : > { %3861 = vadd.xlane.f32.xlu0 %v3860_v10  ;;  %v3857_v16 = vsel %vm696_vm1, %v3736_v20, 0.0  ;;  %v5779_v10 = vld [vmem:[%s8857_s2 + $0x578] sm:$0xff] }
0x1a5f   : > { %3858 = vadd.xlane.f32.xlu1 %v3857_v16 }
0x1a62   : > { %3828 = vadd.xlane.f32.xlu0 %v3827_v19  ;;  %v8501_v19 = vld [vmem:[%s7720_s11 + $0x8] sm:$0xff] }
0x1a63   : > { %3831 = vadd.xlane.f32.xlu1 %v3830_v5  ;;  %v8506_v5 = vld [vmem:[%s7720_s11] sm:$0xff]  ;;  %s8810_s11 = scalar_lea.hbm %s8865_s10, %s5904_s28 }
0x1aeb   : > { %v3862_v6 = vpop.xlane.xlu0 %3861 }
0x1aec   : > { %v3864_v12 = vmul.f32 0.125, %v3862_v6  ;;  %v3859_v15 = vpop.xlane.xlu1 %3858 }
0x1aed   : > { %v3863_v8 = vmul.f32 0.125, %v3859_v15 }
0x1aee   : > { %v3866_v9 = vsub.f32 %v3741_v0, %v3864_v12 }
0x1aef   : > { %v3865_v11 = vsub.f32 %v3736_v20, %v3863_v8  ;;  %v3829_v13 = vpop.xlane.xlu0 %3828 }
0x1af0   : > { %v3833_v25 = vmul.f32 0.125, %v3829_v13  ;;  %v3832_v21 = vpop.xlane.xlu1 %3831  ;;  %v3868_v22 = vmul.f32 %v3866_v9, %v3866_v9 }
0x1af1   : > { %v3834_v23 = vmul.f32 0.125, %v3832_v21  ;;  %v3867_v24 = vmul.f32 %v3865_v11, %v3865_v11 }
0x1af2   : > { %v3835_v26 = vsub.f32 %v3653_v2, %v3833_v25  ;;  %v3872_v28 = vsel %vm696_vm1, %v3868_v22, 0.0  ;;  %v5777_v2 = vld [vmem:[%s8857_s2 + $0x568] sm:$0xff] }
0x1af3   : > { %v3836_v29 = vsub.f32 %v3658_v3, %v3834_v23  ;;  %3873 = vadd.xlane.f32.xlu1 %v3872_v28  ;;  %v3869_v30 = vsel %vm696_vm1, %v3867_v24, 0.0  ;;  %v7171_v20 = vpack.c.bf16 %v5777_v2, %v5776_v1  ;;  %v5778_v3 = vld [vmem:[%s8857_s2 + $0x570] sm:$0xff] }
0x1af4   : > { %3870 = vadd.xlane.f32.xlu0 %v3869_v30  ;;  %v3837_v31 = vmul.f32 %v3835_v26, %v3835_v26  ;;  %v7175_v16 = vpack.c.bf16 %v5779_v10, %v5778_v3  ;;  %v5817_v2 = vld [vmem:[%s8857_s2 + $0x3b0] sm:$0xff] }
0x1af5   : > { %v3838_v32 = vmul.f32 %v3836_v29, %v3836_v29 }
0x1af6   : > { %v3839_v33 = vsel %vm696_vm1, %v3837_v31, 0.0  ;;  %v5789_v31 = vld [vmem:[%s8858_s3 + $0x15] ss:$0 sm:$0xff] }
0x1af7   : > { %v3842_v34 = vsel %vm696_vm1, %v3838_v32, 0.0 }
0x1af8   : > { %3840 = vadd.xlane.f32.xlu0 %v3839_v33  ;;  %3843 = vadd.xlane.f32.xlu1 %v3842_v34  ;;  %v5798_v33 = vld [vmem:[%s7846_s27 + $0x50] sm:$0xff] }
0x1b80   : > { %v3874_v35 = vpop.xlane.xlu1 %3873 }
0x1b81   : > { %v3876_v36 = vmul.f32 0.125, %v3874_v35  ;;  %v3871_v37 = vpop.xlane.xlu0 %3870 }
0x1b82   : > { %v3875_v38 = vmul.f32 0.125, %v3871_v37 }
0x1b83   : > { %v3878_v39 = vadd.f32 1e-05, %v3876_v36 }
0x1b84   : > { %v3877_v40 = vadd.f32 1e-05, %v3875_v38 }
0x1b85   : > { %7445 = vrsqrt.f32 %v3878_v39  ;;  %v3841_v41 = vpop.xlane.xlu0 %3840  ;;  %v3844_v42 = vpop.xlane.xlu1 %3843 }
0x1b86   : > { %7447 = vrsqrt.f32 %v3877_v40  ;;  %v3845_v43 = vmul.f32 0.125, %v3841_v41  ;;  %v3846_v44 = vmul.f32 0.125, %v3844_v42 }
0x1b88   : > { %v3847_v45 = vadd.f32 1e-05, %v3845_v43  ;;  %v3848_v46 = vadd.f32 1e-05, %v3846_v44  ;;  %v5800_v43 = vld [vmem:[%s8863_s8 + $0x28] sm:$0xff]  ;;  %v5811_v44 = vld [vmem:[%s8857_s2 + $0x380] sm:$0xff] }
0x1b8a   : > { %7449 = vrsqrt.f32 %v3847_v45  ;;  %v5812_v45 = vld [vmem:[%s8857_s2 + $0x388] sm:$0xff] }
0x1b8b   : > { %7451 = vrsqrt.f32 %v3848_v46  ;;  %v7205_v46 = vpack.c.bf16 %v5812_v45, %v5811_v44 }
0x1b8f   : > { %v7446_v47 = vpop.eup %7445 }
0x1b90   : > { %v7448_v48 = vpop.eup %7447  ;;  %v3882_v49 = vmul.f32 %v7446_v47, %v3866_v9  ;;  %v5803_v47 = vld [vmem:[%s8857_s2 + $0x180] sm:$0xff] }
0x1b91   : > { %v3881_v50 = vmul.f32 %v7448_v48, %v3865_v11  ;;  %v5804_v48 = vld [vmem:[%s8857_s2 + $0x188] sm:$0xff] }
0x1b92   : > { %v3884_v51 = vmul.f32 %v8189_v4, %v3882_v49  ;;  %v7189_v49 = vpack.c.bf16 %v5804_v48, %v5803_v47 }
0x1b93   : > { %v3883_v52 = vmul.f32 %v8189_v4, %v3881_v50  ;;  %v5805_v50 = vld [vmem:[%s8857_s2 + $0x190] sm:$0xff] }
0x1b94   : > { %v7450_v53 = vpop.eup %7449  ;;  %v3886_v54 = vadd.f32 %v8196_v7, %v3884_v51  ;;  %v5806_v51 = vld [vmem:[%s8857_s2 + $0x198] sm:$0xff] }
0x1b95   : > { %v7452_v55 = vpop.eup %7451  ;;  %v3885_v56 = vadd.f32 %v8196_v7, %v3883_v52  ;;  %v3851_v57 = vmul.f32 %v7450_v53, %v3835_v26  ;;  %v5772_v7 = vld [vmem:[%s8857_s2 + $0x540] sm:$0xff]  ;;  %v7193_v52 = vpack.c.bf16 %v5806_v51, %v5805_v50 }
0x1b96   : > { %v3852_v58 = vmul.f32 %v7452_v55, %v3836_v29  ;;  %v7163_v0 = vpack.c.bf16 %v5773_v62, %v5772_v7  ;;  %v5799_v29 = vld [vmem:[%s7846_s27 + $0x58] sm:$0xff]  ;;  %v5807_v53 = vld [vmem:[%s8857_s2 + $0x1a0] sm:$0xff] }
0x1b97   : > { %v7179_v59 = vpack.c.bf16 %v3886_v54, %v3885_v56  ;;  %v3853_v17 = vmul.f32 %v8203_v14, %v3851_v57  ;;  %v5808_v54 = vld [vmem:[%s8857_s2 + $0x1a8] sm:$0xff]  ;;  %v5809_v56 = vld [vmem:[%s8857_s2 + $0x1b0] sm:$0xff]  ;;  %v5810_v57 = vld [vmem:[%s8857_s2 + $0x1b8] sm:$0xff] }
0x1b98   : > { %v3854_v4 = vmul.f32 %v8203_v14, %v3852_v58  ;;  %v5775_v14 = vld [vmem:[%s8857_s2 + $0x558] sm:$0xff]  ;;  %7164 = vmatprep.subr.bf16.mxu0 %v7163_v0  ;;  %v7197_v55 = vpack.c.bf16 %v5808_v54, %v5807_v53  ;;  %v7201_v58 = vpack.c.bf16 %v5810_v57, %v5809_v56 }
0x1b99   : > { %7181 = vmatprep.subr.msk.bf16.mxu1 %vm7793_vm2, %v7179_v59  ;;  %v3855_v60 = vadd.f32 %v8211_v18, %v3853_v17  ;;  %7166 = vmatpush3.bf16.msra.mxu0 %v7163_v0  ;;  %v5813_v17 = vld [vmem:[%s8857_s2 + $0x390] sm:$0xff] }
0x1b9a   : > { %7184 = vmatpush3.bf16.xpose.msk.msra.mxu1 %vm7793_vm2, %v7179_v59  ;;  %v3856_v61 = vadd.f32 %v8211_v18, %v3854_v4  ;;  %v7167_v18 = vpack.c.bf16 %v5775_v14, %v5774_v63  ;;  %v5815_v14 = vld [vmem:[%s8857_s2 + $0x3a0] sm:$0xff] }
0x1b9b   : > { %6674 = vmatprep.mubr.msk.f32.mxu1 %vm696_vm1, %v3855_v60  ;;  %v5814_v60 = vld [vmem:[%s8857_s2 + $0x398] sm:$0xff] }
0x1b9c   : > { %7168 = vmatprep.subr.bf16.mxu0 %v7167_v18  ;;  %v7209_v0 = vpack.c.bf16 %v5814_v60, %v5813_v17 }
0x1b9d   : > { %7170 = vmatpush3.bf16.msra.mxu0 %v7167_v18  ;;  %v5816_v18 = vld [vmem:[%s8857_s2 + $0x3a8] sm:$0xff] }
0x1b9e   : > { %7172 = vmatprep.subr.bf16.mxu0 %v7171_v20  ;;  %v7213_v1 = vpack.c.bf16 %v5816_v18, %v5815_v14 }
0x1ba1   : > { %6675 = vmatmul.mubr.msk.f32.vlgmr.msra.gmra.mrb[34].mxu1 %vm696_vm1, %v3856_v61  ;;  %7174 = vmatpush3.bf16.msra.mxu0 %v7171_v20  ;;  %v5818_v20 = vld [vmem:[%s8857_s2 + $0x3b8] sm:$0xff] }
0x1ba2   : > { %7176 = vmatprep.subr.bf16.mxu0 %v7175_v16  ;;  %v7217_v3 = vpack.c.bf16 %v5818_v20, %v5817_v2 }
0x1ba5   : > { %7178 = vmatpush3.bf16.msra.mxu0 %v7175_v16 }
0x1ba6   : > { %7190 = vmatprep.subr.bf16.mxu0 %v7189_v49 }
0x1ba8   : > { %6668 = vmatmul.mubr.msk.f32.vlgmr.msra.gmra.mrb[22].mxu0 %vm448_vm0, %v8501_v19 }
0x1ba9   : > { %6705 = vmatprep.mubr.msk.f32.mxu0 %vm448_vm0, %v8506_v5  ;;  %7192 = vmatpush3.bf16.msra.mxu0 %v7189_v49 }
0x1baa   : > { %7194 = vmatprep.subr.bf16.mxu0 %v7193_v52 }
0x1bad   : > { %7196 = vmatpush3.bf16.msra.mxu0 %v7193_v52 }
0x1bae   : > { %7198 = vmatprep.subr.bf16.mxu0 %v7197_v55 }
0x1bb1   : > { %7200 = vmatpush3.bf16.msra.mxu0 %v7197_v55 }
0x1bb2   : > { %7202 = vmatprep.subr.bf16.mxu0 %v7201_v58 }
0x1bb5   : > { %7204 = vmatpush3.bf16.msra.mxu0 %v7201_v58 }
0x1bb8   : > { %6706 = vmatmul.mubr.msk.f32.vlgmr.msra.gmra.mrb[24].mxu0 %vm448_vm0, %v8501_v19 }
0x1bb9   : > { %6743 = vmatprep.mubr.msk.f32.mxu0 %vm448_vm0, %v8506_v5 }
0x1c74   : > { %v6676_v6 = vpop.f32.mrb[34].mxu1 }
0x1c75   : > { %v3965_v12 = vpop.f32.mrb[35].mxu1  ;;  %v3977_v15 = vsel %vm845_vm3, %v6676_v6, -inf }
0x1c76   : > { %3978 = vmax.xlane.f32.xlu1 %v3977_v15  ;;  %v3974_v8 = vsel %vm845_vm3, %v3965_v12, -inf }
0x1c77   : > { %3975 = vmax.xlane.f32.xlu0 %v3974_v8 }
0x1c7b   : > { %v6669_v30 = vpop.f32.mrb[22].mxu0 }
0x1c7c   : > { %v3818_v32 = vpop.f32.mrb[23].mxu0  ;;  %v3824_v34 = vadd.f32 %v6669_v30, %v5789_v31 }
0x1c7d   : > { %v3819_v35 = vadd.f32 %v5789_v31, %v3818_v32 }
0x1c7f   : > { %v7185_v36 = vpack.c.bf16 %v3824_v34, %v3819_v35 }
0x1c81   : > { %7186 = vmatprep.subr.bf16.mxu1 %v7185_v36 }
0x1c82   : > { %7188 = vmatpush3.bf16.msra.mxu1 %v7185_v36 }
0x1c83   : > { %6684 = vmatprep.subr.mxu1 %v5800_v43 }
0x1c8b   : > { %v6707_v10 = vpop.f32.mrb[24].mxu0 }
0x1c8c   : > { %v4278_v16 = vpop.f32.mrb[25].mxu0 }
0x1d03   : > { %v3979_v9 = vpop.xlane.xlu1 %3978 }
0x1d04   : > { %v3981_v11 = vsub.f32 %v6676_v6, %v3979_v9  ;;  %v3976_v13 = vpop.xlane.xlu0 %3975  ;;  %v5832_v6 = vld [vmem:[%s8858_s3 + $0xe] ss:$0 sm:$0xff] }
0x1d05   : > { %v3980_v25 = vsub.f32 %v3965_v12, %v3976_v13  ;;  %v5828_v12 = vld [vmem:[%s8858_s3 + $0x6] ss:$0 sm:$0xff] }
0x1d06   : > { %v3984_v21 = vmul.f32 1.442695, %v3981_v11  ;;  %v4279_v11 = vadd.f32 %v5828_v12, %v4278_v16 }
0x1d07   : > { %v3982_v22 = vmul.f32 1.442695, %v3980_v25  ;;  %v4284_v25 = vadd.f32 %v6707_v10, %v5828_v12  ;;  %v8613_v10 = vld [vmem:[%s8859_s4] ss:$0 sm:$0xff] }
0x1d08   : > { %7453 = vpow2.f32 %v3984_v21 }
0x1d09   : > { %7455 = vpow2.f32 %v3982_v22 }
0x1d12   : > { %v7454_v23 = vpop.eup %7453 }
0x1d13   : > { %v7456_v24 = vpop.eup %7455  ;;  %v3989_v26 = vsel %vm845_vm3, %v7454_v23, 0.0 }
0x1d14   : > { %3990 = vadd.xlane.f32.xlu1 %v3989_v26  ;;  %v3986_v28 = vsel %vm845_vm3, %v7456_v24, 0.0 }
0x1d15   : > { %3987 = vadd.xlane.f32.xlu0 %v3986_v28 }
0x1d25   : > { %4087 = vperm.xlu1 %7364, %v5799_v29  }
0x1d2b   : > { %4082 = vperm.xlu0 %7363, %v5798_v33  }
0x1da1   : > { %v3991_v37 = vpop.xlane.xlu1 %3990 }
0x1da2   : > { %7457 = vrcp.f32 %v3991_v37  ;;  %v3988_v38 = vpop.xlane.xlu0 %3987 }
0x1da3   : > { %7459 = vrcp.f32 %v3988_v38 }
0x1da5   : > { %v4088_v7 = vpop.permute.xlu1 %4087 }
0x1daa   : > { %v4083_v4 = vpop.permute.xlu0 %4082 }
0x1dac   : > { %v7458_v39 = vpop.eup %7457 }
0x1dad   : > { %v7460_v40 = vpop.eup %7459  ;;  %v3995_v42 = vmul.f32 %v7458_v39, %v7454_v23  ;;  %v4453_v23 = vsel %vm696_vm1, %v4279_v11, 0.0 }
0x1dae   : > { %v3994_v41 = vmul.f32 %v7460_v40, %v7456_v24  ;;  %v4456_v24 = vsel %vm696_vm1, %v4284_v25, 0.0 }
0x1db0   : > { %6681 = vmatprep.mubr.msk.f32.mxu1 %vm845_vm3, %v3994_v41 }
0x1db1   : > { %6682 = vmatmul.mubr.msk.f32.vlgmr.msra.gmra.mrb[36].mxu1 %vm845_vm3, %v3995_v42 }
0x1db2   : > { %6685 = vmatpush3.msra.mxu1 %v5800_v43 }
0x1db3   : > { %7206 = vmatprep.subr.bf16.mxu1 %v7205_v46 }
0x1e84   : > { %v6683_v59 = vpop.f32.mrb[36].mxu1 }
0x1e85   : > { %v4068_v61 = vpop.f32.mrb[37].mxu1  ;;  %v4091_v63 = vmul.f32 %v6683_v59, %v4088_v7 }
0x1e86   : > { %v4090_v62 = vmul.f32 %v4083_v4, %v4068_v61  ;;  %v8599_v61 = vld [vmem:[%s8861_s6] ss:$0 sm:$0xff] }
0x1e88   : > { %6686 = vmatprep.mubr.msk.f32.mxu1 %vm696_vm1, %v4090_v62 }
0x1e89   : > { %6687 = vmatmul.mubr.msk.f32.vlgmr.msra.gmra.mrb[6].mxu1 %vm696_vm1, %v4091_v63 }
0x1e8a   : > { %7208 = vmatpush3.bf16.msra.mxu1 %v7205_v46  ;;  %6724 = vmatprep.mubr.msk.f32.mxu1 %vm448_vm0, %v8506_v5 }
0x1e8b   : > { %7210 = vmatprep.subr.bf16.mxu1 %v7209_v0 }
0x1e8e   : > { %7212 = vmatpush3.bf16.msra.mxu1 %v7209_v0  ;;  %v8606_v0 = vld [vmem:[%s8862_s7] ss:$0 sm:$0xff] }
0x1e8f   : > { %7214 = vmatprep.subr.bf16.mxu1 %v7213_v1 }
0x1e92   : > { %7216 = vmatpush3.bf16.msra.mxu1 %v7213_v1 }
0x1e93   : > { %7218 = vmatprep.subr.bf16.mxu1 %v7217_v3 }
0x1e96   : > { %7220 = vmatpush3.bf16.msra.mxu1 %v7217_v3 }
0x1e99   : > { %6725 = vmatmul.mubr.msk.f32.vlgmr.msra.gmra.mrb[38].mxu1 %vm448_vm0, %v8501_v19 }
0x1f6c   : > { %v6726_v15 = vpop.f32.mrb[38].mxu1 }
0x1f6d   : > { %v4367_v8 = vadd.f32 %v6726_v15, %v5832_v6  ;;  %v4361_v9 = vpop.f32.mrb[39].mxu1 }
0x1f6e   : > { %v4362_v13 = vadd.f32 %v5832_v6, %v4361_v9  ;;  %v8621_v6 = vld [vmem:[%s8860_s5] ss:$0 sm:$0xff] }
0x1f6f   : > { %v4486_v21 = vsel %vm696_vm1, %v4367_v8, 0.0  ;;  %v5819_v9 = vld [vmem:[%s8857_s2 + $0x580] sm:$0xff] }
0x1f70   : > { %4487 = vadd.xlane.f32.xlu0 %v4486_v21  ;;  %v4483_v22 = vsel %vm696_vm1, %v4362_v13, 0.0  ;;  %v5822_v21 = vld [vmem:[%s8857_s2 + $0x598] sm:$0xff] }
0x1f71   : > { %4484 = vadd.xlane.f32.xlu1 %v4483_v22 }
0x1f74   : > { %4454 = vadd.xlane.f32.xlu0 %v4453_v23  ;;  %v5823_v23 = vld [vmem:[%s8857_s2 + $0x5a0] sm:$0xff] }
0x1f75   : > { %4457 = vadd.xlane.f32.xlu1 %v4456_v24  ;;  %v5824_v24 = vld [vmem:[%s8857_s2 + $0x5a8] sm:$0xff] }
0x1ffd   : > { %v4488_v26 = vpop.xlane.xlu0 %4487 }
0x1ffe   : > { %v4490_v28 = vmul.f32 0.125, %v4488_v26  ;;  %v4485_v29 = vpop.xlane.xlu1 %4484  ;;  %v7229_v26 = vpack.c.bf16 %v5824_v24, %v5823_v23 }
0x1fff   : > { %v4489_v30 = vmul.f32 0.125, %v4485_v29  ;;  %v5826_v29 = vld [vmem:[%s8857_s2 + $0x5b8] sm:$0xff] }
0x2000   : > { %v4492_v31 = vsub.f32 %v4367_v8, %v4490_v28  ;;  %v5825_v28 = vld [vmem:[%s8857_s2 + $0x5b0] sm:$0xff] }
0x2001   : > { %v4491_v32 = vsub.f32 %v4362_v13, %v4489_v30  ;;  %v4455_v33 = vpop.xlane.xlu0 %4454  ;;  %v5821_v13 = vld [vmem:[%s8857_s2 + $0x590] sm:$0xff]  ;;  %v7233_v30 = vpack.c.bf16 %v5826_v29, %v5825_v28  ;;  %v5863_v28 = vld [vmem:[%s8857_s2 + $0x3e8] sm:$0xff] }
0x2002   : > { %v4459_v34 = vmul.f32 0.125, %v4455_v33  ;;  %v4458_v35 = vpop.xlane.xlu1 %4457  ;;  %v4494_v36 = vmul.f32 %v4492_v31, %v4492_v31  ;;  %v7225_v22 = vpack.c.bf16 %v5822_v21, %v5821_v13 }
0x2003   : > { %v4460_v37 = vmul.f32 0.125, %v4458_v35  ;;  %v4493_v38 = vmul.f32 %v4491_v32, %v4491_v32 }
0x2004   : > { %v4461_v39 = vsub.f32 %v4279_v11, %v4459_v34  ;;  %v4498_v40 = vsel %vm696_vm1, %v4494_v36, 0.0  ;;  %v5820_v11 = vld [vmem:[%s8857_s2 + $0x588] sm:$0xff] }
0x2005   : > { %v4462_v41 = vsub.f32 %v4284_v25, %v4460_v37  ;;  %4499 = vadd.xlane.f32.xlu1 %v4498_v40  ;;  %v4495_v42 = vsel %vm696_vm1, %v4493_v38, 0.0  ;;  %v7221_v25 = vpack.c.bf16 %v5820_v11, %v5819_v9  ;;  %v5860_v9 = vld [vmem:[%s8857_s2 + $0x3d0] sm:$0xff]  ;;  %v5861_v11 = vld [vmem:[%s8857_s2 + $0x3d8] sm:$0xff] }
0x2006   : > { %4496 = vadd.xlane.f32.xlu0 %v4495_v42  ;;  %v4463_v43 = vmul.f32 %v4461_v39, %v4461_v39  ;;  %v7267_v24 = vpack.c.bf16 %v5861_v11, %v5860_v9 }
0x2007   : > { %v4464_v44 = vmul.f32 %v4462_v41, %v4462_v41  ;;  %7222 = vmatprep.subr.bf16.mxu0 %v7221_v25 }
0x2008   : > { %v4465_v45 = vsel %vm696_vm1, %v4463_v43, 0.0  ;;  %7224 = vmatpush3.bf16.msra.mxu0 %v7221_v25 }
0x2009   : > { %v4468_v46 = vsel %vm696_vm1, %v4464_v44, 0.0  ;;  %7226 = vmatprep.subr.bf16.mxu0 %v7225_v22 }
0x200a   : > { %4466 = vadd.xlane.f32.xlu0 %v4465_v45  ;;  %4469 = vadd.xlane.f32.xlu1 %v4468_v46  ;;  %v5846_v45 = vld [vmem:[%s7846_s27 + $0x68] sm:$0xff] }
0x200c   : > { %7228 = vmatpush3.bf16.msra.mxu0 %v7225_v22 }
0x200d   : > { %7230 = vmatprep.subr.bf16.mxu0 %v7229_v26 }
0x2010   : > { %7232 = vmatpush3.bf16.msra.mxu0 %v7229_v26  ;;  %v5862_v26 = vld [vmem:[%s8857_s2 + $0x3e0] sm:$0xff] }
0x2011   : > { %7234 = vmatprep.subr.bf16.mxu0 %v7233_v30  ;;  %v7271_v29 = vpack.c.bf16 %v5863_v28, %v5862_v26 }
0x2014   : > { %7236 = vmatpush3.bf16.msra.mxu0 %v7233_v30  ;;  %v5864_v30 = vld [vmem:[%s8857_s2 + $0x3f0] sm:$0xff] }
0x2017   : > { %6744 = vmatmul.mubr.msk.f32.vlgmr.msra.gmra.mrb[26].mxu0 %vm448_vm0, %v8501_v19 }
0x2018   : > { %6781 = vmatprep.mubr.msk.f32.mxu0 %vm448_vm0, %v8506_v5 }
0x2092   : > { %v4500_v47 = vpop.xlane.xlu1 %4499 }
0x2093   : > { %v4502_v48 = vmul.f32 0.125, %v4500_v47  ;;  %v4497_v49 = vpop.xlane.xlu0 %4496  ;;  %v5836_v47 = vld [vmem:[%s8858_s3 + $0x16] ss:$0 sm:$0xff] }
0x2094   : > { %v4501_v50 = vmul.f32 0.125, %v4497_v49  ;;  %v5845_v49 = vld [vmem:[%s7846_s27 + $0x60] sm:$0xff] }
0x2095   : > { %v4504_v51 = vadd.f32 1e-05, %v4502_v48 }
0x2096   : > { %v4503_v52 = vadd.f32 1e-05, %v4501_v50 }
0x2097   : > { %7461 = vrsqrt.f32 %v4504_v51  ;;  %v4467_v53 = vpop.xlane.xlu0 %4466  ;;  %v4470_v54 = vpop.xlane.xlu1 %4469 }
0x2098   : > { %7463 = vrsqrt.f32 %v4503_v52  ;;  %v4471_v55 = vmul.f32 0.125, %v4467_v53  ;;  %v4472_v56 = vmul.f32 0.125, %v4470_v54 }
0x209a   : > { %v4473_v57 = vadd.f32 1e-05, %v4471_v55  ;;  %v4474_v58 = vadd.f32 1e-05, %v4472_v56 }
0x209c   : > { %7465 = vrsqrt.f32 %v4473_v57 }
0x209d   : > { %7467 = vrsqrt.f32 %v4474_v58 }
0x20a1   : > { %v7462_v59 = vpop.eup %7461 }
0x20a2   : > { %v7464_v17 = vpop.eup %7463  ;;  %v4508_v60 = vmul.f32 %v7462_v59, %v4492_v31  ;;  %v5847_v59 = vld [vmem:[%s8863_s8 + $0x30] sm:$0xff] }
0x20a3   : > { %v4507_v4 = vmul.f32 %v7464_v17, %v4491_v32  ;;  %v5858_v17 = vld [vmem:[%s8857_s2 + $0x3c0] sm:$0xff] }
0x20a4   : > { %v4510_v7 = vmul.f32 %v8599_v61, %v4508_v60  ;;  %v5859_v60 = vld [vmem:[%s8857_s2 + $0x3c8] sm:$0xff] }
0x20a5   : > { %v4509_v62 = vmul.f32 %v8599_v61, %v4507_v4  ;;  %v7263_v4 = vpack.c.bf16 %v5859_v60, %v5858_v17 }
0x20a6   : > { %v7466_v63 = vpop.eup %7465  ;;  %v4512_v14 = vadd.f32 %v8606_v0, %v4510_v7  ;;  %v5850_v7 = vld [vmem:[%s8857_s2 + $0x1c0] sm:$0xff] }
0x20a7   : > { %v7468_v18 = vpop.eup %7467  ;;  %v4511_v1 = vadd.f32 %v8606_v0, %v4509_v62  ;;  %v4477_v2 = vmul.f32 %v7466_v63, %v4461_v39  ;;  %v5851_v62 = vld [vmem:[%s8857_s2 + $0x1c8] sm:$0xff] }
0x20a8   : > { %v4478_v20 = vmul.f32 %v7468_v18, %v4462_v41  ;;  %v7247_v63 = vpack.c.bf16 %v5851_v62, %v5850_v7  ;;  %v5853_v18 = vld [vmem:[%s8857_s2 + $0x1d8] sm:$0xff] }
0x20a9   : > { %v7237_v3 = vpack.c.bf16 %v4512_v14, %v4511_v1  ;;  %v4479_v16 = vmul.f32 %v8613_v10, %v4477_v2  ;;  %v5852_v14 = vld [vmem:[%s8857_s2 + $0x1d0] sm:$0xff]  ;;  %v5854_v2 = vld [vmem:[%s8857_s2 + $0x1e0] sm:$0xff] }
0x20aa   : > { %v4480_v15 = vmul.f32 %v8613_v10, %v4478_v20  ;;  %7248 = vmatprep.subr.bf16.mxu0 %v7247_v63  ;;  %v7251_v1 = vpack.c.bf16 %v5853_v18, %v5852_v14  ;;  %v5855_v20 = vld [vmem:[%s8857_s2 + $0x1e8] sm:$0xff] }
0x20ab   : > { %7239 = vmatprep.subr.msk.bf16.mxu1 %vm7793_vm2, %v7237_v3  ;;  %v4481_v12 = vadd.f32 %v8621_v6, %v4479_v16  ;;  %7250 = vmatpush3.bf16.msra.mxu0 %v7247_v63  ;;  %v5856_v16 = vld [vmem:[%s8857_s2 + $0x1f0] sm:$0xff] }
0x20ac   : > { %7242 = vmatpush3.bf16.xpose.msk.msra.mxu1 %vm7793_vm2, %v7237_v3  ;;  %v4482_v8 = vadd.f32 %v8621_v6, %v4480_v15  ;;  %7252 = vmatprep.subr.bf16.mxu0 %v7251_v1  ;;  %v7255_v3 = vpack.c.bf16 %v5855_v20, %v5854_v2 }
0x20ad   : > { %6750 = vmatprep.mubr.msk.f32.mxu1 %vm696_vm1, %v4481_v12  ;;  %v5857_v12 = vld [vmem:[%s8857_s2 + $0x1f8] sm:$0xff] }
0x20ae   : > { %v7259_v15 = vpack.c.bf16 %v5857_v12, %v5856_v16 }
0x20af   : > { %7254 = vmatpush3.bf16.msra.mxu0 %v7251_v1 }
0x20b0   : > { %7256 = vmatprep.subr.bf16.mxu0 %v7255_v3 }
0x20b3   : > { %6751 = vmatmul.mubr.msk.f32.vlgmr.msra.gmra.mrb[40].mxu1 %vm696_vm1, %v4482_v8  ;;  %7258 = vmatpush3.bf16.msra.mxu0 %v7255_v3 }
0x20b4   : > { %7260 = vmatprep.subr.bf16.mxu0 %v7259_v15 }
0x20b7   : > { %7262 = vmatpush3.bf16.msra.mxu0 %v7259_v15 }
0x20ba   : > { %6782 = vmatmul.mubr.msk.f32.vlgmr.msra.gmra.mrb[28].mxu0 %vm448_vm0, %v8501_v19 }
0x20bb   : > { %6819 = vmatprep.mubr.msk.f32.mxu0 %vm448_vm0, %v8506_v5 }
0x20ea   : > { %v6745_v46 = vpop.f32.mrb[26].mxu0 }
0x20eb   : > { %v4444_v48 = vpop.f32.mrb[27].mxu0  ;;  %v4450_v50 = vadd.f32 %v6745_v46, %v5836_v47 }
0x20ec   : > { %v4445_v51 = vadd.f32 %v5836_v47, %v4444_v48 }
0x20ee   : > { %v7243_v52 = vpack.c.bf16 %v4450_v50, %v4445_v51 }
0x20f0   : > { %7244 = vmatprep.subr.bf16.mxu1 %v7243_v52 }
0x20f1   : > { %7246 = vmatpush3.bf16.msra.mxu1 %v7243_v52 }
0x20f2   : > { %6760 = vmatprep.subr.mxu1 %v5847_v59 }
0x2186   : > { %v6752_v31 = vpop.f32.mrb[40].mxu1 }
0x2187   : > { %v4591_v32 = vpop.f32.mrb[41].mxu1  ;;  %v4603_v33 = vsel %vm845_vm3, %v6752_v31, -inf }
0x2188   : > { %4604 = vmax.xlane.f32.xlu1 %v4603_v33  ;;  %v4600_v34 = vsel %vm845_vm3, %v4591_v32, -inf }
0x2189   : > { %4601 = vmax.xlane.f32.xlu0 %v4600_v34  ;;  %v5879_v34 = vld [vmem:[%s8858_s3 + $0xf] ss:$0 sm:$0xff] }
0x2215   : > { %v4605_v35 = vpop.xlane.xlu1 %4604 }
0x2216   : > { %v4607_v36 = vsub.f32 %v6752_v31, %v4605_v35  ;;  %v4602_v37 = vpop.xlane.xlu0 %4601  ;;  %v5865_v31 = vld [vmem:[%s8857_s2 + $0x3f8] sm:$0xff]  ;;  %v5875_v35 = vld [vmem:[%s8858_s3 + $0x7] ss:$0 sm:$0xff] }
0x2217   : > { %v4606_v38 = vsub.f32 %v4591_v32, %v4602_v37  ;;  %v7275_v32 = vpack.c.bf16 %v5865_v31, %v5864_v30 }
0x2218   : > { %v4610_v39 = vmul.f32 1.442695, %v4607_v36 }
0x2219   : > { %v4608_v40 = vmul.f32 1.442695, %v4606_v38 }
0x221a   : > { %7469 = vpow2.f32 %v4610_v39 }
0x221b   : > { %7471 = vpow2.f32 %v4608_v40 }
0x2224   : > { %v7470_v41 = vpop.eup %7469 }
0x2225   : > { %v7472_v42 = vpop.eup %7471  ;;  %v4615_v43 = vsel %vm845_vm3, %v7470_v41, 0.0 }
0x2226   : > { %4616 = vadd.xlane.f32.xlu1 %v4615_v43  ;;  %v4612_v44 = vsel %vm845_vm3, %v7472_v42, 0.0 }
0x2227   : > { %4613 = vadd.xlane.f32.xlu0 %v4612_v44 }
0x2237   : > { %4713 = vperm.xlu1 %7364, %v5846_v45  }
0x223d   : > { %4708 = vperm.xlu0 %7363, %v5845_v49  }
0x22b3   : > { %v4617_v53 = vpop.xlane.xlu1 %4616 }
0x22b4   : > { %7473 = vrcp.f32 %v4617_v53  ;;  %v4614_v54 = vpop.xlane.xlu0 %4613 }
0x22b5   : > { %7475 = vrcp.f32 %v4614_v54 }
0x22b7   : > { %v4714_v21 = vpop.permute.xlu1 %4713 }
0x22bc   : > { %v4709_v13 = vpop.permute.xlu0 %4708 }
0x22be   : > { %v7474_v55 = vpop.eup %7473 }
0x22bf   : > { %v7476_v56 = vpop.eup %7475  ;;  %v4621_v58 = vmul.f32 %v7474_v55, %v7470_v41 }
0x22c0   : > { %v4620_v57 = vmul.f32 %v7476_v56, %v7472_v42 }
0x22c2   : > { %6757 = vmatprep.mubr.msk.f32.mxu1 %vm845_vm3, %v4620_v57 }
0x22c3   : > { %6758 = vmatmul.mubr.msk.f32.vlgmr.msra.gmra.mrb[42].mxu1 %vm845_vm3, %v4621_v58 }
0x22c4   : > { %6761 = vmatpush3.msra.mxu1 %v5847_v59 }
0x22c5   : > { %7264 = vmatprep.subr.bf16.mxu1 %v7263_v4 }
0x2396   : > { %v6759_v8 = vpop.f32.mrb[42].mxu1 }
0x2397   : > { %v4694_v25 = vpop.f32.mrb[43].mxu1  ;;  %v4717_v23 = vmul.f32 %v6759_v8, %v4714_v21 }
0x2398   : > { %v4716_v22 = vmul.f32 %v4709_v13, %v4694_v25 }
0x239a   : > { %6762 = vmatprep.mubr.msk.f32.mxu1 %vm696_vm1, %v4716_v22 }
0x239b   : > { %6763 = vmatmul.mubr.msk.f32.vlgmr.msra.gmra.mrb[6].mxu1 %vm696_vm1, %v4717_v23 }
0x239c   : > { %7266 = vmatpush3.bf16.msra.mxu1 %v7263_v4  ;;  %6800 = vmatprep.mubr.msk.f32.mxu1 %vm448_vm0, %v8506_v5  ;;  %v6783_v5 = vpop.f32.mrb[28].mxu0 }
0x239d   : > { %7268 = vmatprep.subr.bf16.mxu1 %v7267_v24  ;;  %v4904_v33 = vpop.f32.mrb[29].mxu0  ;;  %v4910_v41 = vadd.f32 %v6783_v5, %v5875_v35 }
0x239e   : > { %v4905_v39 = vadd.f32 %v5875_v35, %v4904_v33 }
0x239f   : > { %v5082_v45 = vsel %vm696_vm1, %v4910_v41, 0.0 }
0x23a0   : > { %7270 = vmatpush3.bf16.msra.mxu1 %v7267_v24  ;;  %v5079_v44 = vsel %vm696_vm1, %v4905_v39, 0.0 }
0x23a1   : > { %7272 = vmatprep.subr.bf16.mxu1 %v7271_v29 }
0x23a4   : > { %7274 = vmatpush3.bf16.msra.mxu1 %v7271_v29 }
0x23a5   : > { %7276 = vmatprep.subr.bf16.mxu1 %v7275_v32 }
0x23a8   : > { %7278 = vmatpush3.bf16.msra.mxu1 %v7275_v32 }
0x23ab   : > { %6801 = vmatmul.mubr.msk.f32.vlgmr.msra.gmra.mrb[44].mxu1 %vm448_vm0, %v8501_v19 }
0x247e   : > { %v6802_v36 = vpop.f32.mrb[44].mxu1 }
0x247f   : > { %v4993_v37 = vadd.f32 %v6802_v36, %v5879_v34  ;;  %v4987_v38 = vpop.f32.mrb[45].mxu1  ;;  %v5867_v36 = vld [vmem:[%s8857_s2 + $0x5c8] sm:$0xff] }
0x2480   : > { %v4988_v40 = vadd.f32 %v5879_v34, %v4987_v38  ;;  %v5870_v38 = vld [vmem:[%s8857_s2 + $0x5e0] sm:$0xff] }
0x2481   : > { %v5112_v42 = vsel %vm696_vm1, %v4993_v37, 0.0 }
0x2482   : > { %5113 = vadd.xlane.f32.xlu0 %v5112_v42  ;;  %v5109_v43 = vsel %vm696_vm1, %v4988_v40, 0.0  ;;  %v5873_v42 = vld [vmem:[%s8857_s2 + $0x5f8] sm:$0xff] }
0x2483   : > { %5110 = vadd.xlane.f32.xlu1 %v5109_v43 }
0x2486   : > { %5080 = vadd.xlane.f32.xlu0 %v5079_v44 }
0x2487   : > { %5083 = vadd.xlane.f32.xlu1 %v5082_v45 }
0x250f   : > { %v5114_v46 = vpop.xlane.xlu0 %5113 }
0x2510   : > { %v5116_v47 = vmul.f32 0.125, %v5114_v46  ;;  %v5111_v48 = vpop.xlane.xlu1 %5110 }
0x2511   : > { %v5115_v49 = vmul.f32 0.125, %v5111_v48 }
0x2512   : > { %v5118_v50 = vsub.f32 %v4993_v37, %v5116_v47 }
0x2513   : > { %v5117_v51 = vsub.f32 %v4988_v40, %v5115_v49  ;;  %v5081_v52 = vpop.xlane.xlu0 %5080 }
0x2514   : > { %v5085_v53 = vmul.f32 0.125, %v5081_v52  ;;  %v5084_v54 = vpop.xlane.xlu1 %5083  ;;  %v5120_v55 = vmul.f32 %v5118_v50, %v5118_v50 }
0x2515   : > { %v5086_v56 = vmul.f32 0.125, %v5084_v54  ;;  %v5119_v57 = vmul.f32 %v5117_v51, %v5117_v51 }
0x2516   : > { %v5087_v58 = vsub.f32 %v4905_v39, %v5085_v53  ;;  %v5124_v59 = vsel %vm696_vm1, %v5120_v55, 0.0  ;;  %v5871_v39 = vld [vmem:[%s8857_s2 + $0x5e8] sm:$0xff] }
0x2517   : > { %v5088_v17 = vsub.f32 %v4910_v41, %v5086_v56  ;;  %5125 = vadd.xlane.f32.xlu1 %v5124_v59  ;;  %v5121_v60 = vsel %vm696_vm1, %v5119_v57, 0.0  ;;  %v7287_v40 = vpack.c.bf16 %v5871_v39, %v5870_v38  ;;  %v5872_v41 = vld [vmem:[%s8857_s2 + $0x5f0] sm:$0xff]  ;;  %v5893_v57 = vld [vmem:[%s7846_s27 + $0x78] sm:$0xff] }
0x2518   : > { %5122 = vadd.xlane.f32.xlu0 %v5121_v60  ;;  %v5089_v4 = vmul.f32 %v5087_v58, %v5087_v58  ;;  %v7291_v43 = vpack.c.bf16 %v5873_v42, %v5872_v41  ;;  %v5883_v59 = vld [vmem:[%s8858_s3 + $0x17] ss:$0 sm:$0xff] }
0x2519   : > { %v5090_v7 = vmul.f32 %v5088_v17, %v5088_v17  ;;  %v5892_v60 = vld [vmem:[%s7846_s27 + $0x70] sm:$0xff]  ;;  %s8814_s27 = scalar_lea.sflag [#allocation3], %s365_s18 }
0x251a   : > { %v5091_v62 = vsel %vm696_vm1, %v5089_v4, 0.0 }
0x251b   : > { %v5094_v63 = vsel %vm696_vm1, %v5090_v7, 0.0 }
0x251c   : > { %5092 = vadd.xlane.f32.xlu0 %v5091_v62  ;;  %5095 = vadd.xlane.f32.xlu1 %v5094_v63 }
0x25a4   : > { %v5126_v14 = vpop.xlane.xlu1 %5125 }
0x25a5   : > { %v5128_v18 = vmul.f32 0.125, %v5126_v14  ;;  %v5123_v1 = vpop.xlane.xlu0 %5122 }
0x25a6   : > { %v5127_v2 = vmul.f32 0.125, %v5123_v1 }
0x25a7   : > { %v5130_v20 = vadd.f32 1e-05, %v5128_v18 }
0x25a8   : > { %v5129_v3 = vadd.f32 1e-05, %v5127_v2 }
0x25a9   : > { %7477 = vrsqrt.f32 %v5130_v20  ;;  %v5093_v16 = vpop.xlane.xlu0 %5092  ;;  %v5096_v12 = vpop.xlane.xlu1 %5095 }
0x25aa   : > { %7479 = vrsqrt.f32 %v5129_v3  ;;  %v5097_v15 = vmul.f32 0.125, %v5093_v16  ;;  %v5098_v8 = vmul.f32 0.125, %v5096_v12  ;;  %v5894_v3 = vld [vmem:[%s8863_s8 + $0x38] sm:$0xff] }
0x25ac   : > { %v5099_v9 = vadd.f32 1e-05, %v5097_v15  ;;  %v5100_v11 = vadd.f32 1e-05, %v5098_v8 }
0x25ae   : > { %7481 = vrsqrt.f32 %v5099_v9 }
0x25af   : > { %7483 = vrsqrt.f32 %v5100_v11 }
0x25b3   : > { %v7478_v13 = vpop.eup %7477 }
0x25b4   : > { %v7480_v25 = vpop.eup %7479  ;;  %v5134_v21 = vmul.f32 %v7478_v13, %v5118_v50  ;;  %v5532_v13 = vld [vmem:[%s8864_s9] ss:$0 sm:$0xff] }
0x25b5   : > { %v5133_v22 = vmul.f32 %v7480_v25, %v5117_v51 }
0x25b6   : > { %v5136_v23 = vmul.f32 %v8599_v61, %v5134_v21 }
0x25b7   : > { %v5135_v24 = vmul.f32 %v8599_v61, %v5133_v22 }
0x25b8   : > { %v7482_v26 = vpop.eup %7481  ;;  %v5138_v28 = vadd.f32 %v8606_v0, %v5136_v23 }
0x25b9   : > { %v7484_v29 = vpop.eup %7483  ;;  %v5137_v30 = vadd.f32 %v8606_v0, %v5135_v24  ;;  %v5103_v31 = vmul.f32 %v7482_v26, %v5087_v58  ;;  %v5866_v0 = vld [vmem:[%s8857_s2 + $0x5c0] sm:$0xff] }
0x25ba   : > { %v5104_v32 = vmul.f32 %v7484_v29, %v5088_v17  ;;  %v7279_v37 = vpack.c.bf16 %v5867_v36, %v5866_v0 }
0x25bb   : > { %v7295_v5 = vpack.c.bf16 %v5138_v28, %v5137_v30  ;;  %v5105_v33 = vmul.f32 %v8613_v10, %v5103_v31 }
0x25bc   : > { %v5106_v61 = vmul.f32 %v8613_v10, %v5104_v32  ;;  %v5869_v10 = vld [vmem:[%s8857_s2 + $0x5d8] sm:$0xff]  ;;  %7280 = vmatprep.subr.bf16.mxu0 %v7279_v37 }
0x25bd   : > { %7297 = vmatprep.subr.msk.bf16.mxu1 %vm7793_vm2, %v7295_v5  ;;  %v5107_v34 = vadd.f32 %v8621_v6, %v5105_v33  ;;  %7282 = vmatpush3.bf16.msra.mxu0 %v7279_v37 }
0x25be   : > { %7300 = vmatpush3.bf16.xpose.msk.msra.mxu1 %vm7793_vm2, %v7295_v5  ;;  %v5108_v35 = vadd.f32 %v8621_v6, %v5106_v61  ;;  %v7283_v6 = vpack.c.bf16 %v5869_v10, %v5868_v27 }
0x25bf   : > { %6826 = vmatprep.mubr.msk.f32.mxu1 %vm696_vm1, %v5107_v34 }
0x25c0   : > { %7284 = vmatprep.subr.bf16.mxu0 %v7283_v6 }
0x25c1   : > { %7286 = vmatpush3.bf16.msra.mxu0 %v7283_v6 }
0x25c2   : > { %7288 = vmatprep.subr.bf16.mxu0 %v7287_v40 }
0x25c5   : > { %6827 = vmatmul.mubr.msk.f32.vlgmr.msra.gmra.mrb[46].mxu1 %vm696_vm1, %v5108_v35  ;;  %7290 = vmatpush3.bf16.msra.mxu0 %v7287_v40 }
0x25c6   : > { %7292 = vmatprep.subr.bf16.mxu0 %v7291_v43 }
0x25c9   : > { %7294 = vmatpush3.bf16.msra.mxu0 %v7291_v43 }
0x25cc   : > { %6820 = vmatmul.mubr.msk.f32.vlgmr.msra.gmra.mrb[30].mxu0 %vm448_vm0, %v8501_v19 }
0x2698   : > { %v6828_v44 = vpop.f32.mrb[46].mxu1 }
0x2699   : > { %v5217_v45 = vpop.f32.mrb[47].mxu1  ;;  %v5229_v46 = vsel %vm845_vm3, %v6828_v44, -inf }
0x269a   : > { %5230 = vmax.xlane.f32.xlu1 %v5229_v46  ;;  %v5226_v47 = vsel %vm845_vm3, %v5217_v45, -inf }
0x269b   : > { %5227 = vmax.xlane.f32.xlu0 %v5226_v47 }
0x269f   : > { %v6821_v58 = vpop.f32.mrb[30].mxu0 }
0x26a0   : > { %v5070_v17 = vpop.f32.mrb[31].mxu0  ;;  %v5076_v4 = vadd.f32 %v6821_v58, %v5883_v59 }
0x26a1   : > { %v5071_v7 = vadd.f32 %v5883_v59, %v5070_v17 }
0x26a3   : > { %v7301_v62 = vpack.c.bf16 %v5076_v4, %v5071_v7 }
0x26a5   : > { %7302 = vmatprep.subr.bf16.mxu1 %v7301_v62 }
0x26a6   : > { %7304 = vmatpush3.bf16.msra.mxu1 %v7301_v62 }
0x26a7   : > { %6836 = vmatprep.subr.mxu1 %v5894_v3 }
0x2727   : > { %v5231_v48 = vpop.xlane.xlu1 %5230 }
0x2728   : > { %v5233_v49 = vsub.f32 %v6828_v44, %v5231_v48  ;;  %v5228_v50 = vpop.xlane.xlu0 %5227 }
0x2729   : > { %v5232_v51 = vsub.f32 %v5217_v45, %v5228_v50 }
0x272a   : > { %v5236_v52 = vmul.f32 1.442695, %v5233_v49 }
0x272b   : > { %v5234_v53 = vmul.f32 1.442695, %v5232_v51 }
0x272c   : > { %7485 = vpow2.f32 %v5236_v52 }
0x272d   : > { %7487 = vpow2.f32 %v5234_v53 }
0x2736   : > { %v7486_v54 = vpop.eup %7485 }
0x2737   : > { %v7488_v19 = vpop.eup %7487  ;;  %v5241_v55 = vsel %vm845_vm3, %v7486_v54, 0.0 }
0x2738   : > { %5242 = vadd.xlane.f32.xlu1 %v5241_v55  ;;  %v5238_v56 = vsel %vm845_vm3, %v7488_v19, 0.0 }
0x2739   : > { %5239 = vadd.xlane.f32.xlu0 %v5238_v56 }
0x2749   : > { %5339 = vperm.xlu1 %7364, %v5893_v57  }
0x274f   : > { %5334 = vperm.xlu0 %7363, %v5892_v60  }
0x27c5   : > { %v5243_v63 = vpop.xlane.xlu1 %5242 }
0x27c6   : > { %7489 = vrcp.f32 %v5243_v63  ;;  %v5240_v14 = vpop.xlane.xlu0 %5239 }
0x27c7   : > { %7491 = vrcp.f32 %v5240_v14 }
0x27c9   : > { %v5340_v8 = vpop.permute.xlu1 %5339 }
0x27ce   : > { %v5335_v12 = vpop.permute.xlu0 %5334 }
0x27d0   : > { %v7490_v18 = vpop.eup %7489 }
0x27d1   : > { %v7492_v1 = vpop.eup %7491  ;;  %v5247_v20 = vmul.f32 %v7490_v18, %v7486_v54 }
0x27d2   : > { %v5246_v2 = vmul.f32 %v7492_v1, %v7488_v19 }
0x27d4   : > { %6833 = vmatprep.mubr.msk.f32.mxu1 %vm845_vm3, %v5246_v2 }
0x27d5   : > { %6834 = vmatmul.mubr.msk.f32.vlgmr.msra.gmra.mrb[48].mxu1 %vm845_vm3, %v5247_v20 }
0x27d6   : > { %6837 = vmatpush3.msra.mxu1 %v5894_v3 }
0x28a8   : > { %v6835_v16 = vpop.f32.mrb[48].mxu1 }
0x28a9   : > { %v5320_v15 = vpop.f32.mrb[49].mxu1  ;;  %v5343_v11 = vmul.f32 %v6835_v16, %v5340_v8 }
0x28aa   : > { %v5342_v9 = vmul.f32 %v5335_v12, %v5320_v15 }
0x28ac   : > { %6838 = vmatprep.mubr.msk.f32.mxu1 %vm696_vm1, %v5342_v9 }
0x28ad   : > { %6839 = vmatmul.mubr.msk.f32.vlgmr.msra.gmra.mrb[6].mxu1 %vm696_vm1, %v5343_v11 }
0x2980   : > { %v6840_v25 = vpop.f32.mrb[6].mxu1 }
0x2981   : > { %v7305_v21 = vadd.f32 %v6840_v25, %v5532_v13  ;;  %v5418_v22 = vpop.f32.mrb[7].mxu1 }
0x2982   : > { %v7306_v23 = vadd.f32 %v5532_v13, %v5418_v22 }
0x2983   : > { %5430 = vst.msk [vmem:[%s367_s26 + $0x8] sm:$0xff] %vm448_vm0, %v7305_v21 }
0x2984   : > { %5429 = vst.msk [vmem:[%s367_s26] sm:$0xff] %vm448_vm0, %v7306_v23 }
0x2985   : > { %7518 = shalt.err (!%p7515_p3)
}
0x2986   : > { %s7519_s18 = scalar_lea.hbm %s8810_s11, 256  ;;  %s7523_s28 = scalar_lea.hbm %s8865_s10, 512 }
0x2987   : > { %p7520_p4 = scmp.ne.s32.totalorder %s8810_s11, %s7519_s18  ;;  %p7524_p9 = scmp.lt.u32.totalorder %s8810_s11, %s8865_s10 }
0x2988   : > { %p7525_p10 = scmp.lt.u32.totalorder %s7523_s28, %s7519_s18  ;;  %p7527_p12 = scmp.lt.u32.totalorder %s7519_s18, %s8810_s11 }
0x2989   : > { %p7521_p7 = pnand %p7520_p4, %p7666_p5 }
0x298a   : > { %p7526_p11 = por %p7525_p10, %p7524_p9 }
0x298b   : > { %p7522_p8 = pneg %p7521_p7 }
0x298c   : > { %p7528_p13 = por %p7527_p12, %p7526_p11 }
0x298e   : > { %p7529_p0 = pnand %p7528_p13, %p7522_p8 }
0x2990   : > { %7532 = shalt.err (!%p7529_p0)
}
0x2991   : > { %s7571_s17 = smov 128   ;;  %s7572_s30 = smov 8  }
0x2992   : > { %7321 = dma.vmem_to_hbm [thread:$0]  (%p7666_p5), %s8805_s12, 256, %s8810_s11, %s8814_s27, %s7571_s17, %s7571_s17, %s7572_s30  }
0x2993 PF: > { %p7327_p1 = scmp.ge.s32.totalorder %s7567_s16, 2  ;;  %s5460_s20 = sand.u32 1, %s7555_s13  }
0x2994   : > { %s5461_s21 = scalar_lea.sflag [#allocation3], %s5460_s20 }
0x2995   : > { %p7324_p2 = pnand %p7327_p1, %p7670_p6 }
0x2997   : > { %7550 = dma.done.wait (!%p7324_p2), %s5461_s21, 256  }
0x2998   : > { %7552 = vsyncadd (!%p7324_p2), %s5461_s21, 4294967040  ;;  %p20_p3 = scmp.ge.s32.totalorder %s7653_s19, 4   ;;  %s8872_s13 = smov %s7559_s14 }
0x2999   : > { %s8873_s14 = smov %s7563_s15  ;;  %s8874_s15 = smov %s7664_s22 }
0x299a   : > { %s8875_s16 = smov %s7653_s19  ;;  %22 = sbr.rel (!%p20_p3) target bundleno = 5 (0x5), region = 158 }
0x29a1   :  { %5466 = vsyncpa [#allocation3], 1 }
0x29a2   :  { %5468 = vsyncpa [#allocation3 + $0x1], 1 }

</bundles_post_ra>
